<compile_context>
chip_gen: v6e
topology: v6e:2x2x1
jax: 0.10.0
libtpu: 0.0.40
codegen_flags: <defaults>
</compile_context>

<pallas_src>
import functools

import numpy as np
import jax
import jax.numpy as jnp
from jax import lax
from jax.experimental import pallas as pl
from jax.experimental.pallas import tpu as pltpu

KSIZE = 7
PAD = KSIZE // 2


def _sigmoid(v):
    # f32 path: exp(-v) -> inf for very negative v gives 1/(1+inf) = 0 (no NaN).
    return 1.0 / (1.0 + jnp.exp(-v))


def _tap_masks(H, W):
    """Static (49, H*W) validity masks for a zero-padded 7x7 conv in flattened form."""
    HW = H * W
    rows = np.arange(HW) // W
    cols = np.arange(HW) % W
    masks = np.ones((KSIZE * KSIZE, HW), np.float32)
    for dh in range(KSIZE):
        for dw in range(KSIZE):
            oh = dh - PAD
            ow = dw - PAD
            valid = np.ones(HW, dtype=bool)
            if oh > 0:
                valid &= rows < H - oh
            elif oh < 0:
                valid &= rows >= -oh
            if ow > 0:
                valid &= cols < W - ow
            elif ow < 0:
                valid &= cols >= -ow
            masks[dh * KSIZE + dw] = valid
    return masks


def _cbam_kernel(x_ref, w1t_ref, w2t_ref, wmaps_ref, o_ref, *, H, W):
    # x_ref    : (Bt, C, H*W)   lane-dense input slab (VMEM)
    # w1t_ref  : (C, Cr)        fc1 1x1-conv weight, transposed (VMEM)
    # w2t_ref  : (Cr, C)        fc2 1x1-conv weight, transposed (VMEM)
    # wmaps_ref: (2*49, H*W)    pre-masked spatial-conv weight maps (VMEM)
    # o_ref    : (Bt, C, H*W)   output slab
    x = x_ref[...].astype(jnp.float32)
    Bt, C, HW = x.shape

    # ---------------- channel attention ----------------
    # Average pool on the MXU (dot with a 1/HW column); max pool on the VPU/XLU.
    x2d = x.reshape(Bt * C, HW)
    inv_hw_col = jnp.full((HW, 1), 1.0 / HW, jnp.float32)
    avg_c = jnp.dot(x2d, inv_hw_col,
                    preferred_element_type=jnp.float32).reshape(Bt, C)
    max_c = jnp.max(x, axis=2)                        # (Bt, C)
    pooled = jnp.concatenate([avg_c, max_c], axis=0)  # (2*Bt, C)

    w1t = w1t_ref[...].astype(jnp.float32)            # (C, Cr)
    w2t = w2t_ref[...].astype(jnp.float32)            # (Cr, C)

    # Fused shared MLP: one dot per layer for both avg and max branches.
    h = jnp.maximum(
        jnp.dot(pooled, w1t, preferred_element_type=jnp.float32), 0.0)  # (2Bt, Cr)
    mlp = jnp.dot(h, w2t, preferred_element_type=jnp.float32)           # (2Bt, C)
    ca = _sigmoid(mlp[:Bt] + mlp[Bt:])                # (Bt, C)

    x = x * ca[:, :, None]                            # lane-dense broadcast mul

    # ---------------- spatial attention ----------------
    avg_sp = jnp.mean(x, axis=1)                      # (Bt, HW)
    max_sp = jnp.max(x, axis=1)                       # (Bt, HW)
    feat = jnp.concatenate([avg_sp, max_sp], axis=0)  # (2*Bt, HW)

    wmaps = wmaps_ref[...].astype(jnp.float32)        # (2*49, HW), masks pre-folded

    acc = jnp.zeros((Bt, HW), jnp.float32)
    # 7x7 zero-padded conv in flattened form: one XLU lane roll per tap, then a
    # single broadcast FMA per branch with the pre-masked weight map (no
    # per-tap select / iota compares on the VPU).
    for dh in range(KSIZE):
        for dw in range(KSIZE):
            oh = dh - PAD
            ow = dw - PAD
            t = dh * KSIZE + dw
            shift = (-(oh * W + ow)) % HW
            rolled = pltpu.roll(feat, shift, axis=1) if shift else feat
            acc = (acc
                   + wmaps[t][None, :] * rolled[:Bt]
                   + wmaps[KSIZE * KSIZE + t][None, :] * rolled[Bt:])

    sa = _sigmoid(acc)                                # (Bt, HW)
    o_ref[...] = (x * sa[:, None, :]).astype(o_ref.dtype)


def _pick_block_b(B, C, HW, itemsize):
    # Budget ~2 MiB of f32 working slab per grid step: safe under v5e's small
    # default scoped VMEM and still on the DMA-efficiency plateau.
    bytes_per_b = C * HW * max(itemsize, 4)
    target = max(1, (2 << 20) // max(bytes_per_b, 1))
    # v7x has 2 TensorCores and the batch axis is "parallel": guarantee >= 2
    # grid steps when B >= 2 (harmless on single-TC v5e/v6e).
    if B >= 2:
        target = min(target, -(-B // 2))
    # Sublane-align the block when it is large enough (f32 tile = 8 rows) so
    # mid-block slices (tap[:Bt], mlp[Bt:], concats) stay tile-aligned.
    if target >= 8:
        target = (target // 8) * 8
    return max(1, min(target, B))


def cbam_forward(x, w1, w2, w_spatial, *, block_b=None):
    B, C, H, W = x.shape
    HW = H * W
    Cr = w1.shape[0]

    x_flat = x.reshape(B, C, HW)                      # lane-dense view
    w1t = jnp.asarray(w1, jnp.float32).T              # (C, Cr)
    w2t = jnp.asarray(w2, jnp.float32).T              # (Cr, C)

    # Pre-masked per-tap spatial weight maps: (2, 49, HW) -> (98, HW).
    masks = jnp.asarray(_tap_masks(H, W))                            # (49, HW)
    wsp = jnp.asarray(w_spatial, jnp.float32).reshape(2, KSIZE * KSIZE)
    wmaps = (wsp[:, :, None] * masks[None, :, :]).reshape(2 * KSIZE * KSIZE, HW)

    if block_b is None:
        block_b = _pick_block_b(B, C, HW, x.dtype.itemsize)
    grid = (pl.cdiv(B, block_b),)                     # padded remainder block is fine:
                                                      # per-b work is independent and
                                                      # out-of-bounds writes are dropped.

    kernel = functools.partial(_cbam_kernel, H=H, W=W)

    out = pl.pallas_call(
        kernel,
        out_shape=jax.ShapeDtypeStruct((B, C, HW), x.dtype),
        grid=grid,
        in_specs=[
            pl.BlockSpec((block_b, C, HW), lambda b: (b, 0, 0)),
            pl.BlockSpec((C, Cr), lambda b: (0, 0)),
            pl.BlockSpec((Cr, C), lambda b: (0, 0)),
            pl.BlockSpec((2 * KSIZE * KSIZE, HW), lambda b: (0, 0)),
        ],
        out_specs=pl.BlockSpec((block_b, C, HW), lambda b: (b, 0, 0)),
        compiler_params=pltpu.CompilerParams(
            dimension_semantics=("parallel",),
            vmem_limit_bytes=48 * 1024 * 1024),
    )(x_flat, w1t, w2t, wmaps)
    return out.reshape(B, C, H, W)


def cbam_block_forward(x, w1, w2, w_spatial):
    # CBAMBlock.forward: x = module(x); x = cbam(x)
    # TODO(synk): `module` is an arbitrary injected submodule in the PyTorch
    # code; it is modeled as identity here.
    return cbam_forward(x, w1, w2, w_spatial)


def cbam_reference(x, w1, w2, w_spatial):
    """Pure-JAX reference mirroring the PyTorch forward."""
    avg = jnp.mean(x, axis=(2, 3), keepdims=True)     # (B, C, 1, 1)
    mx = jnp.max(x, axis=(2, 3), keepdims=True)       # (B, C, 1, 1)

    def mlp(v):
        h = jnp.einsum('rc,bcij->brij', w1, v)
        h = jnp.maximum(h, 0.0)
        return jnp.einsum('cr,brij->bcij', w2, h)

    scale = jax.nn.sigmoid(mlp(avg) + mlp(mx))
    x = x * scale
    avg_sp = jnp.mean(x, axis=1, keepdims=True)
    max_sp = jnp.max(x, axis=1, keepdims=True)
    sp = jnp.concatenate([avg_sp, max_sp], axis=1)    # (B, 2, H, W)
    conv = lax.conv_general_dilated(
        sp, w_spatial, window_strides=(1, 1),
        padding=((PAD, PAD), (PAD, PAD)),
        dimension_numbers=('NCHW', 'OIHW', 'NCHW'))
    return x * jax.nn.sigmoid(conv)


if __name__ == "__main__":
    B, C, H, W = 2, 32, 16, 16
    reduction = 16
    Cr = C // reduction  # = 2

    key = jax.random.PRNGKey(0)
    k0, k1, k2, k3 = jax.random.split(key, 4)
    x = jax.random.normal(k0, (B, C, H, W), jnp.float32)
    # Deterministic synthetic parameters (shapes per nn.Conv2d in __init__):
    w1 = jax.random.normal(k1, (Cr, C), jnp.float32) * 0.1           # fc1 (Cr,C,1,1)
    w2 = jax.random.normal(k2, (C, Cr), jnp.float32) * 0.1           # fc2 (C,Cr,1,1)
    w_spatial = jax.random.normal(k3, (1, 2, KSIZE, KSIZE), jnp.float32) * 0.1

    y = cbam_block_forward(x, w1, w2, w_spatial)
    y = jax.block_until_ready(y)

    y_ref = cbam_reference(x, w1, w2, w_spatial)
    err = float(jnp.max(jnp.abs(y - y_ref)))
    assert jnp.allclose(y, y_ref, atol=1e-4, rtol=1e-4), f"max abs err {err}"

    print("KERNEL_OK")
</pallas_src>

<mosaic_0001>
module attributes {stable_mosaic.version = 11 : i64} {
  func.func @_cbam_kernel(%arg0: i32, %arg1: memref<1x32x256xf32, #tpu.memory_space<vmem>>, %arg2: memref<32x2xf32, #tpu.memory_space<vmem>>, %arg3: memref<2x32xf32, #tpu.memory_space<vmem>>, %arg4: memref<98x256xf32, #tpu.memory_space<vmem>>, %arg5: memref<1x32x256xf32, #tpu.memory_space<vmem>>) attributes {dimension_semantics = [#tpu.dimension_semantics<parallel>], iteration_bounds = array<i64: 2>, scalar_prefetch = 0 : i64, scratch_operands = 0 : i64, tpu.core_type = #tpu.core_type<tc>, window_params = [{transform_indices = @transform_0, window_bounds = array<i64: 1, 32, 256>}, {pipeline_mode = #tpu.pipeline_mode<synchronous>, transform_indices = @transform_1, window_bounds = array<i64: 32, 2>}, {pipeline_mode = #tpu.pipeline_mode<synchronous>, transform_indices = @transform_2, window_bounds = array<i64: 2, 32>}, {pipeline_mode = #tpu.pipeline_mode<synchronous>, transform_indices = @transform_3, window_bounds = array<i64: 98, 256>}, {transform_indices = @transform_4, window_bounds = array<i64: 1, 32, 256>}]} {
    %c0 = arith.constant 0 : index
    %c0_0 = arith.constant 0 : index
    %c0_1 = arith.constant 0 : index
    %0 = vector.load %arg1[%c0, %c0_0, %c0_1] : memref<1x32x256xf32, #tpu.memory_space<vmem>>, vector<1x32x256xf32>
    %1 = vector.shape_cast %0 : vector<1x32x256xf32> to vector<32x256xf32>
    %cst = arith.constant 3.906250e-03 : f32
    %2 = vector.broadcast %cst : f32 to vector<256x1xf32>
    %cst_2 = arith.constant dense<0.000000e+00> : vector<32x1xf32>
    %3 = tpu.matmul %1, %2, %cst_2 {dimension_numbers = #tpu.dot_dimension_numbers<[1], [0], [0], [1], [0, 0, 1, 1], [], []>} : vector<32x256xf32>, vector<256x1xf32>, vector<32x1xf32> -> vector<32x1xf32>
    %4 = vector.shape_cast %3 : vector<32x1xf32> to vector<1x32xf32>
    %cst_3 = arith.constant dense<0xFF800000> : vector<1x32xf32>
    %5 = vector.multi_reduction <maximumf>, %0, %cst_3 [2] : vector<1x32x256xf32> to vector<1x32xf32>
    %6 = tpu.concatenate %4, %5 in 0 : vector<1x32xf32>, vector<1x32xf32> -> vector<2x32xf32>
    %c0_4 = arith.constant 0 : index
    %c0_5 = arith.constant 0 : index
    %7 = vector.load %arg2[%c0_4, %c0_5] : memref<32x2xf32, #tpu.memory_space<vmem>>, vector<32x2xf32>
    %c0_6 = arith.constant 0 : index
    %c0_7 = arith.constant 0 : index
    %8 = vector.load %arg3[%c0_6, %c0_7] : memref<2x32xf32, #tpu.memory_space<vmem>>, vector<2x32xf32>
    %cst_8 = arith.constant dense<0.000000e+00> : vector<2x2xf32>
    %9 = tpu.matmul %6, %7, %cst_8 {dimension_numbers = #tpu.dot_dimension_numbers<[1], [0], [0], [1], [0, 0, 1, 1], [], []>} : vector<2x32xf32>, vector<32x2xf32>, vector<2x2xf32> -> vector<2x2xf32>
    %cst_9 = arith.constant 0.000000e+00 : f32
    %10 = vector.broadcast %cst_9 : f32 to vector<2x2xf32>
    %11 = arith.maximumf %9, %10 : vector<2x2xf32>
    %cst_10 = arith.constant dense<0.000000e+00> : vector<2x32xf32>
    %12 = tpu.matmul %11, %8, %cst_10 {dimension_numbers = #tpu.dot_dimension_numbers<[1], [0], [0], [1], [0, 0, 1, 1], [], []>} : vector<2x2xf32>, vector<2x32xf32>, vector<2x32xf32> -> vector<2x32xf32>
    %13 = vector.extract_strided_slice %12 {offsets = [0, 0], sizes = [1, 32], strides = [1, 1]} : vector<2x32xf32> to vector<1x32xf32>
    %14 = vector.extract_strided_slice %12 {offsets = [1, 0], sizes = [1, 32], strides = [1, 1]} : vector<2x32xf32> to vector<1x32xf32>
    %15 = arith.addf %13, %14 : vector<1x32xf32>
    %cst_11 = arith.constant 0.000000e+00 : f32
    %16 = vector.broadcast %cst_11 : f32 to vector<1x32xf32>
    %17 = arith.subf %16, %15 : vector<1x32xf32>
    %18 = math.exp %17 : vector<1x32xf32>
    %cst_12 = arith.constant 1.000000e+00 : f32
    %19 = vector.broadcast %cst_12 : f32 to vector<1x32xf32>
    %20 = arith.addf %19, %18 : vector<1x32xf32>
    %cst_13 = arith.constant 1.000000e+00 : f32
    %21 = vector.broadcast %cst_13 : f32 to vector<1x32xf32>
    %22 = arith.divf %21, %20 : vector<1x32xf32>
    %23 = vector.shape_cast %22 : vector<1x32xf32> to vector<1x32x1xf32>
    %24 = vector.broadcast %23 : vector<1x32x1xf32> to vector<1x32x256xf32>
    %25 = arith.mulf %0, %24 : vector<1x32x256xf32>
    %cst_14 = arith.constant dense<0.000000e+00> : vector<1x256xf32>
    %26 = vector.multi_reduction <add>, %25, %cst_14 [1] : vector<1x32x256xf32> to vector<1x256xf32>
    %cst_15 = arith.constant 3.200000e+01 : f32
    %27 = vector.broadcast %cst_15 : f32 to vector<1x256xf32>
    %28 = arith.divf %26, %27 : vector<1x256xf32>
    %cst_16 = arith.constant dense<0xFF800000> : vector<1x256xf32>
    %29 = vector.multi_reduction <maximumf>, %25, %cst_16 [1] : vector<1x32x256xf32> to vector<1x256xf32>
    %30 = tpu.concatenate %28, %29 in 0 : vector<1x256xf32>, vector<1x256xf32> -> vector<2x256xf32>
    %c0_17 = arith.constant 0 : index
    %c0_18 = arith.constant 0 : index
    %31 = vector.load %arg4[%c0_17, %c0_18] : memref<98x256xf32, #tpu.memory_space<vmem>>, vector<98x256xf32>
    %cst_19 = arith.constant 0.000000e+00 : f32
    %32 = vector.broadcast %cst_19 : f32 to vector<1x256xf32>
    %c51_i32 = arith.constant 51 : i32
    %33 = tpu.dynamic_rotate %30 by %c51_i32 dim 1 : vector<2x256xf32>, i32 -> vector<2x256xf32>
    %34 = vector.extract_strided_slice %31 {offsets = [0, 0], sizes = [1, 256], strides = [1, 1]} : vector<98x256xf32> to vector<1x256xf32>
    %35 = vector.shape_cast %34 : vector<1x256xf32> to vector<256xf32>
    %36 = vector.shape_cast %35 : vector<256xf32> to vector<1x256xf32>
    %37 = vector.extract_strided_slice %33 {offsets = [0, 0], sizes = [1, 256], strides = [1, 1]} : vector<2x256xf32> to vector<1x256xf32>
    %38 = arith.mulf %36, %37 : vector<1x256xf32>
    %39 = arith.addf %32, %38 : vector<1x256xf32>
    %40 = vector.extract_strided_slice %31 {offsets = [49, 0], sizes = [1, 256], strides = [1, 1]} : vector<98x256xf32> to vector<1x256xf32>
    %41 = vector.shape_cast %40 : vector<1x256xf32> to vector<256xf32>
    %42 = vector.shape_cast %41 : vector<256xf32> to vector<1x256xf32>
    %43 = vector.extract_strided_slice %33 {offsets = [1, 0], sizes = [1, 256], strides = [1, 1]} : vector<2x256xf32> to vector<1x256xf32>
    %44 = arith.mulf %42, %43 : vector<1x256xf32>
    %45 = arith.addf %39, %44 : vector<1x256xf32>
    %c50_i32 = arith.constant 50 : i32
    %46 = tpu.dynamic_rotate %30 by %c50_i32 dim 1 : vector<2x256xf32>, i32 -> vector<2x256xf32>
    %47 = vector.extract_strided_slice %31 {offsets = [1, 0], sizes = [1, 256], strides = [1, 1]} : vector<98x256xf32> to vector<1x256xf32>
    %48 = vector.shape_cast %47 : vector<1x256xf32> to vector<256xf32>
    %49 = vector.shape_cast %48 : vector<256xf32> to vector<1x256xf32>
    %50 = vector.extract_strided_slice %46 {offsets = [0, 0], sizes = [1, 256], strides = [1, 1]} : vector<2x256xf32> to vector<1x256xf32>
    %51 = arith.mulf %49, %50 : vector<1x256xf32>
    %52 = arith.addf %45, %51 : vector<1x256xf32>
    %53 = vector.extract_strided_slice %31 {offsets = [50, 0], sizes = [1, 256], strides = [1, 1]} : vector<98x256xf32> to vector<1x256xf32>
    %54 = vector.shape_cast %53 : vector<1x256xf32> to vector<256xf32>
    %55 = vector.shape_cast %54 : vector<256xf32> to vector<1x256xf32>
    %56 = vector.extract_strided_slice %46 {offsets = [1, 0], sizes = [1, 256], strides = [1, 1]} : vector<2x256xf32> to vector<1x256xf32>
    %57 = arith.mulf %55, %56 : vector<1x256xf32>
    %58 = arith.addf %52, %57 : vector<1x256xf32>
    %c49_i32 = arith.constant 49 : i32
    %59 = tpu.dynamic_rotate %30 by %c49_i32 dim 1 : vector<2x256xf32>, i32 -> vector<2x256xf32>
    %60 = vector.extract_strided_slice %31 {offsets = [2, 0], sizes = [1, 256], strides = [1, 1]} : vector<98x256xf32> to vector<1x256xf32>
    %61 = vector.shape_cast %60 : vector<1x256xf32> to vector<256xf32>
    %62 = vector.shape_cast %61 : vector<256xf32> to vector<1x256xf32>
    %63 = vector.extract_strided_slice %59 {offsets = [0, 0], sizes = [1, 256], strides = [1, 1]} : vector<2x256xf32> to vector<1x256xf32>
    %64 = arith.mulf %62, %63 : vector<1x256xf32>
    %65 = arith.addf %58, %64 : vector<1x256xf32>
    %66 = vector.extract_strided_slice %31 {offsets = [51, 0], sizes = [1, 256], strides = [1, 1]} : vector<98x256xf32> to vector<1x256xf32>
    %67 = vector.shape_cast %66 : vector<1x256xf32> to vector<256xf32>
    %68 = vector.shape_cast %67 : vector<256xf32> to vector<1x256xf32>
    %69 = vector.extract_strided_slice %59 {offsets = [1, 0], sizes = [1, 256], strides = [1, 1]} : vector<2x256xf32> to vector<1x256xf32>
    %70 = arith.mulf %68, %69 : vector<1x256xf32>
    %71 = arith.addf %65, %70 : vector<1x256xf32>
    %c48_i32 = arith.constant 48 : i32
    %72 = tpu.dynamic_rotate %30 by %c48_i32 dim 1 : vector<2x256xf32>, i32 -> vector<2x256xf32>
    %73 = vector.extract_strided_slice %31 {offsets = [3, 0], sizes = [1, 256], strides = [1, 1]} : vector<98x256xf32> to vector<1x256xf32>
    %74 = vector.shape_cast %73 : vector<1x256xf32> to vector<256xf32>
    %75 = vector.shape_cast %74 : vector<256xf32> to vector<1x256xf32>
    %76 = vector.extract_strided_slice %72 {offsets = [0, 0], sizes = [1, 256], strides = [1, 1]} : vector<2x256xf32> to vector<1x256xf32>
    %77 = arith.mulf %75, %76 : vector<1x256xf32>
    %78 = arith.addf %71, %77 : vector<1x256xf32>
    %79 = vector.extract_strided_slice %31 {offsets = [52, 0], sizes = [1, 256], strides = [1, 1]} : vector<98x256xf32> to vector<1x256xf32>
    %80 = vector.shape_cast %79 : vector<1x256xf32> to vector<256xf32>
    %81 = vector.shape_cast %80 : vector<256xf32> to vector<1x256xf32>
    %82 = vector.extract_strided_slice %72 {offsets = [1, 0], sizes = [1, 256], strides = [1, 1]} : vector<2x256xf32> to vector<1x256xf32>
    %83 = arith.mulf %81, %82 : vector<1x256xf32>
    %84 = arith.addf %78, %83 : vector<1x256xf32>
    %c47_i32 = arith.constant 47 : i32
    %85 = tpu.dynamic_rotate %30 by %c47_i32 dim 1 : vector<2x256xf32>, i32 -> vector<2x256xf32>
    %86 = vector.extract_strided_slice %31 {offsets = [4, 0], sizes = [1, 256], strides = [1, 1]} : vector<98x256xf32> to vector<1x256xf32>
    %87 = vector.shape_cast %86 : vector<1x256xf32> to vector<256xf32>
    %88 = vector.shape_cast %87 : vector<256xf32> to vector<1x256xf32>
    %89 = vector.extract_strided_slice %85 {offsets = [0, 0], sizes = [1, 256], strides = [1, 1]} : vector<2x256xf32> to vector<1x256xf32>
    %90 = arith.mulf %88, %89 : vector<1x256xf32>
    %91 = arith.addf %84, %90 : vector<1x256xf32>
    %92 = vector.extract_strided_slice %31 {offsets = [53, 0], sizes = [1, 256], strides = [1, 1]} : vector<98x256xf32> to vector<1x256xf32>
    %93 = vector.shape_cast %92 : vector<1x256xf32> to vector<256xf32>
    %94 = vector.shape_cast %93 : vector<256xf32> to vector<1x256xf32>
    %95 = vector.extract_strided_slice %85 {offsets = [1, 0], sizes = [1, 256], strides = [1, 1]} : vector<2x256xf32> to vector<1x256xf32>
    %96 = arith.mulf %94, %95 : vector<1x256xf32>
    %97 = arith.addf %91, %96 : vector<1x256xf32>
    %c46_i32 = arith.constant 46 : i32
    %98 = tpu.dynamic_rotate %30 by %c46_i32 dim 1 : vector<2x256xf32>, i32 -> vector<2x256xf32>
    %99 = vector.extract_strided_slice %31 {offsets = [5, 0], sizes = [1, 256], strides = [1, 1]} : vector<98x256xf32> to vector<1x256xf32>
    %100 = vector.shape_cast %99 : vector<1x256xf32> to vector<256xf32>
    %101 = vector.shape_cast %100 : vector<256xf32> to vector<1x256xf32>
    %102 = vector.extract_strided_slice %98 {offsets = [0, 0], sizes = [1, 256], strides = [1, 1]} : vector<2x256xf32> to vector<1x256xf32>
    %103 = arith.mulf %101, %102 : vector<1x256xf32>
    %104 = arith.addf %97, %103 : vector<1x256xf32>
    %105 = vector.extract_strided_slice %31 {offsets = [54, 0], sizes = [1, 256], strides = [1, 1]} : vector<98x256xf32> to vector<1x256xf32>
    %106 = vector.shape_cast %105 : vector<1x256xf32> to vector<256xf32>
    %107 = vector.shape_cast %106 : vector<256xf32> to vector<1x256xf32>
    %108 = vector.extract_strided_slice %98 {offsets = [1, 0], sizes = [1, 256], strides = [1, 1]} : vector<2x256xf32> to vector<1x256xf32>
    %109 = arith.mulf %107, %108 : vector<1x256xf32>
    %110 = arith.addf %104, %109 : vector<1x256xf32>
    %c45_i32 = arith.constant 45 : i32
    %111 = tpu.dynamic_rotate %30 by %c45_i32 dim 1 : vector<2x256xf32>, i32 -> vector<2x256xf32>
    %112 = vector.extract_strided_slice %31 {offsets = [6, 0], sizes = [1, 256], strides = [1, 1]} : vector<98x256xf32> to vector<1x256xf32>
    %113 = vector.shape_cast %112 : vector<1x256xf32> to vector<256xf32>
    %114 = vector.shape_cast %113 : vector<256xf32> to vector<1x256xf32>
    %115 = vector.extract_strided_slice %111 {offsets = [0, 0], sizes = [1, 256], strides = [1, 1]} : vector<2x256xf32> to vector<1x256xf32>
    %116 = arith.mulf %114, %115 : vector<1x256xf32>
    %117 = arith.addf %110, %116 : vector<1x256xf32>
    %118 = vector.extract_strided_slice %31 {offsets = [55, 0], sizes = [1, 256], strides = [1, 1]} : vector<98x256xf32> to vector<1x256xf32>
    %119 = vector.shape_cast %118 : vector<1x256xf32> to vector<256xf32>
    %120 = vector.shape_cast %119 : vector<256xf32> to vector<1x256xf32>
    %121 = vector.extract_strided_slice %111 {offsets = [1, 0], sizes = [1, 256], strides = [1, 1]} : vector<2x256xf32> to vector<1x256xf32>
    %122 = arith.mulf %120, %121 : vector<1x256xf32>
    %123 = arith.addf %117, %122 : vector<1x256xf32>
    %c35_i32 = arith.constant 35 : i32
    %124 = tpu.dynamic_rotate %30 by %c35_i32 dim 1 : vector<2x256xf32>, i32 -> vector<2x256xf32>
    %125 = vector.extract_strided_slice %31 {offsets = [7, 0], sizes = [1, 256], strides = [1, 1]} : vector<98x256xf32> to vector<1x256xf32>
    %126 = vector.shape_cast %125 : vector<1x256xf32> to vector<256xf32>
    %127 = vector.shape_cast %126 : vector<256xf32> to vector<1x256xf32>
    %128 = vector.extract_strided_slice %124 {offsets = [0, 0], sizes = [1, 256], strides = [1, 1]} : vector<2x256xf32> to vector<1x256xf32>
    %129 = arith.mulf %127, %128 : vector<1x256xf32>
    %130 = arith.addf %123, %129 : vector<1x256xf32>
    %131 = vector.extract_strided_slice %31 {offsets = [56, 0], sizes = [1, 256], strides = [1, 1]} : vector<98x256xf32> to vector<1x256xf32>
    %132 = vector.shape_cast %131 : vector<1x256xf32> to vector<256xf32>
    %133 = vector.shape_cast %132 : vector<256xf32> to vector<1x256xf32>
    %134 = vector.extract_strided_slice %124 {offsets = [1, 0], sizes = [1, 256], strides = [1, 1]} : vector<2x256xf32> to vector<1x256xf32>
    %135 = arith.mulf %133, %134 : vector<1x256xf32>
    %136 = arith.addf %130, %135 : vector<1x256xf32>
    %c34_i32 = arith.constant 34 : i32
    %137 = tpu.dynamic_rotate %30 by %c34_i32 dim 1 : vector<2x256xf32>, i32 -> vector<2x256xf32>
    %138 = vector.extract_strided_slice %31 {offsets = [8, 0], sizes = [1, 256], strides = [1, 1]} : vector<98x256xf32> to vector<1x256xf32>
    %139 = vector.shape_cast %138 : vector<1x256xf32> to vector<256xf32>
    %140 = vector.shape_cast %139 : vector<256xf32> to vector<1x256xf32>
    %141 = vector.extract_strided_slice %137 {offsets = [0, 0], sizes = [1, 256], strides = [1, 1]} : vector<2x256xf32> to vector<1x256xf32>
    %142 = arith.mulf %140, %141 : vector<1x256xf32>
    %143 = arith.addf %136, %142 : vector<1x256xf32>
    %144 = vector.extract_strided_slice %31 {offsets = [57, 0], sizes = [1, 256], strides = [1, 1]} : vector<98x256xf32> to vector<1x256xf32>
    %145 = vector.shape_cast %144 : vector<1x256xf32> to vector<256xf32>
    %146 = vector.shape_cast %145 : vector<256xf32> to vector<1x256xf32>
    %147 = vector.extract_strided_slice %137 {offsets = [1, 0], sizes = [1, 256], strides = [1, 1]} : vector<2x256xf32> to vector<1x256xf32>
    %148 = arith.mulf %146, %147 : vector<1x256xf32>
    %149 = arith.addf %143, %148 : vector<1x256xf32>
    %c33_i32 = arith.constant 33 : i32
    %150 = tpu.dynamic_rotate %30 by %c33_i32 dim 1 : vector<2x256xf32>, i32 -> vector<2x256xf32>
    %151 = vector.extract_strided_slice %31 {offsets = [9, 0], sizes = [1, 256], strides = [1, 1]} : vector<98x256xf32> to vector<1x256xf32>
    %152 = vector.shape_cast %151 : vector<1x256xf32> to vector<256xf32>
    %153 = vector.shape_cast %152 : vector<256xf32> to vector<1x256xf32>
    %154 = vector.extract_strided_slice %150 {offsets = [0, 0], sizes = [1, 256], strides = [1, 1]} : vector<2x256xf32> to vector<1x256xf32>
    %155 = arith.mulf %153, %154 : vector<1x256xf32>
    %156 = arith.addf %149, %155 : vector<1x256xf32>
    %157 = vector.extract_strided_slice %31 {offsets = [58, 0], sizes = [1, 256], strides = [1, 1]} : vector<98x256xf32> to vector<1x256xf32>
    %158 = vector.shape_cast %157 : vector<1x256xf32> to vector<256xf32>
    %159 = vector.shape_cast %158 : vector<256xf32> to vector<1x256xf32>
    %160 = vector.extract_strided_slice %150 {offsets = [1, 0], sizes = [1, 256], strides = [1, 1]} : vector<2x256xf32> to vector<1x256xf32>
    %161 = arith.mulf %159, %160 : vector<1x256xf32>
    %162 = arith.addf %156, %161 : vector<1x256xf32>
    %c32_i32 = arith.constant 32 : i32
    %163 = tpu.dynamic_rotate %30 by %c32_i32 dim 1 : vector<2x256xf32>, i32 -> vector<2x256xf32>
    %164 = vector.extract_strided_slice %31 {offsets = [10, 0], sizes = [1, 256], strides = [1, 1]} : vector<98x256xf32> to vector<1x256xf32>
    %165 = vector.shape_cast %164 : vector<1x256xf32> to vector<256xf32>
    %166 = vector.shape_cast %165 : vector<256xf32> to vector<1x256xf32>
    %167 = vector.extract_strided_slice %163 {offsets = [0, 0], sizes = [1, 256], strides = [1, 1]} : vector<2x256xf32> to vector<1x256xf32>
    %168 = arith.mulf %166, %167 : vector<1x256xf32>
    %169 = arith.addf %162, %168 : vector<1x256xf32>
    %170 = vector.extract_strided_slice %31 {offsets = [59, 0], sizes = [1, 256], strides = [1, 1]} : vector<98x256xf32> to vector<1x256xf32>
    %171 = vector.shape_cast %170 : vector<1x256xf32> to vector<256xf32>
    %172 = vector.shape_cast %171 : vector<256xf32> to vector<1x256xf32>
    %173 = vector.extract_strided_slice %163 {offsets = [1, 0], sizes = [1, 256], strides = [1, 1]} : vector<2x256xf32> to vector<1x256xf32>
    %174 = arith.mulf %172, %173 : vector<1x256xf32>
    %175 = arith.addf %169, %174 : vector<1x256xf32>
    %c31_i32 = arith.constant 31 : i32
    %176 = tpu.dynamic_rotate %30 by %c31_i32 dim 1 : vector<2x256xf32>, i32 -> vector<2x256xf32>
    %177 = vector.extract_strided_slice %31 {offsets = [11, 0], sizes = [1, 256], strides = [1, 1]} : vector<98x256xf32> to vector<1x256xf32>
    %178 = vector.shape_cast %177 : vector<1x256xf32> to vector<256xf32>
    %179 = vector.shape_cast %178 : vector<256xf32> to vector<1x256xf32>
    %180 = vector.extract_strided_slice %176 {offsets = [0, 0], sizes = [1, 256], strides = [1, 1]} : vector<2x256xf32> to vector<1x256xf32>
    %181 = arith.mulf %179, %180 : vector<1x256xf32>
    %182 = arith.addf %175, %181 : vector<1x256xf32>
    %183 = vector.extract_strided_slice %31 {offsets = [60, 0], sizes = [1, 256], strides = [1, 1]} : vector<98x256xf32> to vector<1x256xf32>
    %184 = vector.shape_cast %183 : vector<1x256xf32> to vector<256xf32>
    %185 = vector.shape_cast %184 : vector<256xf32> to vector<1x256xf32>
    %186 = vector.extract_strided_slice %176 {offsets = [1, 0], sizes = [1, 256], strides = [1, 1]} : vector<2x256xf32> to vector<1x256xf32>
    %187 = arith.mulf %185, %186 : vector<1x256xf32>
    %188 = arith.addf %182, %187 : vector<1x256xf32>
    %c30_i32 = arith.constant 30 : i32
    %189 = tpu.dynamic_rotate %30 by %c30_i32 dim 1 : vector<2x256xf32>, i32 -> vector<2x256xf32>
    %190 = vector.extract_strided_slice %31 {offsets = [12, 0], sizes = [1, 256], strides = [1, 1]} : vector<98x256xf32> to vector<1x256xf32>
    %191 = vector.shape_cast %190 : vector<1x256xf32> to vector<256xf32>
    %192 = vector.shape_cast %191 : vector<256xf32> to vector<1x256xf32>
    %193 = vector.extract_strided_slice %189 {offsets = [0, 0], sizes = [1, 256], strides = [1, 1]} : vector<2x256xf32> to vector<1x256xf32>
    %194 = arith.mulf %192, %193 : vector<1x256xf32>
    %195 = arith.addf %188, %194 : vector<1x256xf32>
    %196 = vector.extract_strided_slice %31 {offsets = [61, 0], sizes = [1, 256], strides = [1, 1]} : vector<98x256xf32> to vector<1x256xf32>
    %197 = vector.shape_cast %196 : vector<1x256xf32> to vector<256xf32>
    %198 = vector.shape_cast %197 : vector<256xf32> to vector<1x256xf32>
    %199 = vector.extract_strided_slice %189 {offsets = [1, 0], sizes = [1, 256], strides = [1, 1]} : vector<2x256xf32> to vector<1x256xf32>
    %200 = arith.mulf %198, %199 : vector<1x256xf32>
    %201 = arith.addf %195, %200 : vector<1x256xf32>
    %c29_i32 = arith.constant 29 : i32
    %202 = tpu.dynamic_rotate %30 by %c29_i32 dim 1 : vector<2x256xf32>, i32 -> vector<2x256xf32>
    %203 = vector.extract_strided_slice %31 {offsets = [13, 0], sizes = [1, 256], strides = [1, 1]} : vector<98x256xf32> to vector<1x256xf32>
    %204 = vector.shape_cast %203 : vector<1x256xf32> to vector<256xf32>
    %205 = vector.shape_cast %204 : vector<256xf32> to vector<1x256xf32>
    %206 = vector.extract_strided_slice %202 {offsets = [0, 0], sizes = [1, 256], strides = [1, 1]} : vector<2x256xf32> to vector<1x256xf32>
    %207 = arith.mulf %205, %206 : vector<1x256xf32>
    %208 = arith.addf %201, %207 : vector<1x256xf32>
    %209 = vector.extract_strided_slice %31 {offsets = [62, 0], sizes = [1, 256], strides = [1, 1]} : vector<98x256xf32> to vector<1x256xf32>
    %210 = vector.shape_cast %209 : vector<1x256xf32> to vector<256xf32>
    %211 = vector.shape_cast %210 : vector<256xf32> to vector<1x256xf32>
    %212 = vector.extract_strided_slice %202 {offsets = [1, 0], sizes = [1, 256], strides = [1, 1]} : vector<2x256xf32> to vector<1x256xf32>
    %213 = arith.mulf %211, %212 : vector<1x256xf32>
    %214 = arith.addf %208, %213 : vector<1x256xf32>
    %c19_i32 = arith.constant 19 : i32
    %215 = tpu.dynamic_rotate %30 by %c19_i32 dim 1 : vector<2x256xf32>, i32 -> vector<2x256xf32>
    %216 = vector.extract_strided_slice %31 {offsets = [14, 0], sizes = [1, 256], strides = [1, 1]} : vector<98x256xf32> to vector<1x256xf32>
    %217 = vector.shape_cast %216 : vector<1x256xf32> to vector<256xf32>
    %218 = vector.shape_cast %217 : vector<256xf32> to vector<1x256xf32>
    %219 = vector.extract_strided_slice %215 {offsets = [0, 0], sizes = [1, 256], strides = [1, 1]} : vector<2x256xf32> to vector<1x256xf32>
    %220 = arith.mulf %218, %219 : vector<1x256xf32>
    %221 = arith.addf %214, %220 : vector<1x256xf32>
    %222 = vector.extract_strided_slice %31 {offsets = [63, 0], sizes = [1, 256], strides = [1, 1]} : vector<98x256xf32> to vector<1x256xf32>
    %223 = vector.shape_cast %222 : vector<1x256xf32> to vector<256xf32>
    %224 = vector.shape_cast %223 : vector<256xf32> to vector<1x256xf32>
    %225 = vector.extract_strided_slice %215 {offsets = [1, 0], sizes = [1, 256], strides = [1, 1]} : vector<2x256xf32> to vector<1x256xf32>
    %226 = arith.mulf %224, %225 : vector<1x256xf32>
    %227 = arith.addf %221, %226 : vector<1x256xf32>
    %c18_i32 = arith.constant 18 : i32
    %228 = tpu.dynamic_rotate %30 by %c18_i32 dim 1 : vector<2x256xf32>, i32 -> vector<2x256xf32>
    %229 = vector.extract_strided_slice %31 {offsets = [15, 0], sizes = [1, 256], strides = [1, 1]} : vector<98x256xf32> to vector<1x256xf32>
    %230 = vector.shape_cast %229 : vector<1x256xf32> to vector<256xf32>
    %231 = vector.shape_cast %230 : vector<256xf32> to vector<1x256xf32>
    %232 = vector.extract_strided_slice %228 {offsets = [0, 0], sizes = [1, 256], strides = [1, 1]} : vector<2x256xf32> to vector<1x256xf32>
    %233 = arith.mulf %231, %232 : vector<1x256xf32>
    %234 = arith.addf %227, %233 : vector<1x256xf32>
    %235 = vector.extract_strided_slice %31 {offsets = [64, 0], sizes = [1, 256], strides = [1, 1]} : vector<98x256xf32> to vector<1x256xf32>
    %236 = vector.shape_cast %235 : vector<1x256xf32> to vector<256xf32>
    %237 = vector.shape_cast %236 : vector<256xf32> to vector<1x256xf32>
    %238 = vector.extract_strided_slice %228 {offsets = [1, 0], sizes = [1, 256], strides = [1, 1]} : vector<2x256xf32> to vector<1x256xf32>
    %239 = arith.mulf %237, %238 : vector<1x256xf32>
    %240 = arith.addf %234, %239 : vector<1x256xf32>
    %c17_i32 = arith.constant 17 : i32
    %241 = tpu.dynamic_rotate %30 by %c17_i32 dim 1 : vector<2x256xf32>, i32 -> vector<2x256xf32>
    %242 = vector.extract_strided_slice %31 {offsets = [16, 0], sizes = [1, 256], strides = [1, 1]} : vector<98x256xf32> to vector<1x256xf32>
    %243 = vector.shape_cast %242 : vector<1x256xf32> to vector<256xf32>
    %244 = vector.shape_cast %243 : vector<256xf32> to vector<1x256xf32>
    %245 = vector.extract_strided_slice %241 {offsets = [0, 0], sizes = [1, 256], strides = [1, 1]} : vector<2x256xf32> to vector<1x256xf32>
    %246 = arith.mulf %244, %245 : vector<1x256xf32>
    %247 = arith.addf %240, %246 : vector<1x256xf32>
    %248 = vector.extract_strided_slice %31 {offsets = [65, 0], sizes = [1, 256], strides = [1, 1]} : vector<98x256xf32> to vector<1x256xf32>
    %249 = vector.shape_cast %248 : vector<1x256xf32> to vector<256xf32>
    %250 = vector.shape_cast %249 : vector<256xf32> to vector<1x256xf32>
    %251 = vector.extract_strided_slice %241 {offsets = [1, 0], sizes = [1, 256], strides = [1, 1]} : vector<2x256xf32> to vector<1x256xf32>
    %252 = arith.mulf %250, %251 : vector<1x256xf32>
    %253 = arith.addf %247, %252 : vector<1x256xf32>
    %c16_i32 = arith.constant 16 : i32
    %254 = tpu.dynamic_rotate %30 by %c16_i32 dim 1 : vector<2x256xf32>, i32 -> vector<2x256xf32>
    %255 = vector.extract_strided_slice %31 {offsets = [17, 0], sizes = [1, 256], strides = [1, 1]} : vector<98x256xf32> to vector<1x256xf32>
    %256 = vector.shape_cast %255 : vector<1x256xf32> to vector<256xf32>
    %257 = vector.shape_cast %256 : vector<256xf32> to vector<1x256xf32>
    %258 = vector.extract_strided_slice %254 {offsets = [0, 0], sizes = [1, 256], strides = [1, 1]} : vector<2x256xf32> to vector<1x256xf32>
    %259 = arith.mulf %257, %258 : vector<1x256xf32>
    %260 = arith.addf %253, %259 : vector<1x256xf32>
    %261 = vector.extract_strided_slice %31 {offsets = [66, 0], sizes = [1, 256], strides = [1, 1]} : vector<98x256xf32> to vector<1x256xf32>
    %262 = vector.shape_cast %261 : vector<1x256xf32> to vector<256xf32>
    %263 = vector.shape_cast %262 : vector<256xf32> to vector<1x256xf32>
    %264 = vector.extract_strided_slice %254 {offsets = [1, 0], sizes = [1, 256], strides = [1, 1]} : vector<2x256xf32> to vector<1x256xf32>
    %265 = arith.mulf %263, %264 : vector<1x256xf32>
    %266 = arith.addf %260, %265 : vector<1x256xf32>
    %c15_i32 = arith.constant 15 : i32
    %267 = tpu.dynamic_rotate %30 by %c15_i32 dim 1 : vector<2x256xf32>, i32 -> vector<2x256xf32>
    %268 = vector.extract_strided_slice %31 {offsets = [18, 0], sizes = [1, 256], strides = [1, 1]} : vector<98x256xf32> to vector<1x256xf32>
    %269 = vector.shape_cast %268 : vector<1x256xf32> to vector<256xf32>
    %270 = vector.shape_cast %269 : vector<256xf32> to vector<1x256xf32>
    %271 = vector.extract_strided_slice %267 {offsets = [0, 0], sizes = [1, 256], strides = [1, 1]} : vector<2x256xf32> to vector<1x256xf32>
    %272 = arith.mulf %270, %271 : vector<1x256xf32>
    %273 = arith.addf %266, %272 : vector<1x256xf32>
    %274 = vector.extract_strided_slice %31 {offsets = [67, 0], sizes = [1, 256], strides = [1, 1]} : vector<98x256xf32> to vector<1x256xf32>
    %275 = vector.shape_cast %274 : vector<1x256xf32> to vector<256xf32>
    %276 = vector.shape_cast %275 : vector<256xf32> to vector<1x256xf32>
    %277 = vector.extract_strided_slice %267 {offsets = [1, 0], sizes = [1, 256], strides = [1, 1]} : vector<2x256xf32> to vector<1x256xf32>
    %278 = arith.mulf %276, %277 : vector<1x256xf32>
    %279 = arith.addf %273, %278 : vector<1x256xf32>
    %c14_i32 = arith.constant 14 : i32
    %280 = tpu.dynamic_rotate %30 by %c14_i32 dim 1 : vector<2x256xf32>, i32 -> vector<2x256xf32>
    %281 = vector.extract_strided_slice %31 {offsets = [19, 0], sizes = [1, 256], strides = [1, 1]} : vector<98x256xf32> to vector<1x256xf32>
    %282 = vector.shape_cast %281 : vector<1x256xf32> to vector<256xf32>
    %283 = vector.shape_cast %282 : vector<256xf32> to vector<1x256xf32>
    %284 = vector.extract_strided_slice %280 {offsets = [0, 0], sizes = [1, 256], strides = [1, 1]} : vector<2x256xf32> to vector<1x256xf32>
    %285 = arith.mulf %283, %284 : vector<1x256xf32>
    %286 = arith.addf %279, %285 : vector<1x256xf32>
    %287 = vector.extract_strided_slice %31 {offsets = [68, 0], sizes = [1, 256], strides = [1, 1]} : vector<98x256xf32> to vector<1x256xf32>
    %288 = vector.shape_cast %287 : vector<1x256xf32> to vector<256xf32>
    %289 = vector.shape_cast %288 : vector<256xf32> to vector<1x256xf32>
    %290 = vector.extract_strided_slice %280 {offsets = [1, 0], sizes = [1, 256], strides = [1, 1]} : vector<2x256xf32> to vector<1x256xf32>
    %291 = arith.mulf %289, %290 : vector<1x256xf32>
    %292 = arith.addf %286, %291 : vector<1x256xf32>
    %c13_i32 = arith.constant 13 : i32
    %293 = tpu.dynamic_rotate %30 by %c13_i32 dim 1 : vector<2x256xf32>, i32 -> vector<2x256xf32>
    %294 = vector.extract_strided_slice %31 {offsets = [20, 0], sizes = [1, 256], strides = [1, 1]} : vector<98x256xf32> to vector<1x256xf32>
    %295 = vector.shape_cast %294 : vector<1x256xf32> to vector<256xf32>
    %296 = vector.shape_cast %295 : vector<256xf32> to vector<1x256xf32>
    %297 = vector.extract_strided_slice %293 {offsets = [0, 0], sizes = [1, 256], strides = [1, 1]} : vector<2x256xf32> to vector<1x256xf32>
    %298 = arith.mulf %296, %297 : vector<1x256xf32>
    %299 = arith.addf %292, %298 : vector<1x256xf32>
    %300 = vector.extract_strided_slice %31 {offsets = [69, 0], sizes = [1, 256], strides = [1, 1]} : vector<98x256xf32> to vector<1x256xf32>
    %301 = vector.shape_cast %300 : vector<1x256xf32> to vector<256xf32>
    %302 = vector.shape_cast %301 : vector<256xf32> to vector<1x256xf32>
    %303 = vector.extract_strided_slice %293 {offsets = [1, 0], sizes = [1, 256], strides = [1, 1]} : vector<2x256xf32> to vector<1x256xf32>
    %304 = arith.mulf %302, %303 : vector<1x256xf32>
    %305 = arith.addf %299, %304 : vector<1x256xf32>
    %c3_i32 = arith.constant 3 : i32
    %306 = tpu.dynamic_rotate %30 by %c3_i32 dim 1 : vector<2x256xf32>, i32 -> vector<2x256xf32>
    %307 = vector.extract_strided_slice %31 {offsets = [21, 0], sizes = [1, 256], strides = [1, 1]} : vector<98x256xf32> to vector<1x256xf32>
    %308 = vector.shape_cast %307 : vector<1x256xf32> to vector<256xf32>
    %309 = vector.shape_cast %308 : vector<256xf32> to vector<1x256xf32>
    %310 = vector.extract_strided_slice %306 {offsets = [0, 0], sizes = [1, 256], strides = [1, 1]} : vector<2x256xf32> to vector<1x256xf32>
    %311 = arith.mulf %309, %310 : vector<1x256xf32>
    %312 = arith.addf %305, %311 : vector<1x256xf32>
    %313 = vector.extract_strided_slice %31 {offsets = [70, 0], sizes = [1, 256], strides = [1, 1]} : vector<98x256xf32> to vector<1x256xf32>
    %314 = vector.shape_cast %313 : vector<1x256xf32> to vector<256xf32>
    %315 = vector.shape_cast %314 : vector<256xf32> to vector<1x256xf32>
    %316 = vector.extract_strided_slice %306 {offsets = [1, 0], sizes = [1, 256], strides = [1, 1]} : vector<2x256xf32> to vector<1x256xf32>
    %317 = arith.mulf %315, %316 : vector<1x256xf32>
    %318 = arith.addf %312, %317 : vector<1x256xf32>
    %c2_i32 = arith.constant 2 : i32
    %319 = tpu.dynamic_rotate %30 by %c2_i32 dim 1 : vector<2x256xf32>, i32 -> vector<2x256xf32>
    %320 = vector.extract_strided_slice %31 {offsets = [22, 0], sizes = [1, 256], strides = [1, 1]} : vector<98x256xf32> to vector<1x256xf32>
    %321 = vector.shape_cast %320 : vector<1x256xf32> to vector<256xf32>
    %322 = vector.shape_cast %321 : vector<256xf32> to vector<1x256xf32>
    %323 = vector.extract_strided_slice %319 {offsets = [0, 0], sizes = [1, 256], strides = [1, 1]} : vector<2x256xf32> to vector<1x256xf32>
    %324 = arith.mulf %322, %323 : vector<1x256xf32>
    %325 = arith.addf %318, %324 : vector<1x256xf32>
    %326 = vector.extract_strided_slice %31 {offsets = [71, 0], sizes = [1, 256], strides = [1, 1]} : vector<98x256xf32> to vector<1x256xf32>
    %327 = vector.shape_cast %326 : vector<1x256xf32> to vector<256xf32>
    %328 = vector.shape_cast %327 : vector<256xf32> to vector<1x256xf32>
    %329 = vector.extract_strided_slice %319 {offsets = [1, 0], sizes = [1, 256], strides = [1, 1]} : vector<2x256xf32> to vector<1x256xf32>
    %330 = arith.mulf %328, %329 : vector<1x256xf32>
    %331 = arith.addf %325, %330 : vector<1x256xf32>
    %c1_i32 = arith.constant 1 : i32
    %332 = tpu.dynamic_rotate %30 by %c1_i32 dim 1 : vector<2x256xf32>, i32 -> vector<2x256xf32>
    %333 = vector.extract_strided_slice %31 {offsets = [23, 0], sizes = [1, 256], strides = [1, 1]} : vector<98x256xf32> to vector<1x256xf32>
    %334 = vector.shape_cast %333 : vector<1x256xf32> to vector<256xf32>
    %335 = vector.shape_cast %334 : vector<256xf32> to vector<1x256xf32>
    %336 = vector.extract_strided_slice %332 {offsets = [0, 0], sizes = [1, 256], strides = [1, 1]} : vector<2x256xf32> to vector<1x256xf32>
    %337 = arith.mulf %335, %336 : vector<1x256xf32>
    %338 = arith.addf %331, %337 : vector<1x256xf32>
    %339 = vector.extract_strided_slice %31 {offsets = [72, 0], sizes = [1, 256], strides = [1, 1]} : vector<98x256xf32> to vector<1x256xf32>
    %340 = vector.shape_cast %339 : vector<1x256xf32> to vector<256xf32>
    %341 = vector.shape_cast %340 : vector<256xf32> to vector<1x256xf32>
    %342 = vector.extract_strided_slice %332 {offsets = [1, 0], sizes = [1, 256], strides = [1, 1]} : vector<2x256xf32> to vector<1x256xf32>
    %343 = arith.mulf %341, %342 : vector<1x256xf32>
    %344 = arith.addf %338, %343 : vector<1x256xf32>
    %345 = vector.extract_strided_slice %31 {offsets = [24, 0], sizes = [1, 256], strides = [1, 1]} : vector<98x256xf32> to vector<1x256xf32>
    %346 = vector.shape_cast %345 : vector<1x256xf32> to vector<256xf32>
    %347 = vector.shape_cast %346 : vector<256xf32> to vector<1x256xf32>
    %348 = vector.extract_strided_slice %30 {offsets = [0, 0], sizes = [1, 256], strides = [1, 1]} : vector<2x256xf32> to vector<1x256xf32>
    %349 = arith.mulf %347, %348 : vector<1x256xf32>
    %350 = arith.addf %344, %349 : vector<1x256xf32>
    %351 = vector.extract_strided_slice %31 {offsets = [73, 0], sizes = [1, 256], strides = [1, 1]} : vector<98x256xf32> to vector<1x256xf32>
    %352 = vector.shape_cast %351 : vector<1x256xf32> to vector<256xf32>
    %353 = vector.shape_cast %352 : vector<256xf32> to vector<1x256xf32>
    %354 = vector.extract_strided_slice %30 {offsets = [1, 0], sizes = [1, 256], strides = [1, 1]} : vector<2x256xf32> to vector<1x256xf32>
    %355 = arith.mulf %353, %354 : vector<1x256xf32>
    %356 = arith.addf %350, %355 : vector<1x256xf32>
    %c255_i32 = arith.constant 255 : i32
    %357 = tpu.dynamic_rotate %30 by %c255_i32 dim 1 : vector<2x256xf32>, i32 -> vector<2x256xf32>
    %358 = vector.extract_strided_slice %31 {offsets = [25, 0], sizes = [1, 256], strides = [1, 1]} : vector<98x256xf32> to vector<1x256xf32>
    %359 = vector.shape_cast %358 : vector<1x256xf32> to vector<256xf32>
    %360 = vector.shape_cast %359 : vector<256xf32> to vector<1x256xf32>
    %361 = vector.extract_strided_slice %357 {offsets = [0, 0], sizes = [1, 256], strides = [1, 1]} : vector<2x256xf32> to vector<1x256xf32>
    %362 = arith.mulf %360, %361 : vector<1x256xf32>
    %363 = arith.addf %356, %362 : vector<1x256xf32>
    %364 = vector.extract_strided_slice %31 {offsets = [74, 0], sizes = [1, 256], strides = [1, 1]} : vector<98x256xf32> to vector<1x256xf32>
    %365 = vector.shape_cast %364 : vector<1x256xf32> to vector<256xf32>
    %366 = vector.shape_cast %365 : vector<256xf32> to vector<1x256xf32>
    %367 = vector.extract_strided_slice %357 {offsets = [1, 0], sizes = [1, 256], strides = [1, 1]} : vector<2x256xf32> to vector<1x256xf32>
    %368 = arith.mulf %366, %367 : vector<1x256xf32>
    %369 = arith.addf %363, %368 : vector<1x256xf32>
    %c254_i32 = arith.constant 254 : i32
    %370 = tpu.dynamic_rotate %30 by %c254_i32 dim 1 : vector<2x256xf32>, i32 -> vector<2x256xf32>
    %371 = vector.extract_strided_slice %31 {offsets = [26, 0], sizes = [1, 256], strides = [1, 1]} : vector<98x256xf32> to vector<1x256xf32>
    %372 = vector.shape_cast %371 : vector<1x256xf32> to vector<256xf32>
    %373 = vector.shape_cast %372 : vector<256xf32> to vector<1x256xf32>
    %374 = vector.extract_strided_slice %370 {offsets = [0, 0], sizes = [1, 256], strides = [1, 1]} : vector<2x256xf32> to vector<1x256xf32>
    %375 = arith.mulf %373, %374 : vector<1x256xf32>
    %376 = arith.addf %369, %375 : vector<1x256xf32>
    %377 = vector.extract_strided_slice %31 {offsets = [75, 0], sizes = [1, 256], strides = [1, 1]} : vector<98x256xf32> to vector<1x256xf32>
    %378 = vector.shape_cast %377 : vector<1x256xf32> to vector<256xf32>
    %379 = vector.shape_cast %378 : vector<256xf32> to vector<1x256xf32>
    %380 = vector.extract_strided_slice %370 {offsets = [1, 0], sizes = [1, 256], strides = [1, 1]} : vector<2x256xf32> to vector<1x256xf32>
    %381 = arith.mulf %379, %380 : vector<1x256xf32>
    %382 = arith.addf %376, %381 : vector<1x256xf32>
    %c253_i32 = arith.constant 253 : i32
    %383 = tpu.dynamic_rotate %30 by %c253_i32 dim 1 : vector<2x256xf32>, i32 -> vector<2x256xf32>
    %384 = vector.extract_strided_slice %31 {offsets = [27, 0], sizes = [1, 256], strides = [1, 1]} : vector<98x256xf32> to vector<1x256xf32>
    %385 = vector.shape_cast %384 : vector<1x256xf32> to vector<256xf32>
    %386 = vector.shape_cast %385 : vector<256xf32> to vector<1x256xf32>
    %387 = vector.extract_strided_slice %383 {offsets = [0, 0], sizes = [1, 256], strides = [1, 1]} : vector<2x256xf32> to vector<1x256xf32>
    %388 = arith.mulf %386, %387 : vector<1x256xf32>
    %389 = arith.addf %382, %388 : vector<1x256xf32>
    %390 = vector.extract_strided_slice %31 {offsets = [76, 0], sizes = [1, 256], strides = [1, 1]} : vector<98x256xf32> to vector<1x256xf32>
    %391 = vector.shape_cast %390 : vector<1x256xf32> to vector<256xf32>
    %392 = vector.shape_cast %391 : vector<256xf32> to vector<1x256xf32>
    %393 = vector.extract_strided_slice %383 {offsets = [1, 0], sizes = [1, 256], strides = [1, 1]} : vector<2x256xf32> to vector<1x256xf32>
    %394 = arith.mulf %392, %393 : vector<1x256xf32>
    %395 = arith.addf %389, %394 : vector<1x256xf32>
    %c243_i32 = arith.constant 243 : i32
    %396 = tpu.dynamic_rotate %30 by %c243_i32 dim 1 : vector<2x256xf32>, i32 -> vector<2x256xf32>
    %397 = vector.extract_strided_slice %31 {offsets = [28, 0], sizes = [1, 256], strides = [1, 1]} : vector<98x256xf32> to vector<1x256xf32>
    %398 = vector.shape_cast %397 : vector<1x256xf32> to vector<256xf32>
    %399 = vector.shape_cast %398 : vector<256xf32> to vector<1x256xf32>
    %400 = vector.extract_strided_slice %396 {offsets = [0, 0], sizes = [1, 256], strides = [1, 1]} : vector<2x256xf32> to vector<1x256xf32>
    %401 = arith.mulf %399, %400 : vector<1x256xf32>
    %402 = arith.addf %395, %401 : vector<1x256xf32>
    %403 = vector.extract_strided_slice %31 {offsets = [77, 0], sizes = [1, 256], strides = [1, 1]} : vector<98x256xf32> to vector<1x256xf32>
    %404 = vector.shape_cast %403 : vector<1x256xf32> to vector<256xf32>
    %405 = vector.shape_cast %404 : vector<256xf32> to vector<1x256xf32>
    %406 = vector.extract_strided_slice %396 {offsets = [1, 0], sizes = [1, 256], strides = [1, 1]} : vector<2x256xf32> to vector<1x256xf32>
    %407 = arith.mulf %405, %406 : vector<1x256xf32>
    %408 = arith.addf %402, %407 : vector<1x256xf32>
    %c242_i32 = arith.constant 242 : i32
    %409 = tpu.dynamic_rotate %30 by %c242_i32 dim 1 : vector<2x256xf32>, i32 -> vector<2x256xf32>
    %410 = vector.extract_strided_slice %31 {offsets = [29, 0], sizes = [1, 256], strides = [1, 1]} : vector<98x256xf32> to vector<1x256xf32>
    %411 = vector.shape_cast %410 : vector<1x256xf32> to vector<256xf32>
    %412 = vector.shape_cast %411 : vector<256xf32> to vector<1x256xf32>
    %413 = vector.extract_strided_slice %409 {offsets = [0, 0], sizes = [1, 256], strides = [1, 1]} : vector<2x256xf32> to vector<1x256xf32>
    %414 = arith.mulf %412, %413 : vector<1x256xf32>
    %415 = arith.addf %408, %414 : vector<1x256xf32>
    %416 = vector.extract_strided_slice %31 {offsets = [78, 0], sizes = [1, 256], strides = [1, 1]} : vector<98x256xf32> to vector<1x256xf32>
    %417 = vector.shape_cast %416 : vector<1x256xf32> to vector<256xf32>
    %418 = vector.shape_cast %417 : vector<256xf32> to vector<1x256xf32>
    %419 = vector.extract_strided_slice %409 {offsets = [1, 0], sizes = [1, 256], strides = [1, 1]} : vector<2x256xf32> to vector<1x256xf32>
    %420 = arith.mulf %418, %419 : vector<1x256xf32>
    %421 = arith.addf %415, %420 : vector<1x256xf32>
    %c241_i32 = arith.constant 241 : i32
    %422 = tpu.dynamic_rotate %30 by %c241_i32 dim 1 : vector<2x256xf32>, i32 -> vector<2x256xf32>
    %423 = vector.extract_strided_slice %31 {offsets = [30, 0], sizes = [1, 256], strides = [1, 1]} : vector<98x256xf32> to vector<1x256xf32>
    %424 = vector.shape_cast %423 : vector<1x256xf32> to vector<256xf32>
    %425 = vector.shape_cast %424 : vector<256xf32> to vector<1x256xf32>
    %426 = vector.extract_strided_slice %422 {offsets = [0, 0], sizes = [1, 256], strides = [1, 1]} : vector<2x256xf32> to vector<1x256xf32>
    %427 = arith.mulf %425, %426 : vector<1x256xf32>
    %428 = arith.addf %421, %427 : vector<1x256xf32>
    %429 = vector.extract_strided_slice %31 {offsets = [79, 0], sizes = [1, 256], strides = [1, 1]} : vector<98x256xf32> to vector<1x256xf32>
    %430 = vector.shape_cast %429 : vector<1x256xf32> to vector<256xf32>
    %431 = vector.shape_cast %430 : vector<256xf32> to vector<1x256xf32>
    %432 = vector.extract_strided_slice %422 {offsets = [1, 0], sizes = [1, 256], strides = [1, 1]} : vector<2x256xf32> to vector<1x256xf32>
    %433 = arith.mulf %431, %432 : vector<1x256xf32>
    %434 = arith.addf %428, %433 : vector<1x256xf32>
    %c240_i32 = arith.constant 240 : i32
    %435 = tpu.dynamic_rotate %30 by %c240_i32 dim 1 : vector<2x256xf32>, i32 -> vector<2x256xf32>
    %436 = vector.extract_strided_slice %31 {offsets = [31, 0], sizes = [1, 256], strides = [1, 1]} : vector<98x256xf32> to vector<1x256xf32>
    %437 = vector.shape_cast %436 : vector<1x256xf32> to vector<256xf32>
    %438 = vector.shape_cast %437 : vector<256xf32> to vector<1x256xf32>
    %439 = vector.extract_strided_slice %435 {offsets = [0, 0], sizes = [1, 256], strides = [1, 1]} : vector<2x256xf32> to vector<1x256xf32>
    %440 = arith.mulf %438, %439 : vector<1x256xf32>
    %441 = arith.addf %434, %440 : vector<1x256xf32>
    %442 = vector.extract_strided_slice %31 {offsets = [80, 0], sizes = [1, 256], strides = [1, 1]} : vector<98x256xf32> to vector<1x256xf32>
    %443 = vector.shape_cast %442 : vector<1x256xf32> to vector<256xf32>
    %444 = vector.shape_cast %443 : vector<256xf32> to vector<1x256xf32>
    %445 = vector.extract_strided_slice %435 {offsets = [1, 0], sizes = [1, 256], strides = [1, 1]} : vector<2x256xf32> to vector<1x256xf32>
    %446 = arith.mulf %444, %445 : vector<1x256xf32>
    %447 = arith.addf %441, %446 : vector<1x256xf32>
    %c239_i32 = arith.constant 239 : i32
    %448 = tpu.dynamic_rotate %30 by %c239_i32 dim 1 : vector<2x256xf32>, i32 -> vector<2x256xf32>
    %449 = vector.extract_strided_slice %31 {offsets = [32, 0], sizes = [1, 256], strides = [1, 1]} : vector<98x256xf32> to vector<1x256xf32>
    %450 = vector.shape_cast %449 : vector<1x256xf32> to vector<256xf32>
    %451 = vector.shape_cast %450 : vector<256xf32> to vector<1x256xf32>
    %452 = vector.extract_strided_slice %448 {offsets = [0, 0], sizes = [1, 256], strides = [1, 1]} : vector<2x256xf32> to vector<1x256xf32>
    %453 = arith.mulf %451, %452 : vector<1x256xf32>
    %454 = arith.addf %447, %453 : vector<1x256xf32>
    %455 = vector.extract_strided_slice %31 {offsets = [81, 0], sizes = [1, 256], strides = [1, 1]} : vector<98x256xf32> to vector<1x256xf32>
    %456 = vector.shape_cast %455 : vector<1x256xf32> to vector<256xf32>
    %457 = vector.shape_cast %456 : vector<256xf32> to vector<1x256xf32>
    %458 = vector.extract_strided_slice %448 {offsets = [1, 0], sizes = [1, 256], strides = [1, 1]} : vector<2x256xf32> to vector<1x256xf32>
    %459 = arith.mulf %457, %458 : vector<1x256xf32>
    %460 = arith.addf %454, %459 : vector<1x256xf32>
    %c238_i32 = arith.constant 238 : i32
    %461 = tpu.dynamic_rotate %30 by %c238_i32 dim 1 : vector<2x256xf32>, i32 -> vector<2x256xf32>
    %462 = vector.extract_strided_slice %31 {offsets = [33, 0], sizes = [1, 256], strides = [1, 1]} : vector<98x256xf32> to vector<1x256xf32>
    %463 = vector.shape_cast %462 : vector<1x256xf32> to vector<256xf32>
    %464 = vector.shape_cast %463 : vector<256xf32> to vector<1x256xf32>
    %465 = vector.extract_strided_slice %461 {offsets = [0, 0], sizes = [1, 256], strides = [1, 1]} : vector<2x256xf32> to vector<1x256xf32>
    %466 = arith.mulf %464, %465 : vector<1x256xf32>
    %467 = arith.addf %460, %466 : vector<1x256xf32>
    %468 = vector.extract_strided_slice %31 {offsets = [82, 0], sizes = [1, 256], strides = [1, 1]} : vector<98x256xf32> to vector<1x256xf32>
    %469 = vector.shape_cast %468 : vector<1x256xf32> to vector<256xf32>
    %470 = vector.shape_cast %469 : vector<256xf32> to vector<1x256xf32>
    %471 = vector.extract_strided_slice %461 {offsets = [1, 0], sizes = [1, 256], strides = [1, 1]} : vector<2x256xf32> to vector<1x256xf32>
    %472 = arith.mulf %470, %471 : vector<1x256xf32>
    %473 = arith.addf %467, %472 : vector<1x256xf32>
    %c237_i32 = arith.constant 237 : i32
    %474 = tpu.dynamic_rotate %30 by %c237_i32 dim 1 : vector<2x256xf32>, i32 -> vector<2x256xf32>
    %475 = vector.extract_strided_slice %31 {offsets = [34, 0], sizes = [1, 256], strides = [1, 1]} : vector<98x256xf32> to vector<1x256xf32>
    %476 = vector.shape_cast %475 : vector<1x256xf32> to vector<256xf32>
    %477 = vector.shape_cast %476 : vector<256xf32> to vector<1x256xf32>
    %478 = vector.extract_strided_slice %474 {offsets = [0, 0], sizes = [1, 256], strides = [1, 1]} : vector<2x256xf32> to vector<1x256xf32>
    %479 = arith.mulf %477, %478 : vector<1x256xf32>
    %480 = arith.addf %473, %479 : vector<1x256xf32>
    %481 = vector.extract_strided_slice %31 {offsets = [83, 0], sizes = [1, 256], strides = [1, 1]} : vector<98x256xf32> to vector<1x256xf32>
    %482 = vector.shape_cast %481 : vector<1x256xf32> to vector<256xf32>
    %483 = vector.shape_cast %482 : vector<256xf32> to vector<1x256xf32>
    %484 = vector.extract_strided_slice %474 {offsets = [1, 0], sizes = [1, 256], strides = [1, 1]} : vector<2x256xf32> to vector<1x256xf32>
    %485 = arith.mulf %483, %484 : vector<1x256xf32>
    %486 = arith.addf %480, %485 : vector<1x256xf32>
    %c227_i32 = arith.constant 227 : i32
    %487 = tpu.dynamic_rotate %30 by %c227_i32 dim 1 : vector<2x256xf32>, i32 -> vector<2x256xf32>
    %488 = vector.extract_strided_slice %31 {offsets = [35, 0], sizes = [1, 256], strides = [1, 1]} : vector<98x256xf32> to vector<1x256xf32>
    %489 = vector.shape_cast %488 : vector<1x256xf32> to vector<256xf32>
    %490 = vector.shape_cast %489 : vector<256xf32> to vector<1x256xf32>
    %491 = vector.extract_strided_slice %487 {offsets = [0, 0], sizes = [1, 256], strides = [1, 1]} : vector<2x256xf32> to vector<1x256xf32>
    %492 = arith.mulf %490, %491 : vector<1x256xf32>
    %493 = arith.addf %486, %492 : vector<1x256xf32>
    %494 = vector.extract_strided_slice %31 {offsets = [84, 0], sizes = [1, 256], strides = [1, 1]} : vector<98x256xf32> to vector<1x256xf32>
    %495 = vector.shape_cast %494 : vector<1x256xf32> to vector<256xf32>
    %496 = vector.shape_cast %495 : vector<256xf32> to vector<1x256xf32>
    %497 = vector.extract_strided_slice %487 {offsets = [1, 0], sizes = [1, 256], strides = [1, 1]} : vector<2x256xf32> to vector<1x256xf32>
    %498 = arith.mulf %496, %497 : vector<1x256xf32>
    %499 = arith.addf %493, %498 : vector<1x256xf32>
    %c226_i32 = arith.constant 226 : i32
    %500 = tpu.dynamic_rotate %30 by %c226_i32 dim 1 : vector<2x256xf32>, i32 -> vector<2x256xf32>
    %501 = vector.extract_strided_slice %31 {offsets = [36, 0], sizes = [1, 256], strides = [1, 1]} : vector<98x256xf32> to vector<1x256xf32>
    %502 = vector.shape_cast %501 : vector<1x256xf32> to vector<256xf32>
    %503 = vector.shape_cast %502 : vector<256xf32> to vector<1x256xf32>
    %504 = vector.extract_strided_slice %500 {offsets = [0, 0], sizes = [1, 256], strides = [1, 1]} : vector<2x256xf32> to vector<1x256xf32>
    %505 = arith.mulf %503, %504 : vector<1x256xf32>
    %506 = arith.addf %499, %505 : vector<1x256xf32>
    %507 = vector.extract_strided_slice %31 {offsets = [85, 0], sizes = [1, 256], strides = [1, 1]} : vector<98x256xf32> to vector<1x256xf32>
    %508 = vector.shape_cast %507 : vector<1x256xf32> to vector<256xf32>
    %509 = vector.shape_cast %508 : vector<256xf32> to vector<1x256xf32>
    %510 = vector.extract_strided_slice %500 {offsets = [1, 0], sizes = [1, 256], strides = [1, 1]} : vector<2x256xf32> to vector<1x256xf32>
    %511 = arith.mulf %509, %510 : vector<1x256xf32>
    %512 = arith.addf %506, %511 : vector<1x256xf32>
    %c225_i32 = arith.constant 225 : i32
    %513 = tpu.dynamic_rotate %30 by %c225_i32 dim 1 : vector<2x256xf32>, i32 -> vector<2x256xf32>
    %514 = vector.extract_strided_slice %31 {offsets = [37, 0], sizes = [1, 256], strides = [1, 1]} : vector<98x256xf32> to vector<1x256xf32>
    %515 = vector.shape_cast %514 : vector<1x256xf32> to vector<256xf32>
    %516 = vector.shape_cast %515 : vector<256xf32> to vector<1x256xf32>
    %517 = vector.extract_strided_slice %513 {offsets = [0, 0], sizes = [1, 256], strides = [1, 1]} : vector<2x256xf32> to vector<1x256xf32>
    %518 = arith.mulf %516, %517 : vector<1x256xf32>
    %519 = arith.addf %512, %518 : vector<1x256xf32>
    %520 = vector.extract_strided_slice %31 {offsets = [86, 0], sizes = [1, 256], strides = [1, 1]} : vector<98x256xf32> to vector<1x256xf32>
    %521 = vector.shape_cast %520 : vector<1x256xf32> to vector<256xf32>
    %522 = vector.shape_cast %521 : vector<256xf32> to vector<1x256xf32>
    %523 = vector.extract_strided_slice %513 {offsets = [1, 0], sizes = [1, 256], strides = [1, 1]} : vector<2x256xf32> to vector<1x256xf32>
    %524 = arith.mulf %522, %523 : vector<1x256xf32>
    %525 = arith.addf %519, %524 : vector<1x256xf32>
    %c224_i32 = arith.constant 224 : i32
    %526 = tpu.dynamic_rotate %30 by %c224_i32 dim 1 : vector<2x256xf32>, i32 -> vector<2x256xf32>
    %527 = vector.extract_strided_slice %31 {offsets = [38, 0], sizes = [1, 256], strides = [1, 1]} : vector<98x256xf32> to vector<1x256xf32>
    %528 = vector.shape_cast %527 : vector<1x256xf32> to vector<256xf32>
    %529 = vector.shape_cast %528 : vector<256xf32> to vector<1x256xf32>
    %530 = vector.extract_strided_slice %526 {offsets = [0, 0], sizes = [1, 256], strides = [1, 1]} : vector<2x256xf32> to vector<1x256xf32>
    %531 = arith.mulf %529, %530 : vector<1x256xf32>
    %532 = arith.addf %525, %531 : vector<1x256xf32>
    %533 = vector.extract_strided_slice %31 {offsets = [87, 0], sizes = [1, 256], strides = [1, 1]} : vector<98x256xf32> to vector<1x256xf32>
    %534 = vector.shape_cast %533 : vector<1x256xf32> to vector<256xf32>
    %535 = vector.shape_cast %534 : vector<256xf32> to vector<1x256xf32>
    %536 = vector.extract_strided_slice %526 {offsets = [1, 0], sizes = [1, 256], strides = [1, 1]} : vector<2x256xf32> to vector<1x256xf32>
    %537 = arith.mulf %535, %536 : vector<1x256xf32>
    %538 = arith.addf %532, %537 : vector<1x256xf32>
    %c223_i32 = arith.constant 223 : i32
    %539 = tpu.dynamic_rotate %30 by %c223_i32 dim 1 : vector<2x256xf32>, i32 -> vector<2x256xf32>
    %540 = vector.extract_strided_slice %31 {offsets = [39, 0], sizes = [1, 256], strides = [1, 1]} : vector<98x256xf32> to vector<1x256xf32>
    %541 = vector.shape_cast %540 : vector<1x256xf32> to vector<256xf32>
    %542 = vector.shape_cast %541 : vector<256xf32> to vector<1x256xf32>
    %543 = vector.extract_strided_slice %539 {offsets = [0, 0], sizes = [1, 256], strides = [1, 1]} : vector<2x256xf32> to vector<1x256xf32>
    %544 = arith.mulf %542, %543 : vector<1x256xf32>
    %545 = arith.addf %538, %544 : vector<1x256xf32>
    %546 = vector.extract_strided_slice %31 {offsets = [88, 0], sizes = [1, 256], strides = [1, 1]} : vector<98x256xf32> to vector<1x256xf32>
    %547 = vector.shape_cast %546 : vector<1x256xf32> to vector<256xf32>
    %548 = vector.shape_cast %547 : vector<256xf32> to vector<1x256xf32>
    %549 = vector.extract_strided_slice %539 {offsets = [1, 0], sizes = [1, 256], strides = [1, 1]} : vector<2x256xf32> to vector<1x256xf32>
    %550 = arith.mulf %548, %549 : vector<1x256xf32>
    %551 = arith.addf %545, %550 : vector<1x256xf32>
    %c222_i32 = arith.constant 222 : i32
    %552 = tpu.dynamic_rotate %30 by %c222_i32 dim 1 : vector<2x256xf32>, i32 -> vector<2x256xf32>
    %553 = vector.extract_strided_slice %31 {offsets = [40, 0], sizes = [1, 256], strides = [1, 1]} : vector<98x256xf32> to vector<1x256xf32>
    %554 = vector.shape_cast %553 : vector<1x256xf32> to vector<256xf32>
    %555 = vector.shape_cast %554 : vector<256xf32> to vector<1x256xf32>
    %556 = vector.extract_strided_slice %552 {offsets = [0, 0], sizes = [1, 256], strides = [1, 1]} : vector<2x256xf32> to vector<1x256xf32>
    %557 = arith.mulf %555, %556 : vector<1x256xf32>
    %558 = arith.addf %551, %557 : vector<1x256xf32>
    %559 = vector.extract_strided_slice %31 {offsets = [89, 0], sizes = [1, 256], strides = [1, 1]} : vector<98x256xf32> to vector<1x256xf32>
    %560 = vector.shape_cast %559 : vector<1x256xf32> to vector<256xf32>
    %561 = vector.shape_cast %560 : vector<256xf32> to vector<1x256xf32>
    %562 = vector.extract_strided_slice %552 {offsets = [1, 0], sizes = [1, 256], strides = [1, 1]} : vector<2x256xf32> to vector<1x256xf32>
    %563 = arith.mulf %561, %562 : vector<1x256xf32>
    %564 = arith.addf %558, %563 : vector<1x256xf32>
    %c221_i32 = arith.constant 221 : i32
    %565 = tpu.dynamic_rotate %30 by %c221_i32 dim 1 : vector<2x256xf32>, i32 -> vector<2x256xf32>
    %566 = vector.extract_strided_slice %31 {offsets = [41, 0], sizes = [1, 256], strides = [1, 1]} : vector<98x256xf32> to vector<1x256xf32>
    %567 = vector.shape_cast %566 : vector<1x256xf32> to vector<256xf32>
    %568 = vector.shape_cast %567 : vector<256xf32> to vector<1x256xf32>
    %569 = vector.extract_strided_slice %565 {offsets = [0, 0], sizes = [1, 256], strides = [1, 1]} : vector<2x256xf32> to vector<1x256xf32>
    %570 = arith.mulf %568, %569 : vector<1x256xf32>
    %571 = arith.addf %564, %570 : vector<1x256xf32>
    %572 = vector.extract_strided_slice %31 {offsets = [90, 0], sizes = [1, 256], strides = [1, 1]} : vector<98x256xf32> to vector<1x256xf32>
    %573 = vector.shape_cast %572 : vector<1x256xf32> to vector<256xf32>
    %574 = vector.shape_cast %573 : vector<256xf32> to vector<1x256xf32>
    %575 = vector.extract_strided_slice %565 {offsets = [1, 0], sizes = [1, 256], strides = [1, 1]} : vector<2x256xf32> to vector<1x256xf32>
    %576 = arith.mulf %574, %575 : vector<1x256xf32>
    %577 = arith.addf %571, %576 : vector<1x256xf32>
    %c211_i32 = arith.constant 211 : i32
    %578 = tpu.dynamic_rotate %30 by %c211_i32 dim 1 : vector<2x256xf32>, i32 -> vector<2x256xf32>
    %579 = vector.extract_strided_slice %31 {offsets = [42, 0], sizes = [1, 256], strides = [1, 1]} : vector<98x256xf32> to vector<1x256xf32>
    %580 = vector.shape_cast %579 : vector<1x256xf32> to vector<256xf32>
    %581 = vector.shape_cast %580 : vector<256xf32> to vector<1x256xf32>
    %582 = vector.extract_strided_slice %578 {offsets = [0, 0], sizes = [1, 256], strides = [1, 1]} : vector<2x256xf32> to vector<1x256xf32>
    %583 = arith.mulf %581, %582 : vector<1x256xf32>
    %584 = arith.addf %577, %583 : vector<1x256xf32>
    %585 = vector.extract_strided_slice %31 {offsets = [91, 0], sizes = [1, 256], strides = [1, 1]} : vector<98x256xf32> to vector<1x256xf32>
    %586 = vector.shape_cast %585 : vector<1x256xf32> to vector<256xf32>
    %587 = vector.shape_cast %586 : vector<256xf32> to vector<1x256xf32>
    %588 = vector.extract_strided_slice %578 {offsets = [1, 0], sizes = [1, 256], strides = [1, 1]} : vector<2x256xf32> to vector<1x256xf32>
    %589 = arith.mulf %587, %588 : vector<1x256xf32>
    %590 = arith.addf %584, %589 : vector<1x256xf32>
    %c210_i32 = arith.constant 210 : i32
    %591 = tpu.dynamic_rotate %30 by %c210_i32 dim 1 : vector<2x256xf32>, i32 -> vector<2x256xf32>
    %592 = vector.extract_strided_slice %31 {offsets = [43, 0], sizes = [1, 256], strides = [1, 1]} : vector<98x256xf32> to vector<1x256xf32>
    %593 = vector.shape_cast %592 : vector<1x256xf32> to vector<256xf32>
    %594 = vector.shape_cast %593 : vector<256xf32> to vector<1x256xf32>
    %595 = vector.extract_strided_slice %591 {offsets = [0, 0], sizes = [1, 256], strides = [1, 1]} : vector<2x256xf32> to vector<1x256xf32>
    %596 = arith.mulf %594, %595 : vector<1x256xf32>
    %597 = arith.addf %590, %596 : vector<1x256xf32>
    %598 = vector.extract_strided_slice %31 {offsets = [92, 0], sizes = [1, 256], strides = [1, 1]} : vector<98x256xf32> to vector<1x256xf32>
    %599 = vector.shape_cast %598 : vector<1x256xf32> to vector<256xf32>
    %600 = vector.shape_cast %599 : vector<256xf32> to vector<1x256xf32>
    %601 = vector.extract_strided_slice %591 {offsets = [1, 0], sizes = [1, 256], strides = [1, 1]} : vector<2x256xf32> to vector<1x256xf32>
    %602 = arith.mulf %600, %601 : vector<1x256xf32>
    %603 = arith.addf %597, %602 : vector<1x256xf32>
    %c209_i32 = arith.constant 209 : i32
    %604 = tpu.dynamic_rotate %30 by %c209_i32 dim 1 : vector<2x256xf32>, i32 -> vector<2x256xf32>
    %605 = vector.extract_strided_slice %31 {offsets = [44, 0], sizes = [1, 256], strides = [1, 1]} : vector<98x256xf32> to vector<1x256xf32>
    %606 = vector.shape_cast %605 : vector<1x256xf32> to vector<256xf32>
    %607 = vector.shape_cast %606 : vector<256xf32> to vector<1x256xf32>
    %608 = vector.extract_strided_slice %604 {offsets = [0, 0], sizes = [1, 256], strides = [1, 1]} : vector<2x256xf32> to vector<1x256xf32>
    %609 = arith.mulf %607, %608 : vector<1x256xf32>
    %610 = arith.addf %603, %609 : vector<1x256xf32>
    %611 = vector.extract_strided_slice %31 {offsets = [93, 0], sizes = [1, 256], strides = [1, 1]} : vector<98x256xf32> to vector<1x256xf32>
    %612 = vector.shape_cast %611 : vector<1x256xf32> to vector<256xf32>
    %613 = vector.shape_cast %612 : vector<256xf32> to vector<1x256xf32>
    %614 = vector.extract_strided_slice %604 {offsets = [1, 0], sizes = [1, 256], strides = [1, 1]} : vector<2x256xf32> to vector<1x256xf32>
    %615 = arith.mulf %613, %614 : vector<1x256xf32>
    %616 = arith.addf %610, %615 : vector<1x256xf32>
    %c208_i32 = arith.constant 208 : i32
    %617 = tpu.dynamic_rotate %30 by %c208_i32 dim 1 : vector<2x256xf32>, i32 -> vector<2x256xf32>
    %618 = vector.extract_strided_slice %31 {offsets = [45, 0], sizes = [1, 256], strides = [1, 1]} : vector<98x256xf32> to vector<1x256xf32>
    %619 = vector.shape_cast %618 : vector<1x256xf32> to vector<256xf32>
    %620 = vector.shape_cast %619 : vector<256xf32> to vector<1x256xf32>
    %621 = vector.extract_strided_slice %617 {offsets = [0, 0], sizes = [1, 256], strides = [1, 1]} : vector<2x256xf32> to vector<1x256xf32>
    %622 = arith.mulf %620, %621 : vector<1x256xf32>
    %623 = arith.addf %616, %622 : vector<1x256xf32>
    %624 = vector.extract_strided_slice %31 {offsets = [94, 0], sizes = [1, 256], strides = [1, 1]} : vector<98x256xf32> to vector<1x256xf32>
    %625 = vector.shape_cast %624 : vector<1x256xf32> to vector<256xf32>
    %626 = vector.shape_cast %625 : vector<256xf32> to vector<1x256xf32>
    %627 = vector.extract_strided_slice %617 {offsets = [1, 0], sizes = [1, 256], strides = [1, 1]} : vector<2x256xf32> to vector<1x256xf32>
    %628 = arith.mulf %626, %627 : vector<1x256xf32>
    %629 = arith.addf %623, %628 : vector<1x256xf32>
    %c207_i32 = arith.constant 207 : i32
    %630 = tpu.dynamic_rotate %30 by %c207_i32 dim 1 : vector<2x256xf32>, i32 -> vector<2x256xf32>
    %631 = vector.extract_strided_slice %31 {offsets = [46, 0], sizes = [1, 256], strides = [1, 1]} : vector<98x256xf32> to vector<1x256xf32>
    %632 = vector.shape_cast %631 : vector<1x256xf32> to vector<256xf32>
    %633 = vector.shape_cast %632 : vector<256xf32> to vector<1x256xf32>
    %634 = vector.extract_strided_slice %630 {offsets = [0, 0], sizes = [1, 256], strides = [1, 1]} : vector<2x256xf32> to vector<1x256xf32>
    %635 = arith.mulf %633, %634 : vector<1x256xf32>
    %636 = arith.addf %629, %635 : vector<1x256xf32>
    %637 = vector.extract_strided_slice %31 {offsets = [95, 0], sizes = [1, 256], strides = [1, 1]} : vector<98x256xf32> to vector<1x256xf32>
    %638 = vector.shape_cast %637 : vector<1x256xf32> to vector<256xf32>
    %639 = vector.shape_cast %638 : vector<256xf32> to vector<1x256xf32>
    %640 = vector.extract_strided_slice %630 {offsets = [1, 0], sizes = [1, 256], strides = [1, 1]} : vector<2x256xf32> to vector<1x256xf32>
    %641 = arith.mulf %639, %640 : vector<1x256xf32>
    %642 = arith.addf %636, %641 : vector<1x256xf32>
    %c206_i32 = arith.constant 206 : i32
    %643 = tpu.dynamic_rotate %30 by %c206_i32 dim 1 : vector<2x256xf32>, i32 -> vector<2x256xf32>
    %644 = vector.extract_strided_slice %31 {offsets = [47, 0], sizes = [1, 256], strides = [1, 1]} : vector<98x256xf32> to vector<1x256xf32>
    %645 = vector.shape_cast %644 : vector<1x256xf32> to vector<256xf32>
    %646 = vector.shape_cast %645 : vector<256xf32> to vector<1x256xf32>
    %647 = vector.extract_strided_slice %643 {offsets = [0, 0], sizes = [1, 256], strides = [1, 1]} : vector<2x256xf32> to vector<1x256xf32>
    %648 = arith.mulf %646, %647 : vector<1x256xf32>
    %649 = arith.addf %642, %648 : vector<1x256xf32>
    %650 = vector.extract_strided_slice %31 {offsets = [96, 0], sizes = [1, 256], strides = [1, 1]} : vector<98x256xf32> to vector<1x256xf32>
    %651 = vector.shape_cast %650 : vector<1x256xf32> to vector<256xf32>
    %652 = vector.shape_cast %651 : vector<256xf32> to vector<1x256xf32>
    %653 = vector.extract_strided_slice %643 {offsets = [1, 0], sizes = [1, 256], strides = [1, 1]} : vector<2x256xf32> to vector<1x256xf32>
    %654 = arith.mulf %652, %653 : vector<1x256xf32>
    %655 = arith.addf %649, %654 : vector<1x256xf32>
    %c205_i32 = arith.constant 205 : i32
    %656 = tpu.dynamic_rotate %30 by %c205_i32 dim 1 : vector<2x256xf32>, i32 -> vector<2x256xf32>
    %657 = vector.extract_strided_slice %31 {offsets = [48, 0], sizes = [1, 256], strides = [1, 1]} : vector<98x256xf32> to vector<1x256xf32>
    %658 = vector.shape_cast %657 : vector<1x256xf32> to vector<256xf32>
    %659 = vector.shape_cast %658 : vector<256xf32> to vector<1x256xf32>
    %660 = vector.extract_strided_slice %656 {offsets = [0, 0], sizes = [1, 256], strides = [1, 1]} : vector<2x256xf32> to vector<1x256xf32>
    %661 = arith.mulf %659, %660 : vector<1x256xf32>
    %662 = arith.addf %655, %661 : vector<1x256xf32>
    %663 = vector.extract_strided_slice %31 {offsets = [97, 0], sizes = [1, 256], strides = [1, 1]} : vector<98x256xf32> to vector<1x256xf32>
    %664 = vector.shape_cast %663 : vector<1x256xf32> to vector<256xf32>
    %665 = vector.shape_cast %664 : vector<256xf32> to vector<1x256xf32>
    %666 = vector.extract_strided_slice %656 {offsets = [1, 0], sizes = [1, 256], strides = [1, 1]} : vector<2x256xf32> to vector<1x256xf32>
    %667 = arith.mulf %665, %666 : vector<1x256xf32>
    %668 = arith.addf %662, %667 : vector<1x256xf32>
    %cst_20 = arith.constant 0.000000e+00 : f32
    %669 = vector.broadcast %cst_20 : f32 to vector<1x256xf32>
    %670 = arith.subf %669, %668 : vector<1x256xf32>
    %671 = math.exp %670 : vector<1x256xf32>
    %cst_21 = arith.constant 1.000000e+00 : f32
    %672 = vector.broadcast %cst_21 : f32 to vector<1x256xf32>
    %673 = arith.addf %672, %671 : vector<1x256xf32>
    %cst_22 = arith.constant 1.000000e+00 : f32
    %674 = vector.broadcast %cst_22 : f32 to vector<1x256xf32>
    %675 = arith.divf %674, %673 : vector<1x256xf32>
    %676 = vector.shape_cast %675 : vector<1x256xf32> to vector<1x1x256xf32>
    %677 = vector.broadcast %676 : vector<1x1x256xf32> to vector<1x32x256xf32>
    %678 = arith.mulf %25, %677 : vector<1x32x256xf32>
    %c0_23 = arith.constant 0 : index
    %c0_24 = arith.constant 0 : index
    %c0_25 = arith.constant 0 : index
    %679 = vector.load %arg5[%c0_23, %c0_24, %c0_25] : memref<1x32x256xf32, #tpu.memory_space<vmem>>, vector<1x32x256xf32>
    tpu.vector_store %arg5[%c0_23, %c0_24, %c0_25], %678 {strides = array<i32>} : memref<1x32x256xf32, #tpu.memory_space<vmem>>, vector<1x32x256xf32>,
    return
  }
  func.func @transform_0(%arg0: i32) -> (i32, i32, i32) {
    %c0_i32 = arith.constant 0 : i32
    %c0_i32_0 = arith.constant 0 : i32
    %c0_i32_1 = arith.constant 0 : i32
    return %arg0, %c0_i32, %c0_i32_0 : i32, i32, i32
  }
  func.func @transform_1(%arg0: i32) -> (i32, i32) {
    %c0_i32 = arith.constant 0 : i32
    %c0_i32_0 = arith.constant 0 : i32
    %c0_i32_1 = arith.constant 0 : i32
    return %c0_i32, %c0_i32_0 : i32, i32
  }
  func.func @transform_2(%arg0: i32) -> (i32, i32) {
    %c0_i32 = arith.constant 0 : i32
    %c0_i32_0 = arith.constant 0 : i32
    %c0_i32_1 = arith.constant 0 : i32
    return %c0_i32, %c0_i32_0 : i32, i32
  }
  func.func @transform_3(%arg0: i32) -> (i32, i32) {
    %c0_i32 = arith.constant 0 : i32
    %c0_i32_0 = arith.constant 0 : i32
    %c0_i32_1 = arith.constant 0 : i32
    return %c0_i32, %c0_i32_0 : i32, i32
  }
  func.func @transform_4(%arg0: i32) -> (i32, i32, i32) {
    %c0_i32 = arith.constant 0 : i32
    %c0_i32_0 = arith.constant 0 : i32
    %c0_i32_1 = arith.constant 0 : i32
    return %arg0, %c0_i32, %c0_i32_0 : i32, i32, i32
  }
}

</mosaic_0001>

<bundles_post_ra>
// kernel: tpu_custom_call.1
= control target key start
LH: loop header
LB: loop body
LE: loop exit
PB: predicated region body
PF: predicated region fallthrough
CT: control target
= control target key end

     0   :  { %9 = vsyncpa [#allocation3], 0  ;;  %s3588_s0 = inlined_call_operand.hbm [shape: f32[2,32,256], index: 0, kind: input, shape index: {}]   ;;  %s3589_s1 = inlined_call_operand.vmem [shape: f32[32,2], index: 1, kind: input, shape index: {}]   ;;  %s3590_s2 = inlined_call_operand.vmem [shape: f32[2,32], index: 2, kind: input, shape index: {}]   ;;  %s3591_s3 = inlined_call_operand.hbm [shape: f32[98,256], index: 3, kind: input, shape index: {}]   ;;  %s3592_s4 = inlined_call_operand.hbm [shape: f32[2,32,256], index: 4, kind: output, shape index: {}]  }
   0x1   :  { %11 = vsyncpa [#allocation3 + $0x1], 0 }
   0x2   :  { %12 = vsyncpa [#allocation6], 0 }
   0x3   :  { %13 = vsyncpa [#allocation4], 0 }
   0x4   :  { %15 = vsyncpa [#allocation4 + $0x1], 0  ;;  %s2714_s15 = smov 0   ;;  %s2716_s16 = smov 0  }
   0x5   :  { %s2718_s17 = smov 0   ;;  %s2720_s18 = smov 0  }
   0x6 LB: > { %s2735_s19 = sadd.s32 4294967295, %s2629_s18   ;;  %s2291_s20 = sadd.s32 4294967294, %s2629_s18   ;;  %s2629_s18 = sphi %s2720_s18, %s3614_s18   ;;  %s2625_s17 = sphi %s2718_s17, %s3613_s17   ;;  %s2621_s16 = sphi %s2716_s16, %s3612_s16   ;;  %s2617_s15 = sphi %s2714_s15, %s3611_s15  }
   0x7   : > { %p41_p0 = scmp.ne.s32.totalorder %s2621_s16, %s2617_s15  ;;  %p3593_p1 = scmp.eq.s32.totalorder %s2735_s19, 0 }
   0x8   : > { %p134_p3 = scmp.eq.s32.totalorder %s2291_s20, 1  ;;  %p2292_p5 = scmp.ge.s32.totalorder %s2629_s18, 1 }
   0x9   : > { %p2744_p4 = por %p3593_p1, %p41_p0  ;;  %p141_p7 = scmp.lt.s32.totalorder %s2629_s18, 3 }
   0xa   : > { %p2749_p6 = por %p134_p3, %p41_p0  ;;  %s2631_s24 = smov [#allocation5]  }
   0xb   : > { %s3597_s21 = scalar_select %p2744_p4, 1, 0 }
   0xc   : > { %s3598_s22 = scalar_select %p2749_p6, 1, 0 }
   0xd   : > { %p2754_p8 = pnand %p2292_p5, %p141_p7  ;;  %s159_s25 = sshll.u32 %s2631_s24, 4  ;;  %s160_s25 = int_to_ptr.vmem [resolvable:$true] %s159_s25 }
   0xe   : > { %s2768_s27 = sadd.s32 1, %s2629_s18   ;;  %s28_s28 = sadd.s32 1, %s2625_s17 }
   0xf   : > { %s3599_s23 = scalar_select %p2754_p8, 1, 0 }
  0x10   : > { %p2387_p9 = pneg %p2754_p8  ;;  %s25_s29 = ssub.s32 %s2629_s18, %s2768_s27 }
  0x11   : > { %s2518_s30 = scalar_lea.vmem %s160_s25, 3328  ;;  %p2526_p5 = scmp.lt.s32.totalorder %s160_s25, %s160_s25 }
  0x12   : > { %p2763_p11 = pnand %p2387_p9, %p3593_p1  ;;  %p2519_p13 = scmp.ne.s32.totalorder %s160_s25, %s2518_s30 }
  0x13   : > { %p2527_p7 = scmp.lt.s32.totalorder %s2518_s30, %s2518_s30 }
  0x14   : > { %p2509_p12 = pneg %p2763_p11 }
  0x15   : > { %p2528_p10 = por %p2527_p7, %p2526_p5 }
  0x16   : > { %p2521_p0 = pnand %p2519_p13, %p2509_p12 }
  0x18   : > { %p2522_p3 = pneg %p2521_p0 }
  0x1a   : > { %p2529_p2 = pnand %p2528_p10, %p2522_p3 }
  0x1c   : > { %2532 = shalt.err (!%p2529_p2)
}
  0x1d   : > { %s2632_s5 = smov 256   ;;  %s2633_s6 = smov 16  }
  0x1e   : > { %2390 = dma.hbm_to_vmem [thread:$0]  (!%p2763_p11), %s3591_s3, 3328, %s160_s25, [#allocation6], %s2632_s5, %s2632_s5, %s2633_s6  }
  0x1f   : > { %p26_p2 = scmp.eq.s32.totalorder %s25_s29, 0  ;;  %p35_p9 = scmp.ne.s32.totalorder %s2625_s17, %s2621_s16 }
  0x20   : > { %p36_p10 = scmp.eq.s32.totalorder %s2629_s18, 0  ;;  %p2400_p12 = scmp.lt.s32.totalorder %s2629_s18, 2 }
  0x21   : > { %s2788_s9 = scalar_select %p26_p2, %s2625_s17, %s28_s28  }
  0x22   : > { %p37_p13 = por %p36_p10, %p35_p9  ;;  %p3601_p0 = scmp.eq.s32.totalorder %s2735_s19, 1 }
  0x23   : > { %s173_s11 = sand.u32 1, %s2625_s17   ;;  %s2310_s12 = sshll.u32 %s2629_s18, 10 }
  0x24   : > { %p2792_p3 = por %p3601_p0, %p35_p9  ;;  %s2295_s13 = sshll.u32 %s173_s11, 6 }
  0x25   : > { %s2801_s24 = scalar_lea.hbm %s3588_s0, %s2310_s12  ;;  %s177_s25 = scalar_lea.vmem [#allocation2], %s2295_s13 }
  0x26   : > { %s3602_s10 = scalar_select %p2792_p3, 1, 0 }
  0x27   : > { %s184_s26 = sshll.u32 %s177_s25, 4  ;;  %p2803_p11 = pnand %p2400_p12, %p37_p13  ;;  %s2807_s26 = int_to_ptr.vmem [resolvable:$true] %s184_s26 }
  0x28   : > { %s2809_s29 = scalar_lea.sflag [#allocation3], %s173_s11  ;;  %s2533_s30 = scalar_lea.hbm %s2801_s24, 1024 }
  0x29   : > { %p2534_p5 = scmp.ne.s32.totalorder %s2801_s24, %s2533_s30  ;;  %p2535_p7 = pneg %p2803_p11 }
  0x2a   : > { %s2538_s12 = scalar_lea.hbm %s3588_s0, 2048  ;;  %p2539_p10 = scmp.lt.s32.totalorder %s2801_s24, %s3588_s0 }
  0x2b   : > { %p2536_p2 = pnand %p2535_p7, %p2534_p5  ;;  %p2540_p12 = scmp.lt.s32.totalorder %s2538_s12, %s2533_s30 }
  0x2d   : > { %p2537_p9 = pneg %p2536_p2  ;;  %p2541_p13 = por %p2540_p12, %p2539_p10 }
  0x2f   : > { %p2542_p0 = pnand %p2541_p13, %p2537_p9 }
  0x31   : > { %2545 = shalt.err (!%p2542_p0)
}
  0x32   : > { %s2546_s11 = scalar_lea.vmem %s2807_s26, 1024  ;;  %s2634_s20 = smov [#allocation2]  }
  0x33   : > { %p2547_p1 = scmp.ne.s32.totalorder %s2807_s26, %s2546_s11  ;;  %s2551_s25 = sshll.u32 %s2634_s20, 4  ;;  %s2552_s25 = int_to_ptr.vmem [resolvable:$false] %s2551_s25 }
  0x34   : > { %s2553_s7 = scalar_lea.vmem %s2552_s25, 2048  ;;  %p2554_p2 = scmp.lt.s32.totalorder %s2807_s26, %s2552_s25 }
  0x35   : > { %p2549_p6 = pnand %p2547_p1, %p2535_p7  ;;  %p2555_p3 = scmp.lt.s32.totalorder %s2553_s7, %s2546_s11 }
  0x37   : > { %p2550_p5 = pneg %p2549_p6  ;;  %p2556_p4 = por %p2555_p3, %p2554_p2 }
  0x39   : > { %p2557_p8 = pnand %p2556_p4, %p2550_p5 }
  0x3b   : > { %2560 = shalt.err (!%p2557_p8)
}
  0x3c   : > { %2394 = dma.hbm_to_vmem [thread:$0]  (!%p2803_p11), %s2801_s24, 1024, %s2807_s26, %s2809_s29, %s2632_s5, %s2632_s5, %s2633_s6  }
  0x3d   : > { %p3604_p1 = scmp.ne.s32.totalorder %s3599_s23, 0 }
  0x3e   : > { %s2836_s30 = sand.u32 (!%p3604_p1), 1, %s2621_s16   ;;  %p3605_p4 = scmp.ne.s32.totalorder (!%p3604_p1), %s3597_s21, 0 }
  0x3f   : > { %196 = sbr.rel (%p3604_p1) target bundleno = 1392 (0x570), region = 36  ;;  %s2299_s8 = sshll.u32 (!%p3604_p1), %s2836_s30, 6 }
  0x40   : > { %s199_s12 = scalar_lea.sflag (!%p3604_p1), [#allocation3], %s2836_s30  ;;  %s202_s28 = scalar_lea.vmem (!%p3604_p1), [#allocation2], %s2299_s8 }
  0x44   : > { %2604 = dma.done.wait (%p3605_p4), %s199_s12, 1024  }
  0x45   : > { %2606 = vsyncadd (%p3605_p4), %s199_s12, 4294966272  ;;  %p3606_p6 = scmp.eq.s32.totalorder %s2735_s19, 0 }
  0x47   : > { %2608 = dma.done.wait (%p3606_p6), [#allocation6], 3328   ;;  %p3607_p8 = pmov %p3606_p6 }
  0x48   : > { %v2635_v0 = vmov 0.00390625   ;;  %v2850_v1 = vld [vmem:[%s202_s28 + $0x8] sm:$0xff]  ;;  %v2852_v2 = vld [vmem:[%s202_s28] sm:$0xff]  ;;  %v2861_v6 = vld [vmem:[%s202_s28 + $0x18] sm:$0xff]  ;;  %v2636_v13 = vmov 0   ;;  %v2637_v21 = vmov 0.0   ;;  %v352_v31 = vlaneseq }
  0x49   : > { %2610 = vsyncadd (%p3607_p8), [#allocation6], 4294963968  ;;  %2312 = vmatprep.subr.mxu0 %v2635_v0  ;;  %303 = vmatprep.mubr.f32.mxu0 %v2850_v1  ;;  %v2855_v3 = vld [vmem:[%s202_s28 + $0x28] sm:$0xff]  ;;  %v2857_v4 = vld [vmem:[%s202_s28 + $0x20] sm:$0xff]  ;;  %v324_v5 = vmax.f32 %v2852_v2, %v2850_v1  ;;  %vm2638_vm0 = vmmov 0   ;;  %vm363_vm1 = vcmask 130112  }
  0x4a   : > { %2313 = vmatpush3.msra.mxu0 %v2635_v0  ;;  %v2863_v7 = vld [vmem:[%s202_s28 + $0x10] sm:$0xff]  ;;  %v330_v8 = vmax.f32 %v2857_v4, %v2855_v3  ;;  %v2867_v9 = vld [vmem:[%s202_s28 + $0x38] sm:$0xff]  ;;  %2491 = vset.pattern.permute.xlu0 %v2636_v13  ;;  %v407_v27 = vld [vmem:[%s3589_s1 + $0x8] sm:$0xff]  ;;  %v2901_v32 = vand.u32 127, %v352_v31  ;;  %v355_v35 = vshrl.u32 %v352_v31, 7  ;;  %vm370_vm2 = vcmask 195712  }
  0x4b   : > { %2314 = vmatprep.subr.mxu0 %v2635_v0  ;;  %v2869_v10 = vld [vmem:[%s202_s28 + $0x30] sm:$0xff]  ;;  %325 = vmax.xlane.f32.xlu0 %v324_v5  ;;  %v327_v11 = vmax.f32 %v2863_v7, %v2861_v6  ;;  %v409_v22 = vld [vmem:[%s3589_s1 + $0x18] sm:$0xff]  ;;  %v406_v28 = vld [vmem:[%s3589_s1] sm:$0xff]  ;;  %vm377_vm3 = vcmask 261312   ;;  %vm404_vm4 = vcmask 1040384   ;;  %vm411_vm5 = vcmask 261120  }
  0x4c   : > { %2315 = vmatpush3.msra.mxu0 %v2635_v0  ;;  %331 = vmax.xlane.f32.xlu1 %v330_v8  ;;  %v333_v12 = vmax.f32 %v2869_v10, %v2867_v9  ;;  %v408_v25 = vld [vmem:[%s3589_s1 + $0x10] sm:$0xff]  ;;  %v358_v36 = vadd.s32 4294967288, %v2901_v32  ;;  %v365_v37 = vadd.s32 4294967280, %v2901_v32  ;;  %v356_v39 = vsub.s32 %v2901_v32, %v355_v35  ;;  %v410_v63 = vld [vmem:[%s3590_s2] sm:$0x3]  ;;  %s2639_s20 = smov 51  }
  0x4d   : > { %2316 = vmatprep.subr.mxu0 %v2635_v0  ;;  %2492 = vset.pattern.permute.xlu1 %v2636_v13  ;;  %v372_v42 = vadd.s32 4294967272, %v2901_v32  ;;  %vm490_vm6 = vcmask 1041408   ;;  %vm486_vm7 = vcmask 15360   ;;  %s2640_s25 = smov 50   ;;  %s2641_s7 = smov 49   ;;  %vm672_vm8 = vcmp.lt.s32.totalorder %v2901_v32, 51 }
  0x4e   : > { %2317 = vmatpush3.msra.mxu0 %v2635_v0  ;;  %2363 = vmatprep.subr.mxu1 %v2637_v21  ;;  %v361_v40 = vsub.s32 %v358_v36, %v355_v35  ;;  %v368_v43 = vsub.s32 %v365_v37, %v355_v35  ;;  %s2642_s12 = smov 48   ;;  %s2643_s28 = smov 47   ;;  %vm693_vm9 = vcmp.lt.s32.totalorder %v2901_v32, 50  ;;  %vm726_vm10 = vcmp.lt.s32.totalorder %v2901_v32, 49 }
  0x4f   : > { %2318 = vmatprep.subr.mxu0 %v2635_v0  ;;  %328 = vmax.xlane.f32.xlu0 %v327_v11  ;;  %v375_v47 = vsub.s32 %v372_v42, %v355_v35  ;;  %s2644_s21 = smov 46   ;;  %s2645_s23 = smov 45   ;;  %vm759_vm11 = vcmp.lt.s32.totalorder %v2901_v32, 48  ;;  %vm792_vm12 = vcmp.lt.s32.totalorder %v2901_v32, 47  ;;  %vm825_vm13 = vcmp.lt.s32.totalorder %v2901_v32, 46 }
  0x50   : > { %2319 = vmatpush3.msra.mxu0 %v2635_v0  ;;  %334 = vmax.xlane.f32.xlu1 %v333_v12  ;;  %s2646_s5 = smov 35   ;;  %s2647_s6 = smov 34   ;;  %vm858_vm14 = vcmp.lt.s32.totalorder %v2901_v32, 45  ;;  %vm891_vm15 = vcmp.lt.s32.totalorder %v2901_v32, 35 }
  0x51   : > { %2320 = vmatprep.subr.mxu0 %v2635_v0  ;;  %2364 = vmatpush3.msra.mxu1 %v409_v22  ;;  %s2648_s24 = smov 33   ;;  %s2649_s26 = smov 32  }
  0x52   : > { %2321 = vmatpush3.msra.mxu0 %v2635_v0  ;;  %2365 = vmatprep.subr.mxu1 %v2637_v21  ;;  %s2650_s29 = smov 31   ;;  %s2651_s13 = smov 30  }
  0x53   : > { %2322 = vmatprep.subr.mxu0 %v2635_v0  ;;  %2366 = vmatpush3.msra.mxu1 %v408_v25  ;;  %s2652_s14 = smov 29   ;;  %s2653_s11 = smov 19  }
  0x54   : > { %2323 = vmatpush3.msra.mxu0 %v2635_v0  ;;  %2367 = vmatprep.subr.mxu1 %v2637_v21  ;;  %p3608_p11 = scmp.ne.s32.totalorder %s3602_s10, 0 }
  0x55   : > { %2324 = vmatprep.subr.mxu0 %v2635_v0  ;;  %2368 = vmatpush3.msra.mxu1 %v407_v27 }
  0x56   : > { %2325 = vmatpush3.msra.mxu0 %v2635_v0  ;;  %2371 = vmatprep.mubr.msk.f32.mxu1 %vm2638_vm0, %v2637_v21 }
  0x57   : > { %2326 = vmatprep.subr.mxu0 %v2635_v0  ;;  %2369 = vmatprep.subr.mxu1 %v2637_v21 }
  0x58   : > { %2327 = vmatpush3.msra.mxu0 %v2635_v0  ;;  %2370 = vmatpush3.msra.mxu1 %v406_v28 }
  0x59   : > { %2328 = vmatprep.subr.mxu0 %v2635_v0  ;;  %2374 = vmatprep.subr.mxu1 %v2637_v21 }
  0x5a   : > { %2329 = vmatpush3.msra.mxu0 %v2635_v0 }
  0x5b   : > { %2330 = vmatprep.subr.mxu0 %v2635_v0 }
  0x5c   : > { %2331 = vmatpush3.msra.mxu0 %v2635_v0 }
  0x5d   : > { %2332 = vmatprep.subr.mxu0 %v2635_v0 }
  0x5e   : > { %2333 = vmatpush3.msra.mxu0 %v2635_v0 }
  0x5f   : > { %2334 = vmatprep.subr.mxu0 %v2635_v0 }
  0x60   : > { %2335 = vmatpush3.msra.mxu0 %v2635_v0 }
  0x61   : > { %2336 = vmatprep.subr.mxu0 %v2635_v0 }
  0x62   : > { %2337 = vmatpush3.msra.mxu0 %v2635_v0 }
  0x63   : > { %2338 = vmatprep.subr.mxu0 %v2635_v0 }
  0x64   : > { %2339 = vmatpush3.msra.mxu0 %v2635_v0 }
  0x65   : > { %2340 = vmatprep.subr.mxu0 %v2635_v0 }
  0x66   : > { %2341 = vmatpush3.msra.mxu0 %v2635_v0 }
  0x67   : > { %2342 = vmatprep.subr.mxu0 %v2635_v0 }
  0x68   : > { %2343 = vmatpush3.msra.mxu0 %v2635_v0 }
  0x69   : > { %304 = vmatmul.mubr.f32.vlgmr.msra.gmra.mxu0 %v2852_v2 }
  0x6a   : > { %308 = vmatprep.mubr.f32.mxu0 %v2861_v6 }
  0x6d   : > { %309 = vmatmul.mubr.f32.gmra.mxu0 %v2863_v7 }
  0x6e   : > { %313 = vmatprep.mubr.f32.mxu0 %v2855_v3 }
  0x71   : > { %314 = vmatmul.mubr.f32.gmra.mxu0 %v2857_v4 }
  0x72   : > { %318 = vmatprep.mubr.f32.mxu0 %v2867_v9 }
  0x75   : > { %319 = vmatmul.mubr.f32.gmra.mxu0 %v2869_v10 }
  0xd4   : > { %v326_v34 = vpop.xlane.xlu0 %325 }
  0xd5   : > { %v332_v33 = vpop.xlane.xlu1 %331  ;;  %v387_v45 = vrot.slane %v326_v34, %v356_v39 }
  0xd6   : > { %v396_v48 = vrot.slane %v332_v33, %v368_v43 }
  0xd8   : > { %v329_v41 = vpop.xlane.xlu0 %328 }
  0xd9   : > { %v335_v38 = vpop.xlane.xlu1 %334  ;;  %v391_v46 = vrot.slane %v329_v41, %v361_v40 }
  0xda   : > { %v401_v54 = vrot.slane %v335_v38, %v375_v47 }
  0xdb   : > { %v392_v51 = vsel %vm363_vm1, %v391_v46, %v387_v45 }
  0xdc   : > { %v397_v57 = vsel %vm370_vm2, %v396_v48, %v392_v51 }
  0xdd   : > { %v402_v62 = vsel %vm377_vm3, %v401_v54, %v397_v57 }
 0x129   : > { %v2344_v14 = vpop.f32.mrf.mxu0 }
 0x12b   : > { %v2345_v15 = vpop.f32.mrf.mxu0 }
 0x12c   : > { %v2346_v16 = vadd.f32 %v2345_v15, %v2344_v14 }
 0x12d   : > { %v2347_v17 = vpop.f32.mrf.mxu0 }
 0x12e   : > { %341 = vperm.xlu0 %2491, %v2346_v16  }
 0x12f   : > { %v2348_v18 = vpop.f32.mrf.mxu0 }
 0x130   : > { %v2349_v19 = vadd.f32 %v2348_v18, %v2347_v17 }
 0x131   : > { %v2350_v20 = vpop.f32.mrf.mxu0 }
 0x132   : > { %344 = vperm.xlu1 %2492, %v2349_v19  }
 0x133   : > { %v2351_v23 = vpop.f32.mrf.mxu0 }
 0x134   : > { %v2352_v24 = vadd.f32 %v2351_v23, %v2350_v20  ;;  %v2913_v20 = vsub.s32 0, %v355_v35 }
 0x135   : > { %v2353_v26 = vpop.f32.mrf.mxu0 }
 0x136   : > { %347 = vperm.xlu1 %2492, %v2352_v24  }
 0x137   : > { %v2354_v29 = vpop.f32.mrf.mxu0 }
 0x138   : > { %v2355_v30 = vadd.f32 %v2354_v29, %v2353_v26 }
 0x13a   : > { %350 = vperm.xlu1 %2492, %v2355_v30  }
 0x1a9   : > { %v342_v49 = vpop.permute.xlu0 %341 }
 0x1aa   : > { %v357_v55 = vrot.slane %v342_v49, %v356_v39 }
 0x1ad   : > { %v345_v44 = vpop.permute.xlu1 %344 }
 0x1ae   : > { %v362_v52 = vrot.slane %v345_v44, %v361_v40 }
 0x1b0   : > { %v364_v58 = vsel %vm363_vm1, %v362_v52, %v357_v55  ;;  %vm939_vm1 = vcmp.lt.s32.totalorder %v2901_v32, 33 }
 0x1b1   : > { %v348_v50 = vpop.permute.xlu1 %347 }
 0x1b2   : > { %v369_v53 = vrot.slane %v348_v50, %v368_v43 }
 0x1b4   : > { %v371_v60 = vsel %vm370_vm2, %v369_v53, %v364_v58  ;;  %vm972_vm2 = vcmp.lt.s32.totalorder %v2901_v32, 32 }
 0x1b5   : > { %v351_v56 = vpop.permute.xlu1 %350 }
 0x1b6   : > { %v376_v59 = vrot.slane %v351_v56, %v375_v47 }
 0x1b8   : > { %v378_v61 = vsel %vm377_vm3, %v376_v59, %v371_v60  ;;  %vm1005_vm3 = vcmp.lt.s32.totalorder %v2901_v32, 31 }
 0x1b9   : > { %v405_v0 = vsel %vm404_vm4, %v378_v61, %v402_v62 }
 0x1ba   : > { %2372 = vmatmul.mubr.msk.f32.vlgmr.msra.gmra.mxu1 %vm411_vm5, %v405_v0  ;;  %vm1071_vm5 = vcmp.lt.s32.totalorder %v2901_v32, 29 }
 0x1bb   : > { %2375 = vmatpush3.msk.msra.mxu1 %vm490_vm6, %v410_v63  ;;  %2376 = vmatprep.mubr.msk.f32.mxu1 %vm2638_vm0, %v2637_v21  ;;  %vm918_vm0 = vcmp.lt.s32.totalorder %v2901_v32, 34  ;;  %vm1104_vm6 = vcmp.lt.s32.totalorder %v2901_v32, 19 }
 0x27a   : > { %v481_v5 = vpop.f32.mrf.mxu1 }
 0x27b   : > { %v485_v8 = vmax.f32 %v481_v5, 0.0 }
 0x27c   : > { %v2373_v11 = vpop.f32.mrf.mxu1 }
 0x27d   : > { %2377 = vmatmul.mubr.msk.f32.vlgmr.msra.gmra.mxu1 %vm486_vm7, %v485_v8  ;;  %vm1137_vm7 = vcmp.lt.s32.totalorder %v2901_v32, 18 }
 0x33d   : > { %v560_v12 = vpop.f32.mrf.mxu1 }
 0x33e   : > { %v565_v13 = vrot.slane %v560_v12, 1 }
 0x33f   : > { %v2378_v14 = vpop.f32.mrf.mxu1 }
 0x340   : > { %v567_v15 = vadd.f32 %v565_v13, %v560_v12  ;;  %v3023_v12 = vld [vmem:[#allocation5 + $0x60] sm:$0xff]  ;;  %v3025_v13 = vld [vmem:[#allocation5 + $0x68] sm:$0xff] }
 0x342   : > { %v568_v16 = vsub.f32 0.0, %v567_v15 }
 0x344   : > { %v569_v17 = vmul.f32 1.442695, %v568_v16 }
 0x346   : > { %2493 = vpow2.f32 %v569_v17 }
 0x353   : > { %v2494_v18 = vpop.eup %2493 }
 0x354   : > { %v571_v19 = vadd.f32 1.0, %v2494_v18 }
 0x356   : > { %2495 = vrcp.f32 %v571_v19 }
 0x363   : > { %v2496_v22 = vpop.eup %2495 }
 0x364   : > { %v577_v21 = vrot.slane %v2496_v22, %v2913_v20  ;;  %v3032_v22 = vld [vmem:[#allocation5] sm:$0xff] }
 0x366   : > { %579 = vbcast.lane.b32.xlu1 %v577_v21, 256 }
 0x36a   : > { %583 = vbcast.lane.b32.xlu1 %v577_v21, 264 }
 0x36e   : > { %587 = vbcast.lane.b32.xlu1 %v577_v21, 272 }
 0x372   : > { %591 = vbcast.lane.b32.xlu1 %v577_v21, 280  ;;  %v3034_v21 = vld [vmem:[#allocation5 + $0x8] sm:$0xff] }
 0x3d8   : > { %v580_v23 = vpop.permute.xlu1 %579 }
 0x3d9   : > { %v2923_v28 = vmul.f32 %v580_v23, %v2852_v2  ;;  %v2926_v29 = vmul.f32 %v580_v23, %v2850_v1 }
 0x3dc   : > { %v584_v24 = vpop.permute.xlu1 %583 }
 0x3dd   : > { %v2917_v25 = vmul.f32 %v584_v24, %v2863_v7  ;;  %v2920_v26 = vmul.f32 %v584_v24, %v2861_v6 }
 0x3df   : > { %v601_v7 = vadd.f32 %v2917_v25, %v2923_v28  ;;  %v610_v6 = vadd.f32 %v2920_v26, %v2926_v29 }
 0x3e0   : > { %v588_v27 = vpop.permute.xlu1 %587 }
 0x3e1   : > { %v2929_v30 = vmul.f32 %v588_v27, %v2857_v4  ;;  %v2932_v31 = vmul.f32 %v588_v27, %v2855_v3 }
 0x3e3   : > { %v602_v34 = vadd.f32 %v601_v7, %v2929_v30  ;;  %v611_v2 = vadd.f32 %v610_v6, %v2932_v31  ;;  %v622_v3 = vmax.f32 %v2923_v28, %v2929_v30  ;;  %v631_v35 = vmax.f32 %v2926_v29, %v2932_v31 }
 0x3e4   : > { %v592_v33 = vpop.permute.xlu1 %591 }
 0x3e5   : > { %v2941_v1 = vmul.f32 %v592_v33, %v2869_v10  ;;  %v2944_v4 = vmul.f32 %v592_v33, %v2867_v9 }
 0x3e7   : > { %v603_v36 = vadd.f32 %v602_v34, %v2941_v1  ;;  %v612_v37 = vadd.f32 %v611_v2, %v2944_v4  ;;  %v623_v38 = vmax.f32 %v2917_v25, %v2941_v1  ;;  %v632_v10 = vmax.f32 %v2920_v26, %v2944_v4 }
 0x3e9   : > { %v604_v39 = vrot.slane %v603_v36, 4  ;;  %v613_v40 = vrot.slane %v612_v37, 4  ;;  %v624_v9 = vmax.f32 %v622_v3, %v623_v38  ;;  %v633_v41 = vmax.f32 %v631_v35, %v632_v10 }
 0x3eb   : > { %v605_v42 = vadd.f32 %v604_v39, %v603_v36  ;;  %v614_v43 = vadd.f32 %v613_v40, %v612_v37  ;;  %v625_v44 = vrot.slane %v624_v9, 4  ;;  %v634_v45 = vrot.slane %v633_v41, 4 }
 0x3ed   : > { %v606_v46 = vrot.slane %v605_v42, 2  ;;  %v615_v47 = vrot.slane %v614_v43, 2  ;;  %v626_v48 = vmax.f32 %v624_v9, %v625_v44  ;;  %v635_v49 = vmax.f32 %v633_v41, %v634_v45 }
 0x3ef   : > { %v607_v50 = vadd.f32 %v606_v46, %v605_v42  ;;  %v616_v51 = vadd.f32 %v615_v47, %v614_v43  ;;  %v627_v52 = vrot.slane %v626_v48, 2  ;;  %v636_v53 = vrot.slane %v635_v49, 2 }
 0x3f1   : > { %v608_v54 = vrot.slane %v607_v50, 1  ;;  %v617_v55 = vrot.slane %v616_v51, 1  ;;  %v628_v56 = vmax.f32 %v626_v48, %v627_v52  ;;  %v637_v57 = vmax.f32 %v635_v49, %v636_v53 }
 0x3f3   : > { %v609_v58 = vadd.f32 %v608_v54, %v607_v50  ;;  %v618_v59 = vadd.f32 %v617_v55, %v616_v51  ;;  %v629_v60 = vrot.slane %v628_v56, 1  ;;  %v638_v61 = vrot.slane %v637_v57, 1 }
 0x3f5   : > { %v620_v62 = vmul.f32 0.03125, %v609_v58  ;;  %v621_v63 = vmul.f32 0.03125, %v618_v59  ;;  %v630_v0 = vmax.f32 %v628_v56, %v629_v60  ;;  %v639_v5 = vmax.f32 %v637_v57, %v638_v61 }
 0x3f7   : > { %v2957_v8 = vsel %vm404_vm4, %v620_v62, %v630_v0  ;;  %v2960_v11 = vsel %vm404_vm4, %v621_v63, %v639_v5  ;;  %vm1038_vm4 = vcmp.lt.s32.totalorder %v2901_v32, 30 }
 0x3f8   : > { %670 = vrot.lane.b32.xlu0 %v2960_v11, %s2639_s20  ;;  %668 = vrot.lane.b32.xlu1 %v2957_v8, %s2639_s20  ;;  %s2654_s20 = smov 18  }
 0x3fc   : > { %691 = vrot.lane.b32.xlu0 %v2960_v11, %s2640_s25  ;;  %689 = vrot.lane.b32.xlu1 %v2957_v8, %s2640_s25  ;;  %s2655_s25 = smov 17  }
 0x400   : > { %724 = vrot.lane.b32.xlu0 %v2960_v11, %s2641_s7  ;;  %722 = vrot.lane.b32.xlu1 %v2957_v8, %s2641_s7  ;;  %s2656_s7 = smov 16  }
 0x404   : > { %757 = vrot.lane.b32.xlu0 %v2960_v11, %s2642_s12  ;;  %755 = vrot.lane.b32.xlu1 %v2957_v8, %s2642_s12  ;;  %s2657_s12 = smov 15  }
 0x408   : > { %790 = vrot.lane.b32.xlu0 %v2960_v11, %s2643_s28  ;;  %788 = vrot.lane.b32.xlu1 %v2957_v8, %s2643_s28  ;;  %s2658_s28 = smov 14  }
 0x40c   : > { %823 = vrot.lane.b32.xlu0 %v2960_v11, %s2644_s21  ;;  %821 = vrot.lane.b32.xlu1 %v2957_v8, %s2644_s21  ;;  %s2659_s21 = smov 13  }
 0x410   : > { %856 = vrot.lane.b32.xlu0 %v2960_v11, %s2645_s23  ;;  %854 = vrot.lane.b32.xlu1 %v2957_v8, %s2645_s23  ;;  %s2660_s23 = smov 3  }
 0x414   : > { %889 = vrot.lane.b32.xlu0 %v2960_v11, %s2646_s5  ;;  %887 = vrot.lane.b32.xlu1 %v2957_v8, %s2646_s5  ;;  %s2661_s5 = smov 2  }
 0x418   : > { %916 = vrot.lane.b32.xlu0 %v2960_v11, %s2647_s6  ;;  %914 = vrot.lane.b32.xlu1 %v2957_v8, %s2647_s6  ;;  %s2662_s6 = smov 1  }
 0x41c   : > { %937 = vrot.lane.b32.xlu0 %v2960_v11, %s2648_s24  ;;  %935 = vrot.lane.b32.xlu1 %v2957_v8, %s2648_s24  ;;  %s2663_s24 = smov 127  }
 0x420   : > { %970 = vrot.lane.b32.xlu0 %v2960_v11, %s2649_s26  ;;  %968 = vrot.lane.b32.xlu1 %v2957_v8, %s2649_s26  ;;  %s2664_s26 = smov 126  }
 0x424   : > { %1003 = vrot.lane.b32.xlu0 %v2960_v11, %s2650_s29  ;;  %1001 = vrot.lane.b32.xlu1 %v2957_v8, %s2650_s29  ;;  %s2665_s29 = smov 125  }
 0x428   : > { %1036 = vrot.lane.b32.xlu0 %v2960_v11, %s2651_s13  ;;  %1034 = vrot.lane.b32.xlu1 %v2957_v8, %s2651_s13  ;;  %s2666_s13 = smov 115  }
 0x42c   : > { %1069 = vrot.lane.b32.xlu0 %v2960_v11, %s2652_s14  ;;  %1067 = vrot.lane.b32.xlu1 %v2957_v8, %s2652_s14  ;;  %s2667_s14 = smov 114  }
 0x430   : > { %1102 = vrot.lane.b32.xlu0 %v2960_v11, %s2653_s11  ;;  %1100 = vrot.lane.b32.xlu1 %v2957_v8, %s2653_s11  ;;  %s2668_s11 = smov 113  }
 0x434   : > { %1135 = vrot.lane.b32.xlu0 %v2960_v11, %s2654_s20  ;;  %1133 = vrot.lane.b32.xlu1 %v2957_v8, %s2654_s20  ;;  %s2669_s20 = smov 112  }
 0x438   : > { %1162 = vrot.lane.b32.xlu0 %v2960_v11, %s2655_s25  ;;  %1160 = vrot.lane.b32.xlu1 %v2957_v8, %s2655_s25  ;;  %s2670_s25 = smov 111  }
 0x43c   : > { %1183 = vrot.lane.b32.xlu0 %v2960_v11, %s2656_s7  ;;  %1181 = vrot.lane.b32.xlu1 %v2957_v8, %s2656_s7 }
 0x440   : > { %1216 = vrot.lane.b32.xlu0 %v2960_v11, %s2657_s12  ;;  %1214 = vrot.lane.b32.xlu1 %v2957_v8, %s2657_s12  ;;  %s2671_s12 = smov 110  }
 0x444   : > { %1249 = vrot.lane.b32.xlu0 %v2960_v11, %s2658_s28  ;;  %1247 = vrot.lane.b32.xlu1 %v2957_v8, %s2658_s28  ;;  %s2672_s28 = smov 109  }
 0x448   : > { %1282 = vrot.lane.b32.xlu0 %v2960_v11, %s2659_s21  ;;  %1280 = vrot.lane.b32.xlu1 %v2957_v8, %s2659_s21  ;;  %s2673_s21 = smov 99  }
 0x44c   : > { %1315 = vrot.lane.b32.xlu0 %v2960_v11, %s2660_s23  ;;  %1313 = vrot.lane.b32.xlu1 %v2957_v8, %s2660_s23  ;;  %s2674_s23 = smov 98  }
 0x450   : > { %1348 = vrot.lane.b32.xlu0 %v2960_v11, %s2661_s5  ;;  %1346 = vrot.lane.b32.xlu1 %v2957_v8, %s2661_s5  ;;  %s2675_s5 = smov 97  }
 0x454   : > { %1381 = vrot.lane.b32.xlu0 %v2960_v11, %s2662_s6  ;;  %1379 = vrot.lane.b32.xlu1 %v2957_v8, %s2662_s6  ;;  %s2676_s6 = smov 96  }
 0x458   : > { %1422 = vrot.lane.b32.xlu0 %v2960_v11, %s2663_s24  ;;  %1420 = vrot.lane.b32.xlu1 %v2957_v8, %s2663_s24  ;;  %s2677_s24 = smov 95  }
 0x45c   : > { %1455 = vrot.lane.b32.xlu0 %v2960_v11, %s2664_s26  ;;  %1453 = vrot.lane.b32.xlu1 %v2957_v8, %s2664_s26  ;;  %s2678_s26 = smov 94  }
 0x460   : > { %1488 = vrot.lane.b32.xlu0 %v2960_v11, %s2665_s29  ;;  %1486 = vrot.lane.b32.xlu1 %v2957_v8, %s2665_s29  ;;  %s2679_s29 = smov 93  }
 0x464   : > { %1521 = vrot.lane.b32.xlu0 %v2960_v11, %s2666_s13  ;;  %1519 = vrot.lane.b32.xlu1 %v2957_v8, %s2666_s13  ;;  %s2680_s13 = smov 83  }
 0x468   : > { %1554 = vrot.lane.b32.xlu0 %v2960_v11, %s2667_s14  ;;  %1552 = vrot.lane.b32.xlu1 %v2957_v8, %s2667_s14  ;;  %s2681_s14 = smov 82  }
 0x46a   : > { %v671_v14 = vpop.permute.xlu0 %670  ;;  %v669_v15 = vpop.permute.xlu1 %668 }
 0x46b   : > { %v673_v16 = vsel %vm672_vm8, %v669_v15, %v671_v14  ;;  %v674_v17 = vsel %vm672_vm8, %v671_v14, %v669_v15  ;;  %vm1164_vm8 = vcmp.lt.s32.totalorder %v2901_v32, 17 }
 0x46c   : > { %v679_v18 = vmul.f32 %v674_v17, %v3023_v12  ;;  %v680_v19 = vmul.f32 %v673_v16, %v3025_v13  ;;  %1587 = vrot.lane.b32.xlu0 %v2960_v11, %s2668_s11  ;;  %1585 = vrot.lane.b32.xlu1 %v2957_v8, %s2668_s11  ;;  %v675_v3 = vmul.f32 %v674_v17, %v3032_v22  ;;  %s2682_s11 = smov 81  }
 0x46d   : > { %v676_v35 = vmul.f32 %v673_v16, %v3034_v21 }
 0x46e   : > { %v692_v23 = vpop.permute.xlu0 %691  ;;  %v690_v24 = vpop.permute.xlu1 %689  ;;  %v683_v6 = vrot.slane %v679_v18, 1  ;;  %v684_v33 = vrot.slane %v680_v19, 1 }
 0x46f   : > { %v694_v27 = vsel %vm693_vm9, %v690_v24, %v692_v23  ;;  %v695_v7 = vsel %vm693_vm9, %v692_v23, %v690_v24  ;;  %vm1185_vm9 = vcmp.lt.s32.totalorder %v2901_v32, 16 }
 0x470   : > { %v698_v34 = vrot.slane %v695_v7, 7  ;;  %v699_v2 = vrot.slane %v694_v27, 7  ;;  %1620 = vrot.lane.b32.xlu0 %v2960_v11, %s2669_s20  ;;  %1618 = vrot.lane.b32.xlu1 %v2957_v8, %s2669_s20  ;;  %v687_v42 = vadd.f32 %v683_v6, %v675_v3  ;;  %v688_v43 = vadd.f32 %v684_v33, %v676_v35  ;;  %s2683_s20 = smov 80  }
 0x472   : > { %v702_v36 = vmul.f32 %v698_v34, %v3032_v22  ;;  %v703_v37 = vmul.f32 %v699_v2, %v3034_v21  ;;  %v712_v38 = vmul.f32 %v698_v34, %v3023_v12  ;;  %v713_v10 = vmul.f32 %v699_v2, %v3025_v13  ;;  %v725_v39 = vpop.permute.xlu0 %724  ;;  %v723_v40 = vpop.permute.xlu1 %722 }
 0x473   : > { %v727_v9 = vsel %vm726_vm10, %v723_v40, %v725_v39  ;;  %v728_v41 = vsel %vm726_vm10, %v725_v39, %v723_v40  ;;  %vm1218_vm10 = vcmp.lt.s32.totalorder %v2901_v32, 15 }
 0x474   : > { %v706_v44 = vrot.slane %v702_v36, 1  ;;  %v707_v45 = vrot.slane %v703_v37, 1  ;;  %1647 = vrot.lane.b32.xlu0 %v2960_v11, %s2670_s25  ;;  %v731_v46 = vrot.slane %v728_v41, 6  ;;  %v732_v47 = vrot.slane %v727_v9, 6  ;;  %1645 = vrot.lane.b32.xlu1 %v2957_v8, %s2670_s25  ;;  %s2684_s25 = smov 79  }
 0x475   : > { %v716_v50 = vrot.slane %v712_v38, 2  ;;  %v717_v51 = vrot.slane %v713_v10, 2 }
 0x476   : > { %v710_v48 = vadd.f32 %v706_v44, %v687_v42  ;;  %v711_v49 = vadd.f32 %v707_v45, %v688_v43  ;;  %v758_v52 = vpop.permute.xlu0 %757  ;;  %v756_v53 = vpop.permute.xlu1 %755  ;;  %v735_v54 = vmul.f32 %v731_v46, %v3032_v22  ;;  %v736_v55 = vmul.f32 %v732_v47, %v3034_v21 }
 0x477   : > { %v745_v56 = vmul.f32 %v731_v46, %v3023_v12  ;;  %v746_v57 = vmul.f32 %v732_v47, %v3025_v13  ;;  %v760_v60 = vsel %vm759_vm11, %v756_v53, %v758_v52  ;;  %v761_v61 = vsel %vm759_vm11, %v758_v52, %v756_v53 }
 0x478   : > { %v720_v58 = vadd.f32 %v716_v50, %v710_v48  ;;  %v721_v59 = vadd.f32 %v717_v51, %v711_v49  ;;  %1668 = vrot.lane.b32.xlu0 %v2960_v11, %s2671_s12  ;;  %v739_v62 = vrot.slane %v735_v54, 2  ;;  %v740_v63 = vrot.slane %v736_v55, 2  ;;  %1666 = vrot.lane.b32.xlu1 %v2957_v8, %s2671_s12  ;;  %s2685_s12 = smov 78  }
 0x479   : > { %v749_v0 = vrot.slane %v745_v56, 3  ;;  %v750_v5 = vrot.slane %v746_v57, 3  ;;  %v764_v14 = vrot.slane %v761_v61, 5  ;;  %v765_v15 = vrot.slane %v760_v60, 5 }
 0x47a   : > { %v791_v16 = vpop.permute.xlu0 %790  ;;  %v789_v17 = vpop.permute.xlu1 %788  ;;  %v743_v18 = vadd.f32 %v739_v62, %v720_v58  ;;  %v744_v19 = vadd.f32 %v740_v63, %v721_v59  ;;  %vm1251_vm11 = vcmp.lt.s32.totalorder %v2901_v32, 14 }
 0x47b   : > { %v793_v23 = vsel %vm792_vm12, %v789_v17, %v791_v16  ;;  %v794_v24 = vsel %vm792_vm12, %v791_v16, %v789_v17  ;;  %v768_v27 = vmul.f32 %v764_v14, %v3032_v22  ;;  %v769_v7 = vmul.f32 %v765_v15, %v3034_v21 }
 0x47c   : > { %v778_v6 = vmul.f32 %v764_v14, %v3023_v12  ;;  %v779_v33 = vmul.f32 %v765_v15, %v3025_v13  ;;  %1701 = vrot.lane.b32.xlu0 %v2960_v11, %s2672_s28  ;;  %v753_v34 = vadd.f32 %v749_v0, %v743_v18  ;;  %v754_v2 = vadd.f32 %v750_v5, %v744_v19 }
 0x47d   : > { %v797_v3 = vrot.slane %v794_v24, 4  ;;  %v798_v35 = vrot.slane %v793_v23, 4  ;;  %1699 = vrot.lane.b32.xlu1 %v2957_v8, %s2672_s28  ;;  %v772_v36 = vrot.slane %v768_v27, 3  ;;  %v773_v37 = vrot.slane %v769_v7, 3  ;;  %s2686_s28 = smov 77  }
 0x47e   : > { %v782_v38 = vrot.slane %v778_v6, 4  ;;  %v783_v10 = vrot.slane %v779_v33, 4  ;;  %v824_v39 = vpop.permute.xlu0 %823  ;;  %v822_v40 = vpop.permute.xlu1 %821  ;;  %vm1284_vm12 = vcmp.lt.s32.totalorder %v2901_v32, 13 }
 0x47f   : > { %v801_v9 = vmul.f32 %v797_v3, %v3032_v22  ;;  %v802_v41 = vmul.f32 %v798_v35, %v3034_v21  ;;  %v811_v42 = vmul.f32 %v797_v3, %v3023_v12  ;;  %v812_v43 = vmul.f32 %v798_v35, %v3025_v13 }
 0x480   : > { %v776_v44 = vadd.f32 %v772_v36, %v753_v34  ;;  %v777_v45 = vadd.f32 %v773_v37, %v754_v2  ;;  %v826_v46 = vsel %vm825_vm13, %v822_v40, %v824_v39  ;;  %v827_v47 = vsel %vm825_vm13, %v824_v39, %v822_v40  ;;  %1734 = vrot.lane.b32.xlu0 %v2960_v11, %s2673_s21 }
 0x481   : > { %v805_v48 = vrot.slane %v801_v9, 4  ;;  %v806_v49 = vrot.slane %v802_v41, 4  ;;  %1732 = vrot.lane.b32.xlu1 %v2957_v8, %s2673_s21  ;;  %v830_v52 = vrot.slane %v827_v47, 3  ;;  %v831_v53 = vrot.slane %v826_v46, 3  ;;  %s2311_s21 = sshll.u32 %s2735_s19, 10 }
 0x482   : > { %v786_v50 = vadd.f32 %v782_v38, %v776_v44  ;;  %v787_v51 = vadd.f32 %v783_v10, %v777_v45  ;;  %v857_v54 = vpop.permute.xlu0 %856  ;;  %v855_v55 = vpop.permute.xlu1 %854  ;;  %v815_v56 = vrot.slane %v811_v42, 5  ;;  %v816_v57 = vrot.slane %v812_v43, 5  ;;  %v3104_v42 = vld [vmem:[#allocation5 + $0x10] sm:$0xff]  ;;  %v3106_v43 = vld [vmem:[#allocation5 + $0x18] sm:$0xff]  ;;  %s3538_s19 = scalar_lea.hbm %s3592_s4, %s2311_s21 }
 0x483   : > { %v859_v58 = vsel %vm858_vm14, %v855_v55, %v857_v54  ;;  %v860_v59 = vsel %vm858_vm14, %v857_v54, %v855_v55  ;;  %v834_v62 = vmul.f32 %v830_v52, %v3032_v22  ;;  %v835_v63 = vmul.f32 %v831_v53, %v3034_v21  ;;  %v3118_v54 = vld [vmem:[#allocation5 + $0x70] sm:$0xff]  ;;  %v3120_v55 = vld [vmem:[#allocation5 + $0x78] sm:$0xff] }
 0x484   : > { %v809_v60 = vadd.f32 %v805_v48, %v786_v50  ;;  %v810_v61 = vadd.f32 %v806_v49, %v787_v51  ;;  %1767 = vrot.lane.b32.xlu0 %v2960_v11, %s2674_s23  ;;  %v844_v0 = vmul.f32 %v830_v52, %v3023_v12  ;;  %v845_v5 = vmul.f32 %v831_v53, %v3025_v13 }
 0x485   : > { %v863_v14 = vrot.slane %v860_v59, 2  ;;  %v864_v15 = vrot.slane %v859_v58, 2  ;;  %1765 = vrot.lane.b32.xlu1 %v2957_v8, %s2674_s23  ;;  %v838_v18 = vrot.slane %v834_v62, 5  ;;  %v839_v19 = vrot.slane %v835_v63, 5  ;;  %s230_s23 = scalar_lea.vmem [#allocation7], %s2299_s8  ;;  %s2195_s8 = scalar_lea.sflag [#allocation4], %s2836_s30 }
 0x486   : > { %v819_v16 = vadd.f32 %v815_v56, %v809_v60  ;;  %v820_v17 = vadd.f32 %v816_v57, %v810_v61  ;;  %v890_v23 = vpop.permute.xlu0 %889  ;;  %v888_v24 = vpop.permute.xlu1 %887  ;;  %v848_v27 = vrot.slane %v844_v0, 6  ;;  %v849_v7 = vrot.slane %v845_v5, 6 }
 0x487   : > { %v867_v6 = vmul.f32 %v863_v14, %v3032_v22  ;;  %v868_v33 = vmul.f32 %v864_v15, %v3034_v21  ;;  %v877_v3 = vmul.f32 %v863_v14, %v3023_v12  ;;  %v878_v35 = vmul.f32 %v864_v15, %v3025_v13 }
 0x488   : > { %v842_v34 = vadd.f32 %v838_v18, %v819_v16  ;;  %v843_v2 = vadd.f32 %v839_v19, %v820_v17  ;;  %1800 = vrot.lane.b32.xlu0 %v2960_v11, %s2675_s5  ;;  %v892_v38 = vsel %vm891_vm15, %v888_v24, %v890_v23  ;;  %v893_v10 = vsel %vm891_vm15, %v890_v23, %v888_v24 }
 0x489   : > { %v871_v36 = vrot.slane %v867_v6, 6  ;;  %v872_v37 = vrot.slane %v868_v33, 6  ;;  %1798 = vrot.lane.b32.xlu1 %v2957_v8, %s2675_s5  ;;  %v896_v12 = vrot.slane %v893_v10, 1  ;;  %v897_v13 = vrot.slane %v892_v38, 1  ;;  %s2208_s5 = sshll.u32 %s230_s23, 4  ;;  %s3544_s5 = int_to_ptr.vmem [resolvable:$true] %s2208_s5 }
 0x48a   : > { %v852_v39 = vadd.f32 %v848_v27, %v842_v34  ;;  %v853_v40 = vadd.f32 %v849_v7, %v843_v2  ;;  %v917_v9 = vpop.permute.xlu0 %916  ;;  %v915_v41 = vpop.permute.xlu1 %914  ;;  %v881_v48 = vrot.slane %v877_v3, 7  ;;  %v882_v49 = vrot.slane %v878_v35, 7 }
 0x48b   : > { %v919_v44 = vsel %vm918_vm0, %v915_v41, %v917_v9  ;;  %v920_v45 = vsel %vm918_vm0, %v917_v9, %v915_v41  ;;  %v900_v50 = vmul.f32 %v896_v12, %v3032_v22  ;;  %v901_v51 = vmul.f32 %v897_v13, %v3034_v21 }
 0x48c   : > { %v875_v46 = vadd.f32 %v871_v36, %v852_v39  ;;  %v876_v47 = vadd.f32 %v872_v37, %v853_v40  ;;  %1833 = vrot.lane.b32.xlu0 %v2960_v11, %s2676_s6  ;;  %v921_v56 = vmul.f32 %v920_v45, %v3104_v42  ;;  %v922_v57 = vmul.f32 %v919_v44, %v3106_v43 }
 0x48d   : > { %1831 = vrot.lane.b32.xlu1 %v2957_v8, %s2676_s6  ;;  %v904_v59 = vrot.slane %v900_v50, 7  ;;  %v905_v21 = vrot.slane %v901_v51, 7  ;;  %v925_v62 = vmul.f32 %v920_v45, %v3118_v54  ;;  %v926_v63 = vmul.f32 %v919_v44, %v3120_v55 }
 0x48e   : > { %v885_v52 = vadd.f32 %v881_v48, %v875_v46  ;;  %v886_v53 = vadd.f32 %v882_v49, %v876_v47  ;;  %v938_v58 = vpop.permute.xlu0 %937  ;;  %v936_v22 = vpop.permute.xlu1 %935  ;;  %v910_v16 = vmul.f32 %v896_v12, %v3118_v54  ;;  %v911_v17 = vmul.f32 %v897_v13, %v3120_v55 }
 0x48f   : > { %v940_v60 = vsel %vm939_vm1, %v936_v22, %v938_v58  ;;  %v941_v61 = vsel %vm939_vm1, %v938_v58, %v936_v22  ;;  %v929_v3 = vrot.slane %v925_v62, 1  ;;  %v930_v35 = vrot.slane %v926_v63, 1 }
 0x490   : > { %v944_v0 = vrot.slane %v941_v61, 7  ;;  %v945_v5 = vrot.slane %v940_v60, 7  ;;  %1866 = vrot.lane.b32.xlu0 %v2960_v11, %s2677_s24  ;;  %v908_v14 = vadd.f32 %v904_v59, %v885_v52  ;;  %v909_v15 = vadd.f32 %v905_v21, %v886_v53 }
 0x491   : > { %1864 = vrot.lane.b32.xlu1 %v2957_v8, %s2677_s24  ;;  %vm1317_vm13 = vcmp.lt.s32.totalorder %v2901_v32, 3  ;;  %vm1350_vm14 = vcmp.lt.s32.totalorder %v2901_v32, 2  ;;  %vm1383_vm15 = vcmp.lt.s32.totalorder %v2901_v32, 1  ;;  %vm1424_vm0 = vcmp.lt.s32.totalorder %v2901_v32, 127 }
 0x492   : > { %v948_v18 = vmul.f32 %v944_v0, %v3104_v42  ;;  %v949_v19 = vmul.f32 %v945_v5, %v3106_v43  ;;  %v958_v23 = vmul.f32 %v944_v0, %v3118_v54  ;;  %v959_v24 = vmul.f32 %v945_v5, %v3120_v55  ;;  %v971_v27 = vpop.permute.xlu0 %970  ;;  %v969_v7 = vpop.permute.xlu1 %968 }
 0x493   : > { %v912_v6 = vadd.f32 %v910_v16, %v908_v14  ;;  %v913_v33 = vadd.f32 %v911_v17, %v909_v15  ;;  %v973_v34 = vsel %vm972_vm2, %v969_v7, %v971_v27  ;;  %v974_v2 = vsel %vm972_vm2, %v971_v27, %v969_v7 }
 0x494   : > { %v952_v36 = vrot.slane %v948_v18, 1  ;;  %v953_v37 = vrot.slane %v949_v19, 1  ;;  %1893 = vrot.lane.b32.xlu0 %v2960_v11, %s2678_s26  ;;  %v977_v39 = vrot.slane %v974_v2, 6  ;;  %v978_v40 = vrot.slane %v973_v34, 6 }
 0x495   : > { %v923_v38 = vadd.f32 %v921_v56, %v912_v6  ;;  %v924_v10 = vadd.f32 %v922_v57, %v913_v33  ;;  %1891 = vrot.lane.b32.xlu1 %v2957_v8, %s2678_s26  ;;  %v962_v9 = vrot.slane %v958_v23, 2  ;;  %v963_v41 = vrot.slane %v959_v24, 2  ;;  %s2561_s26 = scalar_lea.vmem %s3544_s5, 1024 }
 0x496   : > { %v1004_v12 = vpop.permute.xlu0 %1003  ;;  %v1002_v13 = vpop.permute.xlu1 %1001  ;;  %v981_v46 = vmul.f32 %v977_v39, %v3104_v42  ;;  %v982_v47 = vmul.f32 %v978_v40, %v3106_v43  ;;  %v991_v48 = vmul.f32 %v977_v39, %v3118_v54  ;;  %v992_v49 = vmul.f32 %v978_v40, %v3120_v55  ;;  %p2562_p3 = scmp.ne.s32.totalorder %s3544_s5, %s2561_s26 }
 0x497   : > { %v933_v44 = vadd.f32 %v929_v3, %v923_v38  ;;  %v934_v45 = vadd.f32 %v930_v35, %v924_v10  ;;  %v1006_v50 = vsel %vm1005_vm3, %v1002_v13, %v1004_v12  ;;  %v1007_v51 = vsel %vm1005_vm3, %v1004_v12, %v1002_v13 }
 0x498   : > { %1914 = vrot.lane.b32.xlu0 %v2960_v11, %s2679_s29  ;;  %v985_v56 = vrot.slane %v981_v46, 2  ;;  %v986_v57 = vrot.slane %v982_v47, 2  ;;  %v995_v58 = vrot.slane %v991_v48, 3  ;;  %v996_v22 = vrot.slane %v992_v49, 3  ;;  %p2563_p7 = pnand %p2562_p3, %p3608_p11 }
 0x499   : > { %v956_v52 = vadd.f32 %v952_v36, %v933_v44  ;;  %v957_v53 = vadd.f32 %v953_v37, %v934_v45  ;;  %1912 = vrot.lane.b32.xlu1 %v2957_v8, %s2679_s29  ;;  %v1010_v59 = vrot.slane %v1007_v51, 5  ;;  %v1011_v21 = vrot.slane %v1006_v50, 5  ;;  %s2687_s29 = smov [#allocation7]  }
 0x49a   : > { %v1037_v60 = vpop.permute.xlu0 %1036  ;;  %v1035_v61 = vpop.permute.xlu1 %1034  ;;  %vm1457_vm1 = vcmp.lt.s32.totalorder %v2901_v32, 126  ;;  %vm1490_vm2 = vcmp.lt.s32.totalorder %v2901_v32, 125  ;;  %vm1523_vm3 = vcmp.lt.s32.totalorder %v2901_v32, 115  ;;  %p2564_p9 = pneg %p2563_p7 }
 0x49b   : > { %v966_v62 = vadd.f32 %v962_v9, %v956_v52  ;;  %v967_v63 = vadd.f32 %v963_v41, %v957_v53  ;;  %v1039_v0 = vsel %vm1038_vm4, %v1035_v61, %v1037_v60  ;;  %v1040_v5 = vsel %vm1038_vm4, %v1037_v60, %v1035_v61 }
 0x49c   : > { %v1014_v14 = vmul.f32 %v1010_v59, %v3104_v42  ;;  %v1015_v15 = vmul.f32 %v1011_v21, %v3106_v43  ;;  %v1024_v16 = vmul.f32 %v1010_v59, %v3118_v54  ;;  %v1025_v17 = vmul.f32 %v1011_v21, %v3120_v55  ;;  %1947 = vrot.lane.b32.xlu0 %v2960_v11, %s2680_s13 }
 0x49d   : > { %v989_v18 = vadd.f32 %v985_v56, %v966_v62  ;;  %v990_v19 = vadd.f32 %v986_v57, %v967_v63  ;;  %v1043_v23 = vrot.slane %v1040_v5, 4  ;;  %v1044_v24 = vrot.slane %v1039_v0, 4  ;;  %1945 = vrot.lane.b32.xlu1 %v2957_v8, %s2680_s13  ;;  %s2565_s13 = sshll.u32 %s2687_s29, 4  ;;  %s2566_s13 = int_to_ptr.vmem [resolvable:$false] %s2565_s13 }
 0x49e   : > { %v1018_v27 = vrot.slane %v1014_v14, 3  ;;  %v1019_v7 = vrot.slane %v1015_v15, 3  ;;  %v1028_v6 = vrot.slane %v1024_v16, 4  ;;  %v1029_v33 = vrot.slane %v1025_v17, 4  ;;  %v1070_v34 = vpop.permute.xlu0 %1069  ;;  %v1068_v2 = vpop.permute.xlu1 %1067  ;;  %p2568_p10 = scmp.lt.s32.totalorder %s3544_s5, %s2566_s13 }
 0x49f   : > { %v999_v3 = vadd.f32 %v995_v58, %v989_v18  ;;  %v1000_v35 = vadd.f32 %v996_v22, %v990_v19  ;;  %v1047_v36 = vmul.f32 %v1043_v23, %v3104_v42  ;;  %v1048_v37 = vmul.f32 %v1044_v24, %v3106_v43 }
 0x4a0   : > { %v1057_v38 = vmul.f32 %v1043_v23, %v3118_v54  ;;  %v1058_v10 = vmul.f32 %v1044_v24, %v3120_v55  ;;  %v1072_v39 = vsel %vm1071_vm5, %v1068_v2, %v1070_v34  ;;  %v1073_v40 = vsel %vm1071_vm5, %v1070_v34, %v1068_v2  ;;  %1980 = vrot.lane.b32.xlu0 %v2960_v11, %s2681_s14 }
 0x4a1   : > { %v1022_v9 = vadd.f32 %v1018_v27, %v999_v3  ;;  %v1023_v41 = vadd.f32 %v1019_v7, %v1000_v35  ;;  %v1051_v12 = vrot.slane %v1047_v36, 4  ;;  %v1052_v13 = vrot.slane %v1048_v37, 4  ;;  %1978 = vrot.lane.b32.xlu1 %v2957_v8, %s2681_s14  ;;  %s2567_s14 = scalar_lea.vmem %s2566_s13, 2048 }
 0x4a2   : > { %v1061_v44 = vrot.slane %v1057_v38, 5  ;;  %v1062_v45 = vrot.slane %v1058_v10, 5  ;;  %v1076_v46 = vrot.slane %v1073_v40, 3  ;;  %v1077_v47 = vrot.slane %v1072_v39, 3  ;;  %v1103_v48 = vpop.permute.xlu0 %1102  ;;  %v1101_v49 = vpop.permute.xlu1 %1100  ;;  %v3199_v38 = vld [vmem:[#allocation5 + $0x80] sm:$0xff]  ;;  %v3201_v10 = vld [vmem:[#allocation5 + $0x88] sm:$0xff]  ;;  %p2569_p12 = scmp.lt.s32.totalorder %s2567_s14, %s2561_s26 }
 0x4a3   : > { %v1032_v50 = vadd.f32 %v1028_v6, %v1022_v9  ;;  %v1033_v51 = vadd.f32 %v1029_v33, %v1023_v41  ;;  %v1105_v52 = vsel %vm1104_vm6, %v1101_v49, %v1103_v48  ;;  %v1106_v53 = vsel %vm1104_vm6, %v1103_v48, %v1101_v49  ;;  %v3216_v48 = vld [vmem:[#allocation5 + $0x20] sm:$0xff]  ;;  %v3218_v49 = vld [vmem:[#allocation5 + $0x28] sm:$0xff] }
 0x4a4   : > { %v1080_v56 = vmul.f32 %v1076_v46, %v3104_v42  ;;  %v1081_v57 = vmul.f32 %v1077_v47, %v3106_v43  ;;  %v1090_v58 = vmul.f32 %v1076_v46, %v3118_v54  ;;  %v1091_v22 = vmul.f32 %v1077_v47, %v3120_v55  ;;  %2013 = vrot.lane.b32.xlu0 %v2960_v11, %s2682_s11  ;;  %p2570_p13 = por %p2569_p12, %p2568_p10 }
 0x4a5   : > { %v1055_v59 = vadd.f32 %v1051_v12, %v1032_v50  ;;  %v1056_v21 = vadd.f32 %v1052_v13, %v1033_v51  ;;  %v1109_v60 = vrot.slane %v1106_v53, 2  ;;  %v1110_v61 = vrot.slane %v1105_v52, 2  ;;  %2011 = vrot.lane.b32.xlu1 %v2957_v8, %s2682_s11 }
 0x4a6   : > { %v1084_v62 = vrot.slane %v1080_v56, 5  ;;  %v1085_v63 = vrot.slane %v1081_v57, 5  ;;  %v1094_v0 = vrot.slane %v1090_v58, 6  ;;  %v1095_v5 = vrot.slane %v1091_v22, 6  ;;  %v1136_v14 = vpop.permute.xlu0 %1135  ;;  %v1134_v15 = vpop.permute.xlu1 %1133  ;;  %p2571_p0 = pnand %p2570_p13, %p2564_p9 }
 0x4a7   : > { %v1065_v16 = vadd.f32 %v1061_v44, %v1055_v59  ;;  %v1066_v17 = vadd.f32 %v1062_v45, %v1056_v21  ;;  %v1113_v18 = vmul.f32 %v1109_v60, %v3104_v42  ;;  %v1114_v19 = vmul.f32 %v1110_v61, %v3106_v43 }
 0x4a8   : > { %v1123_v23 = vmul.f32 %v1109_v60, %v3118_v54  ;;  %v1124_v24 = vmul.f32 %v1110_v61, %v3120_v55  ;;  %v1138_v27 = vsel %vm1137_vm7, %v1134_v15, %v1136_v14  ;;  %v1139_v7 = vsel %vm1137_vm7, %v1136_v14, %v1134_v15  ;;  %2046 = vrot.lane.b32.xlu0 %v2960_v11, %s2683_s20 }
 0x4a9   : > { %v1088_v6 = vadd.f32 %v1084_v62, %v1065_v16  ;;  %v1089_v33 = vadd.f32 %v1085_v63, %v1066_v17  ;;  %v1117_v34 = vrot.slane %v1113_v18, 6  ;;  %v1118_v2 = vrot.slane %v1114_v19, 6  ;;  %2044 = vrot.lane.b32.xlu1 %v2957_v8, %s2683_s20 }
 0x4aa   : > { %v1142_v3 = vrot.slane %v1139_v7, 1  ;;  %v1143_v35 = vrot.slane %v1138_v27, 1  ;;  %v1163_v54 = vpop.permute.xlu0 %1162  ;;  %v1161_v55 = vpop.permute.xlu1 %1160  ;;  %v1127_v39 = vrot.slane %v1123_v23, 7  ;;  %v1128_v40 = vrot.slane %v1124_v24, 7 }
 0x4ab   : > { %v1098_v36 = vadd.f32 %v1094_v0, %v1088_v6  ;;  %v1099_v37 = vadd.f32 %v1095_v5, %v1089_v33  ;;  %v1165_v44 = vsel %vm1164_vm8, %v1161_v55, %v1163_v54  ;;  %v1166_v45 = vsel %vm1164_vm8, %v1163_v54, %v1161_v55 }
 0x4ac   : > { %v1146_v9 = vmul.f32 %v1142_v3, %v3104_v42  ;;  %v1147_v41 = vmul.f32 %v1143_v35, %v3106_v43  ;;  %2079 = vrot.lane.b32.xlu0 %v2960_v11, %s2684_s25  ;;  %v1156_v42 = vmul.f32 %v1142_v3, %v3199_v38  ;;  %v1157_v43 = vmul.f32 %v1143_v35, %v3201_v10 }
 0x4ad   : > { %v1121_v12 = vadd.f32 %v1117_v34, %v1098_v36  ;;  %v1122_v13 = vadd.f32 %v1118_v2, %v1099_v37  ;;  %2077 = vrot.lane.b32.xlu1 %v2957_v8, %s2684_s25  ;;  %v1171_v58 = vmul.f32 %v1166_v45, %v3199_v38  ;;  %v1172_v22 = vmul.f32 %v1165_v44, %v3201_v10 }
 0x4ae   : > { %v1150_v46 = vrot.slane %v1146_v9, 7  ;;  %v1151_v47 = vrot.slane %v1147_v41, 7  ;;  %v1184_v50 = vpop.permute.xlu0 %1183  ;;  %v1182_v51 = vpop.permute.xlu1 %1181  ;;  %v1167_v62 = vmul.f32 %v1166_v45, %v3216_v48  ;;  %v1168_v63 = vmul.f32 %v1165_v44, %v3218_v49 }
 0x4af   : > { %v1131_v52 = vadd.f32 %v1127_v39, %v1121_v12  ;;  %v1132_v53 = vadd.f32 %v1128_v40, %v1122_v13  ;;  %v1186_v56 = vsel %vm1185_vm9, %v1182_v51, %v1184_v50  ;;  %v1187_v57 = vsel %vm1185_vm9, %v1184_v50, %v1182_v51 }
 0x4b0   : > { %v1190_v59 = vrot.slane %v1187_v57, 7  ;;  %v1191_v21 = vrot.slane %v1186_v56, 7  ;;  %2112 = vrot.lane.b32.xlu0 %v2960_v11, %s2685_s12  ;;  %v1175_v27 = vrot.slane %v1171_v58, 1  ;;  %v1176_v7 = vrot.slane %v1172_v22, 1 }
 0x4b1   : > { %v1154_v60 = vadd.f32 %v1150_v46, %v1131_v52  ;;  %v1155_v61 = vadd.f32 %v1151_v47, %v1132_v53  ;;  %2110 = vrot.lane.b32.xlu1 %v2957_v8, %s2685_s12  ;;  %vm1556_vm4 = vcmp.lt.s32.totalorder %v2901_v32, 114  ;;  %vm1589_vm5 = vcmp.lt.s32.totalorder %v2901_v32, 113 }
 0x4b2   : > { %v1194_v0 = vmul.f32 %v1190_v59, %v3216_v48  ;;  %v1195_v5 = vmul.f32 %v1191_v21, %v3218_v49  ;;  %v1204_v14 = vmul.f32 %v1190_v59, %v3199_v38  ;;  %v1205_v15 = vmul.f32 %v1191_v21, %v3201_v10  ;;  %v1217_v16 = vpop.permute.xlu0 %1216  ;;  %v1215_v17 = vpop.permute.xlu1 %1214 }
 0x4b3   : > { %v1158_v18 = vadd.f32 %v1156_v42, %v1154_v60  ;;  %v1159_v19 = vadd.f32 %v1157_v43, %v1155_v61  ;;  %v1219_v23 = vsel %vm1218_vm10, %v1215_v17, %v1217_v16  ;;  %v1220_v24 = vsel %vm1218_vm10, %v1217_v16, %v1215_v17 }
 0x4b4   : > { %v1198_v6 = vrot.slane %v1194_v0, 1  ;;  %v1199_v33 = vrot.slane %v1195_v5, 1  ;;  %2139 = vrot.lane.b32.xlu0 %v2960_v11, %s2686_s28  ;;  %v1223_v3 = vrot.slane %v1220_v24, 6  ;;  %v1224_v35 = vrot.slane %v1219_v23, 6 }
 0x4b5   : > { %v1169_v34 = vadd.f32 %v1167_v62, %v1158_v18  ;;  %v1170_v2 = vadd.f32 %v1168_v63, %v1159_v19  ;;  %2137 = vrot.lane.b32.xlu1 %v2957_v8, %s2686_s28  ;;  %v1208_v54 = vrot.slane %v1204_v14, 2  ;;  %v1209_v55 = vrot.slane %v1205_v15, 2 }
 0x4b6   : > { %v1250_v36 = vpop.permute.xlu0 %1249  ;;  %v1248_v37 = vpop.permute.xlu1 %1247  ;;  %v1227_v9 = vmul.f32 %v1223_v3, %v3216_v48  ;;  %v1228_v41 = vmul.f32 %v1224_v35, %v3218_v49  ;;  %v1237_v12 = vmul.f32 %v1223_v3, %v3199_v38  ;;  %v1238_v13 = vmul.f32 %v1224_v35, %v3201_v10 }
 0x4b7   : > { %v1179_v39 = vadd.f32 %v1175_v27, %v1169_v34  ;;  %v1180_v40 = vadd.f32 %v1176_v7, %v1170_v2  ;;  %v1252_v44 = vsel %vm1251_vm11, %v1248_v37, %v1250_v36  ;;  %v1253_v45 = vsel %vm1251_vm11, %v1250_v36, %v1248_v37 }
 0x4b8   : > { %v1231_v42 = vrot.slane %v1227_v9, 2  ;;  %v1232_v43 = vrot.slane %v1228_v41, 2  ;;  %v1241_v50 = vrot.slane %v1237_v12, 3  ;;  %v1242_v51 = vrot.slane %v1238_v13, 3 }
 0x4b9   : > { %v1202_v46 = vadd.f32 %v1198_v6, %v1179_v39  ;;  %v1203_v47 = vadd.f32 %v1199_v33, %v1180_v40  ;;  %v1256_v52 = vrot.slane %v1253_v45, 5  ;;  %v1257_v53 = vrot.slane %v1252_v44, 5 }
 0x4ba   : > { %v1283_v56 = vpop.permute.xlu0 %1282  ;;  %v1281_v57 = vpop.permute.xlu1 %1280  ;;  %vm1622_vm6 = vcmp.lt.s32.totalorder %v2901_v32, 112  ;;  %vm1649_vm7 = vcmp.lt.s32.totalorder %v2901_v32, 111  ;;  %vm1670_vm8 = vcmp.lt.s32.totalorder %v2901_v32, 110  ;;  %vm1703_vm9 = vcmp.lt.s32.totalorder %v2901_v32, 109 }
 0x4bb   : > { %v1212_v58 = vadd.f32 %v1208_v54, %v1202_v46  ;;  %v1213_v22 = vadd.f32 %v1209_v55, %v1203_v47  ;;  %v1285_v59 = vsel %vm1284_vm12, %v1281_v57, %v1283_v56  ;;  %v1286_v21 = vsel %vm1284_vm12, %v1283_v56, %v1281_v57 }
 0x4bc   : > { %v1260_v60 = vmul.f32 %v1256_v52, %v3216_v48  ;;  %v1261_v61 = vmul.f32 %v1257_v53, %v3218_v49  ;;  %v1270_v62 = vmul.f32 %v1256_v52, %v3199_v38  ;;  %v1271_v63 = vmul.f32 %v1257_v53, %v3201_v10 }
 0x4bd   : > { %v1235_v0 = vadd.f32 %v1231_v42, %v1212_v58  ;;  %v1236_v5 = vadd.f32 %v1232_v43, %v1213_v22  ;;  %v1289_v14 = vrot.slane %v1286_v21, 4  ;;  %v1290_v15 = vrot.slane %v1285_v59, 4 }
 0x4be   : > { %v1264_v16 = vrot.slane %v1260_v60, 3  ;;  %v1265_v17 = vrot.slane %v1261_v61, 3  ;;  %v1274_v18 = vrot.slane %v1270_v62, 4  ;;  %v1275_v19 = vrot.slane %v1271_v63, 4  ;;  %v1316_v23 = vpop.permute.xlu0 %1315  ;;  %v1314_v24 = vpop.permute.xlu1 %1313 }
 0x4bf   : > { %v1245_v27 = vadd.f32 %v1241_v50, %v1235_v0  ;;  %v1246_v7 = vadd.f32 %v1242_v51, %v1236_v5  ;;  %v1293_v6 = vmul.f32 %v1289_v14, %v3216_v48  ;;  %v1294_v33 = vmul.f32 %v1290_v15, %v3218_v49 }
 0x4c0   : > { %v1303_v34 = vmul.f32 %v1289_v14, %v3199_v38  ;;  %v1304_v2 = vmul.f32 %v1290_v15, %v3201_v10  ;;  %v1318_v3 = vsel %vm1317_vm13, %v1314_v24, %v1316_v23  ;;  %v1319_v35 = vsel %vm1317_vm13, %v1316_v23, %v1314_v24  ;;  %v3279_v14 = vld [vmem:[#allocation5 + $0x38] sm:$0xff] }
 0x4c1   : > { %v1268_v54 = vadd.f32 %v1264_v16, %v1245_v27  ;;  %v1269_v55 = vadd.f32 %v1265_v17, %v1246_v7  ;;  %v1297_v36 = vrot.slane %v1293_v6, 4  ;;  %v1298_v37 = vrot.slane %v1294_v33, 4 }
 0x4c2   : > { %v1307_v39 = vrot.slane %v1303_v34, 5  ;;  %v1308_v40 = vrot.slane %v1304_v2, 5  ;;  %v1322_v9 = vrot.slane %v1319_v35, 3  ;;  %v1323_v41 = vrot.slane %v1318_v3, 3  ;;  %v1349_v12 = vpop.permute.xlu0 %1348  ;;  %v1347_v13 = vpop.permute.xlu1 %1346  ;;  %v3290_v3 = vld [vmem:[#allocation5 + $0x30] sm:$0xff]  ;;  %v3292_v35 = vld [vmem:[#allocation5 + $0x98] sm:$0xff] }
 0x4c3   : > { %v1278_v44 = vadd.f32 %v1274_v18, %v1268_v54  ;;  %v1279_v45 = vadd.f32 %v1275_v19, %v1269_v55  ;;  %v1351_v46 = vsel %vm1350_vm14, %v1347_v13, %v1349_v12  ;;  %v1352_v47 = vsel %vm1350_vm14, %v1349_v12, %v1347_v13 }
 0x4c4   : > { %v1326_v42 = vmul.f32 %v1322_v9, %v3216_v48  ;;  %v1327_v43 = vmul.f32 %v1323_v41, %v3218_v49  ;;  %v1336_v50 = vmul.f32 %v1322_v9, %v3199_v38  ;;  %v1337_v51 = vmul.f32 %v1323_v41, %v3201_v10 }
 0x4c5   : > { %v1301_v52 = vadd.f32 %v1297_v36, %v1278_v44  ;;  %v1302_v53 = vadd.f32 %v1298_v37, %v1279_v45  ;;  %v1355_v56 = vrot.slane %v1352_v47, 2  ;;  %v1356_v57 = vrot.slane %v1351_v46, 2 }
 0x4c6   : > { %v1330_v58 = vrot.slane %v1326_v42, 5  ;;  %v1331_v22 = vrot.slane %v1327_v43, 5  ;;  %v1340_v59 = vrot.slane %v1336_v50, 6  ;;  %v1341_v21 = vrot.slane %v1337_v51, 6  ;;  %v1382_v60 = vpop.permute.xlu0 %1381  ;;  %v1380_v61 = vpop.permute.xlu1 %1379 }
 0x4c7   : > { %v1311_v62 = vadd.f32 %v1307_v39, %v1301_v52  ;;  %v1312_v63 = vadd.f32 %v1308_v40, %v1302_v53  ;;  %v1359_v0 = vmul.f32 %v1355_v56, %v3216_v48  ;;  %v1360_v5 = vmul.f32 %v1356_v57, %v3218_v49  ;;  %v3298_v39 = vld [vmem:[#allocation5 + $0x90] sm:$0xff] }
 0x4c8   : > { %v1369_v15 = vmul.f32 %v1355_v56, %v3199_v38  ;;  %v1370_v16 = vmul.f32 %v1356_v57, %v3201_v10  ;;  %v1384_v17 = vsel %vm1383_vm15, %v1380_v61, %v1382_v60  ;;  %v1385_v18 = vsel %vm1383_vm15, %v1382_v60, %v1380_v61 }
 0x4c9   : > { %v1334_v19 = vadd.f32 %v1330_v58, %v1311_v62  ;;  %v1335_v23 = vadd.f32 %v1331_v22, %v1312_v63  ;;  %v1363_v24 = vrot.slane %v1359_v0, 6  ;;  %v1364_v27 = vrot.slane %v1360_v5, 6 }
 0x4ca   : > { %v1407_v7 = vmul.f32 %v3279_v14, %v2960_v11  ;;  %v1388_v6 = vrot.slane %v1385_v18, 1  ;;  %v1389_v33 = vrot.slane %v1384_v17, 1  ;;  %v1423_v34 = vpop.permute.xlu0 %1422  ;;  %v1421_v2 = vpop.permute.xlu1 %1420  ;;  %v1373_v36 = vrot.slane %v1369_v15, 7 }
 0x4cb   : > { %v1344_v38 = vadd.f32 %v1340_v59, %v1334_v19  ;;  %v1345_v10 = vadd.f32 %v1341_v21, %v1335_v23  ;;  %v1425_v54 = vsel %vm1424_vm0, %v1421_v2, %v1423_v34  ;;  %v1426_v55 = vsel %vm1424_vm0, %v1423_v34, %v1421_v2 }
 0x4cc   : > { %v1374_v37 = vrot.slane %v1370_v16, 7  ;;  %v1392_v40 = vmul.f32 %v1388_v6, %v3216_v48  ;;  %v1393_v9 = vmul.f32 %v1389_v33, %v3218_v49  ;;  %v1429_v13 = vrot.slane %v1425_v54, 7 }
 0x4cd   : > { %v1367_v41 = vadd.f32 %v1363_v24, %v1344_v38  ;;  %v1368_v12 = vadd.f32 %v1364_v27, %v1345_v10  ;;  %v1430_v44 = vrot.slane %v1426_v55, 7  ;;  %v1406_v47 = vmul.f32 %v3290_v3, %v2957_v8 }
 0x4ce   : > { %v1396_v45 = vrot.slane %v1392_v40, 7  ;;  %v1397_v46 = vrot.slane %v1393_v9, 7  ;;  %v1411_v42 = vmul.f32 %v3292_v35, %v2960_v11  ;;  %v1456_v43 = vpop.permute.xlu0 %1455  ;;  %v1454_v50 = vpop.permute.xlu1 %1453  ;;  %v1410_v48 = vmul.f32 %v3298_v39, %v2957_v8 }
 0x4cf   : > { %v1377_v51 = vadd.f32 %v1373_v36, %v1367_v41  ;;  %v1378_v52 = vadd.f32 %v1374_v37, %v1368_v12  ;;  %v1402_v49 = vmul.f32 %v1388_v6, %v3298_v39  ;;  %v1403_v53 = vmul.f32 %v1389_v33, %v3292_v35 }
 0x4d0   : > { %v1458_v56 = vsel %vm1457_vm1, %v1454_v50, %v1456_v43  ;;  %v1459_v57 = vsel %vm1457_vm1, %v1456_v43, %v1454_v50  ;;  %v1433_v22 = vmul.f32 %v1429_v13, %v3290_v3  ;;  %v1434_v59 = vmul.f32 %v1430_v44, %v3279_v14 }
 0x4d1   : > { %v1400_v11 = vadd.f32 %v1396_v45, %v1377_v51  ;;  %v1401_v58 = vadd.f32 %v1397_v46, %v1378_v52  ;;  %v1443_v8 = vmul.f32 %v1429_v13, %v3298_v39  ;;  %v1444_v21 = vmul.f32 %v1430_v44, %v3292_v35 }
 0x4d2   : > { %v1462_v60 = vrot.slane %v1458_v56, 6  ;;  %v1463_v61 = vrot.slane %v1459_v57, 6  ;;  %v1489_v62 = vpop.permute.xlu0 %1488  ;;  %v1487_v63 = vpop.permute.xlu1 %1486  ;;  %v1415_v17 = vrot.slane %v1411_v42, 1  ;;  %v1414_v18 = vrot.slane %v1410_v48, 1 }
 0x4d3   : > { %v1404_v0 = vadd.f32 %v1402_v49, %v1400_v11  ;;  %v1405_v5 = vadd.f32 %v1403_v53, %v1401_v58  ;;  %v1491_v15 = vsel %vm1490_vm2, %v1487_v63, %v1489_v62  ;;  %v1492_v16 = vsel %vm1490_vm2, %v1489_v62, %v1487_v63 }
 0x4d4   : > { %v1466_v24 = vmul.f32 %v1462_v60, %v3290_v3  ;;  %v1467_v27 = vmul.f32 %v1463_v61, %v3279_v14  ;;  %v1437_v6 = vrot.slane %v1433_v22, 1  ;;  %v1438_v33 = vrot.slane %v1434_v59, 1 }
 0x4d5   : > { %v1408_v19 = vadd.f32 %v1406_v47, %v1404_v0  ;;  %v1409_v23 = vadd.f32 %v1407_v7, %v1405_v5  ;;  %v1495_v34 = vrot.slane %v1491_v15, 5  ;;  %v1496_v2 = vrot.slane %v1492_v16, 5 }
 0x4d6   : > { %v1522_v38 = vpop.permute.xlu0 %1521  ;;  %v1520_v10 = vpop.permute.xlu1 %1519  ;;  %v1447_v36 = vrot.slane %v1443_v8, 2  ;;  %v1448_v37 = vrot.slane %v1444_v21, 2  ;;  %v1476_v40 = vmul.f32 %v1462_v60, %v3298_v39  ;;  %v1477_v7 = vmul.f32 %v1463_v61, %v3292_v35 }
 0x4d7   : > { %v1419_v54 = vadd.f32 %v1415_v17, %v1409_v23  ;;  %v1418_v55 = vadd.f32 %v1414_v18, %v1408_v19  ;;  %v1524_v9 = vsel %vm1523_vm3, %v1520_v10, %v1522_v38  ;;  %v1525_v41 = vsel %vm1523_vm3, %v1522_v38, %v1520_v10 }
 0x4d8   : > { %v1470_v44 = vrot.slane %v1466_v24, 2  ;;  %v1471_v45 = vrot.slane %v1467_v27, 2  ;;  %v1499_v46 = vmul.f32 %v1495_v34, %v3290_v3  ;;  %v1500_v47 = vmul.f32 %v1496_v2, %v3279_v14 }
 0x4d9   : > { %v1441_v12 = vadd.f32 %v1437_v6, %v1418_v55  ;;  %v1442_v13 = vadd.f32 %v1438_v33, %v1419_v54  ;;  %v1528_v42 = vrot.slane %v1524_v9, 4  ;;  %v1529_v43 = vrot.slane %v1525_v41, 4 }
 0x4da   : > { %v1555_v50 = vpop.permute.xlu0 %1554  ;;  %v1553_v51 = vpop.permute.xlu1 %1552  ;;  %v1480_v56 = vrot.slane %v1476_v40, 3  ;;  %v1481_v57 = vrot.slane %v1477_v7, 3  ;;  %v1509_v11 = vmul.f32 %v1495_v34, %v3298_v39  ;;  %v1510_v58 = vmul.f32 %v1496_v2, %v3292_v35 }
 0x4db   : > { %v1451_v52 = vadd.f32 %v1447_v36, %v1441_v12  ;;  %v1452_v48 = vadd.f32 %v1448_v37, %v1442_v13  ;;  %v1557_v49 = vsel %vm1556_vm4, %v1553_v51, %v1555_v50  ;;  %v1558_v53 = vsel %vm1556_vm4, %v1555_v50, %v1553_v51 }
 0x4dc   : > { %v1561_v8 = vrot.slane %v1557_v49, 3  ;;  %v1562_v21 = vrot.slane %v1558_v53, 3  ;;  %v1503_v60 = vrot.slane %v1499_v46, 3  ;;  %v1504_v61 = vrot.slane %v1500_v47, 3 }
 0x4dd   : > { %v1474_v22 = vadd.f32 %v1470_v44, %v1451_v52  ;;  %v1475_v59 = vadd.f32 %v1471_v45, %v1452_v48  ;;  %v1532_v62 = vmul.f32 %v1528_v42, %v3290_v3  ;;  %v1533_v63 = vmul.f32 %v1529_v43, %v3279_v14 }
 0x4de   : > { %v1588_v0 = vpop.permute.xlu0 %1587  ;;  %v1542_v16 = vmul.f32 %v1528_v42, %v3298_v39  ;;  %v1543_v17 = vmul.f32 %v1529_v43, %v3292_v35  ;;  %v1586_v18 = vpop.permute.xlu1 %1585  ;;  %v1565_v19 = vmul.f32 %v1561_v8, %v3290_v3  ;;  %v1566_v23 = vmul.f32 %v1562_v21, %v3279_v14 }
 0x4df   : > { %v1484_v5 = vadd.f32 %v1480_v56, %v1474_v22  ;;  %v1485_v15 = vadd.f32 %v1481_v57, %v1475_v59  ;;  %v1590_v24 = vsel %vm1589_vm5, %v1586_v18, %v1588_v0  ;;  %v1591_v27 = vsel %vm1589_vm5, %v1588_v0, %v1586_v18 }
 0x4e0   : > { %v1513_v34 = vrot.slane %v1509_v11, 4  ;;  %v1514_v2 = vrot.slane %v1510_v58, 4  ;;  %v1536_v38 = vrot.slane %v1532_v62, 4  ;;  %v1537_v10 = vrot.slane %v1533_v63, 4 }
 0x4e1   : > { %v1507_v6 = vadd.f32 %v1503_v60, %v1484_v5  ;;  %v1508_v33 = vadd.f32 %v1504_v61, %v1485_v15  ;;  %v1594_v54 = vrot.slane %v1590_v24, 2  ;;  %v1595_v55 = vrot.slane %v1591_v27, 2 }
 0x4e2   : > { %v1621_v36 = vpop.permute.xlu0 %1620  ;;  %v1546_v7 = vrot.slane %v1542_v16, 5  ;;  %v1547_v9 = vrot.slane %v1543_v17, 5  ;;  %v1619_v41 = vpop.permute.xlu1 %1618  ;;  %v1569_v12 = vrot.slane %v1565_v19, 5  ;;  %v1570_v13 = vrot.slane %v1566_v23, 5 }
 0x4e3   : > { %v1517_v37 = vadd.f32 %v1513_v34, %v1507_v6  ;;  %v1518_v40 = vadd.f32 %v1514_v2, %v1508_v33  ;;  %v1575_v44 = vmul.f32 %v1561_v8, %v3298_v39  ;;  %v1576_v45 = vmul.f32 %v1562_v21, %v3292_v35  ;;  %v3376_v6 = vld [vmem:[#allocation5 + $0xa0] sm:$0xff]  ;;  %v3378_v33 = vld [vmem:[#allocation5 + $0xa8] sm:$0xff] }
 0x4e4   : > { %v1623_v42 = vsel %vm1622_vm6, %v1619_v41, %v1621_v36  ;;  %v1624_v43 = vsel %vm1622_vm6, %v1621_v36, %v1619_v41  ;;  %v1598_v50 = vmul.f32 %v1594_v54, %v3290_v3  ;;  %v1599_v51 = vmul.f32 %v1595_v55, %v3279_v14  ;;  %v3384_v36 = vld [vmem:[#allocation5 + $0x48] sm:$0xff] }
 0x4e5   : > { %v1540_v46 = vadd.f32 %v1536_v38, %v1517_v37  ;;  %v1541_v47 = vadd.f32 %v1537_v10, %v1518_v40  ;;  %v1608_v52 = vmul.f32 %v1594_v54, %v3298_v39  ;;  %v1609_v48 = vmul.f32 %v1595_v55, %v3292_v35  ;;  %v3382_v55 = vld [vmem:[#allocation5 + $0x40] sm:$0xff] }
 0x4e6   : > { %v1648_v49 = vpop.permute.xlu0 %1647  ;;  %v1627_v57 = vrot.slane %v1623_v42, 1  ;;  %v1628_v11 = vrot.slane %v1624_v43, 1  ;;  %v1646_v58 = vpop.permute.xlu1 %1645  ;;  %v1579_v8 = vrot.slane %v1575_v44, 6  ;;  %v1580_v21 = vrot.slane %v1576_v45, 6 }
 0x4e7   : > { %v1550_v53 = vadd.f32 %v1546_v7, %v1540_v46  ;;  %v1551_v56 = vadd.f32 %v1547_v9, %v1541_v47  ;;  %v1602_v60 = vrot.slane %v1598_v50, 6  ;;  %v1603_v39 = vrot.slane %v1599_v51, 6 }
 0x4e8   : > { %v1631_v35 = vmul.f32 %v1627_v57, %v3290_v3  ;;  %v1632_v61 = vmul.f32 %v1628_v11, %v3279_v14  ;;  %v1612_v5 = vrot.slane %v1608_v52, 7  ;;  %v1613_v15 = vrot.slane %v1609_v48, 7 }
 0x4e9   : > { %v1573_v22 = vadd.f32 %v1569_v12, %v1550_v53  ;;  %v1574_v59 = vadd.f32 %v1570_v13, %v1551_v56  ;;  %v1650_v17 = vsel %vm1649_vm7, %v1646_v58, %v1648_v49  ;;  %v1651_v18 = vsel %vm1649_vm7, %v1648_v49, %v1646_v58 }
 0x4ea   : > { %v1669_v62 = vpop.permute.xlu0 %1668  ;;  %v1667_v16 = vpop.permute.xlu1 %1666  ;;  %v1635_v34 = vrot.slane %v1631_v35, 7  ;;  %v1636_v2 = vrot.slane %v1632_v61, 7  ;;  %vm1736_vm10 = vcmp.lt.s32.totalorder %v2901_v32, 99  ;;  %vm1769_vm11 = vcmp.lt.s32.totalorder %v2901_v32, 98 }
 0x4eb   : > { %v1583_v63 = vadd.f32 %v1579_v8, %v1573_v22  ;;  %v1584_v0 = vadd.f32 %v1580_v21, %v1574_v59  ;;  %v1671_v19 = vsel %vm1670_vm8, %v1667_v16, %v1669_v62  ;;  %v1672_v3 = vsel %vm1670_vm8, %v1669_v62, %v1667_v16 }
 0x4ec   : > { %v1675_v24 = vrot.slane %v1671_v19, 7  ;;  %v1676_v27 = vrot.slane %v1672_v3, 7  ;;  %v1656_v37 = vmul.f32 %v1650_v17, %v3376_v6  ;;  %v1657_v40 = vmul.f32 %v1651_v18, %v3378_v33 }
 0x4ed   : > { %v1606_v23 = vadd.f32 %v1602_v60, %v1583_v63  ;;  %v1607_v14 = vadd.f32 %v1603_v39, %v1584_v0  ;;  %v1641_v46 = vmul.f32 %v1627_v57, %v3376_v6  ;;  %v1642_v47 = vmul.f32 %v1628_v11, %v3378_v33 }
 0x4ee   : > { %v1702_v38 = vpop.permute.xlu0 %1701  ;;  %v1679_v9 = vmul.f32 %v1675_v24, %v3382_v55  ;;  %v1680_v41 = vmul.f32 %v1676_v27, %v3384_v36  ;;  %v1689_v42 = vmul.f32 %v1675_v24, %v3376_v6  ;;  %v1690_v43 = vmul.f32 %v1676_v27, %v3378_v33 }
 0x4ef   : > { %v1616_v10 = vadd.f32 %v1612_v5, %v1606_v23  ;;  %v1617_v54 = vadd.f32 %v1613_v15, %v1607_v14  ;;  %v1700_v7 = vpop.permute.xlu1 %1699  ;;  %v1652_v53 = vmul.f32 %v1650_v17, %v3382_v55  ;;  %v1653_v56 = vmul.f32 %v1651_v18, %v3384_v36 }
 0x4f0   : > { %v1704_v12 = vsel %vm1703_vm9, %v1700_v7, %v1702_v38  ;;  %v1705_v13 = vsel %vm1703_vm9, %v1702_v38, %v1700_v7  ;;  %vm1802_vm12 = vcmp.lt.s32.totalorder %v2901_v32, 97  ;;  %v1660_v22 = vrot.slane %v1656_v37, 1 }
 0x4f1   : > { %v1639_v44 = vadd.f32 %v1635_v34, %v1616_v10  ;;  %v1640_v45 = vadd.f32 %v1636_v2, %v1617_v54  ;;  %v1708_v50 = vrot.slane %v1704_v12, 6  ;;  %v1709_v51 = vrot.slane %v1705_v13, 6 }
 0x4f2   : > { %v1735_v52 = vpop.permute.xlu0 %1734  ;;  %v1661_v57 = vrot.slane %v1657_v40, 1  ;;  %v1683_v59 = vrot.slane %v1679_v9, 1  ;;  %v1684_v11 = vrot.slane %v1680_v41, 1  ;;  %vm1835_vm13 = vcmp.lt.s32.totalorder %v2901_v32, 96 }
 0x4f3   : > { %v1643_v48 = vadd.f32 %v1641_v46, %v1639_v44  ;;  %v1644_v49 = vadd.f32 %v1642_v47, %v1640_v45  ;;  %v1733_v58 = vpop.permute.xlu1 %1732  ;;  %v1693_v35 = vrot.slane %v1689_v42, 2  ;;  %v1694_v61 = vrot.slane %v1690_v43, 2 }
 0x4f4   : > { %v1737_v60 = vsel %vm1736_vm10, %v1733_v58, %v1735_v52  ;;  %v1738_v39 = vsel %vm1736_vm10, %v1735_v52, %v1733_v58  ;;  %v1712_v62 = vmul.f32 %v1708_v50, %v3382_v55  ;;  %v1713_v63 = vmul.f32 %v1709_v51, %v3384_v36 }
 0x4f5   : > { %v1654_v8 = vadd.f32 %v1652_v53, %v1643_v48  ;;  %v1655_v21 = vadd.f32 %v1653_v56, %v1644_v49  ;;  %v1741_v16 = vrot.slane %v1737_v60, 5  ;;  %v1742_v17 = vrot.slane %v1738_v39, 5 }
 0x4f6   : > { %v1768_v0 = vpop.permute.xlu0 %1767  ;;  %v1722_v19 = vmul.f32 %v1708_v50, %v3376_v6  ;;  %v1723_v3 = vmul.f32 %v1709_v51, %v3378_v33  ;;  %v1716_v41 = vrot.slane %v1712_v62, 2  ;;  %v1717_v12 = vrot.slane %v1713_v63, 2 }
 0x4f7   : > { %v1664_v5 = vadd.f32 %v1660_v22, %v1654_v8  ;;  %v1665_v15 = vadd.f32 %v1661_v57, %v1655_v21  ;;  %v1766_v18 = vpop.permute.xlu1 %1765  ;;  %v1745_v34 = vmul.f32 %v1741_v16, %v3382_v55  ;;  %v1746_v2 = vmul.f32 %v1742_v17, %v3384_v36 }
 0x4f8   : > { %v1770_v23 = vsel %vm1769_vm11, %v1766_v18, %v1768_v0  ;;  %v1771_v14 = vsel %vm1769_vm11, %v1768_v0, %v1766_v18  ;;  %v1755_v38 = vmul.f32 %v1741_v16, %v3376_v6  ;;  %v1756_v10 = vmul.f32 %v1742_v17, %v3378_v33 }
 0x4f9   : > { %v1687_v24 = vadd.f32 %v1683_v59, %v1664_v5  ;;  %v1688_v27 = vadd.f32 %v1684_v11, %v1665_v15  ;;  %v1774_v54 = vrot.slane %v1770_v23, 4  ;;  %v1775_v37 = vrot.slane %v1771_v14, 4 }
 0x4fa   : > { %v1801_v40 = vpop.permute.xlu0 %1800  ;;  %vm1868_vm14 = vcmp.lt.s32.totalorder %v2901_v32, 95  ;;  %v1726_v44 = vrot.slane %v1722_v19, 3  ;;  %v1727_v45 = vrot.slane %v1723_v3, 3  ;;  %v1749_v46 = vrot.slane %v1745_v34, 3 }
 0x4fb   : > { %v1697_v7 = vadd.f32 %v1693_v35, %v1687_v24  ;;  %v1698_v9 = vadd.f32 %v1694_v61, %v1688_v27  ;;  %v1799_v13 = vpop.permute.xlu1 %1798  ;;  %v1750_v47 = vrot.slane %v1746_v2, 3  ;;  %v1759_v50 = vrot.slane %v1755_v38, 4 }
 0x4fc   : > { %v1760_v51 = vrot.slane %v1756_v10, 4  ;;  %v1778_v52 = vmul.f32 %v1774_v54, %v3382_v55  ;;  %v1779_v48 = vmul.f32 %v1775_v37, %v3384_v36  ;;  %v1803_v49 = vsel %vm1802_vm12, %v1799_v13, %v1801_v40 }
 0x4fd   : > { %v1720_v42 = vadd.f32 %v1716_v41, %v1697_v7  ;;  %v1721_v43 = vadd.f32 %v1717_v12, %v1698_v9  ;;  %v1804_v53 = vsel %vm1802_vm12, %v1801_v40, %v1799_v13  ;;  %v1788_v57 = vmul.f32 %v1774_v54, %v3376_v6 }
 0x4fe   : > { %v1834_v56 = vpop.permute.xlu0 %1833  ;;  %v1789_v59 = vmul.f32 %v1775_v37, %v3378_v33  ;;  %v1807_v8 = vrot.slane %v1803_v49, 3  ;;  %v1808_v21 = vrot.slane %v1804_v53, 3  ;;  %v1782_v0 = vrot.slane %v1778_v52, 4 }
 0x4ff   : > { %v1730_v58 = vadd.f32 %v1726_v44, %v1720_v42  ;;  %v1731_v22 = vadd.f32 %v1727_v45, %v1721_v43  ;;  %v1832_v11 = vpop.permute.xlu1 %1831  ;;  %v1783_v5 = vrot.slane %v1779_v48, 4  ;;  %v1792_v3 = vrot.slane %v1788_v57, 5 }
 0x500   : > { %v1836_v60 = vsel %vm1835_vm13, %v1832_v11, %v1834_v56  ;;  %v1837_v39 = vsel %vm1835_vm13, %v1834_v56, %v1832_v11  ;;  %v1811_v15 = vmul.f32 %v1807_v8, %v3382_v55  ;;  %v1812_v16 = vmul.f32 %v1808_v21, %v3384_v36 }
 0x501   : > { %v1753_v35 = vadd.f32 %v1749_v46, %v1730_v58  ;;  %v1754_v61 = vadd.f32 %v1750_v47, %v1731_v22  ;;  %v1840_v62 = vrot.slane %v1836_v60, 2  ;;  %v1841_v63 = vrot.slane %v1837_v39, 2 }
 0x502   : > { %v1867_v17 = vpop.permute.xlu0 %1866  ;;  %v1793_v23 = vrot.slane %v1789_v59, 5  ;;  %v1821_v24 = vmul.f32 %v1807_v8, %v3376_v6  ;;  %v1822_v27 = vmul.f32 %v1808_v21, %v3378_v33  ;;  %v1815_v54 = vrot.slane %v1811_v15, 5 }
 0x503   : > { %v1763_v18 = vadd.f32 %v1759_v50, %v1753_v35  ;;  %v1764_v19 = vadd.f32 %v1760_v51, %v1754_v61  ;;  %v1865_v14 = vpop.permute.xlu1 %1864  ;;  %v1844_v34 = vmul.f32 %v1840_v62, %v3382_v55  ;;  %v1845_v2 = vmul.f32 %v1841_v63, %v3384_v36  ;;  %v3456_v35 = vld [vmem:[#allocation5 + $0xb0] sm:$0xff]  ;;  %v3458_v61 = vld [vmem:[#allocation5 + $0xb8] sm:$0xff] }
 0x504   : > { %v1816_v37 = vrot.slane %v1812_v16, 5  ;;  %v1854_v40 = vmul.f32 %v1840_v62, %v3376_v6  ;;  %v1855_v7 = vmul.f32 %v1841_v63, %v3378_v33  ;;  %v1869_v9 = vsel %vm1868_vm14, %v1865_v14, %v1867_v17  ;;  %v3462_v16 = vld [vmem:[#allocation5 + $0x50] sm:$0xff] }
 0x505   : > { %v1786_v38 = vadd.f32 %v1782_v0, %v1763_v18  ;;  %v1787_v10 = vadd.f32 %v1783_v5, %v1764_v19  ;;  %v1870_v41 = vsel %vm1868_vm14, %v1867_v17, %v1865_v14  ;;  %v1873_v45 = vrot.slane %v1869_v9, 1  ;;  %v3464_v17 = vld [vmem:[#allocation5 + $0x58] sm:$0xff] }
 0x506   : > { %v1894_v12 = vpop.permute.xlu0 %1893  ;;  %v1874_v46 = vrot.slane %v1870_v41, 1  ;;  %vm1895_vm15 = vcmp.lt.s32.totalorder %v2901_v32, 94  ;;  %vm1916_vm0 = vcmp.lt.s32.totalorder %v2901_v32, 93  ;;  %vm1949_vm1 = vcmp.lt.s32.totalorder %v2901_v32, 83 }
 0x507   : > { %v1796_v13 = vadd.f32 %v1792_v3, %v1786_v38  ;;  %v1797_v44 = vadd.f32 %v1793_v23, %v1787_v10  ;;  %v1892_v47 = vpop.permute.xlu1 %1891  ;;  %v1825_v42 = vrot.slane %v1821_v24, 6  ;;  %v1826_v43 = vrot.slane %v1822_v27, 6 }
 0x508   : > { %v1848_v50 = vrot.slane %v1844_v34, 6  ;;  %v1849_v51 = vrot.slane %v1845_v2, 6  ;;  %v1877_v52 = vmul.f32 %v1873_v45, %v3382_v55  ;;  %v1878_v48 = vmul.f32 %v1874_v46, %v3384_v36 }
 0x509   : > { %v1819_v6 = vadd.f32 %v1815_v54, %v1796_v13  ;;  %v1820_v33 = vadd.f32 %v1816_v37, %v1797_v44  ;;  %v1858_v58 = vrot.slane %v1854_v40, 7  ;;  %v1859_v22 = vrot.slane %v1855_v7, 7 }
 0x50a   : > { %v1915_v49 = vpop.permute.xlu0 %1914  ;;  %v1896_v59 = vsel %vm1895_vm15, %v1892_v47, %v1894_v12  ;;  %v1897_v11 = vsel %vm1895_vm15, %v1894_v12, %v1892_v47  ;;  %v1881_v62 = vrot.slane %v1877_v52, 7  ;;  %v1882_v63 = vrot.slane %v1878_v48, 7 }
 0x50b   : > { %v1829_v53 = vadd.f32 %v1825_v42, %v1819_v6  ;;  %v1830_v56 = vadd.f32 %v1826_v43, %v1820_v33  ;;  %v1913_v57 = vpop.permute.xlu1 %1912  ;;  %vm1982_vm2 = vcmp.lt.s32.totalorder %v2901_v32, 82  ;;  %vm2015_vm3 = vcmp.lt.s32.totalorder %v2901_v32, 81 }
 0x50c   : > { %v1917_v8 = vsel %vm1916_vm0, %v1913_v57, %v1915_v49  ;;  %v1918_v55 = vsel %vm1916_vm0, %v1915_v49, %v1913_v57  ;;  %v1902_v18 = vmul.f32 %v1896_v59, %v3456_v35  ;;  %v1903_v19 = vmul.f32 %v1897_v11, %v3458_v61 }
 0x50d   : > { %v1852_v21 = vadd.f32 %v1848_v50, %v1829_v53  ;;  %v1853_v36 = vadd.f32 %v1849_v51, %v1830_v56  ;;  %v1921_v60 = vrot.slane %v1917_v8, 7  ;;  %v1922_v39 = vrot.slane %v1918_v55, 7 }
 0x50e   : > { %v1948_v0 = vpop.permute.xlu0 %1947  ;;  %v1887_v38 = vmul.f32 %v1873_v45, %v3456_v35  ;;  %v1888_v10 = vmul.f32 %v1874_v46, %v3458_v61  ;;  %v1898_v13 = vmul.f32 %v1896_v59, %v3462_v16  ;;  %v1899_v44 = vmul.f32 %v1897_v11, %v3464_v17 }
 0x50f   : > { %v1862_v5 = vadd.f32 %v1858_v58, %v1852_v21  ;;  %v1863_v15 = vadd.f32 %v1859_v22, %v1853_v36  ;;  %v1946_v3 = vpop.permute.xlu1 %1945  ;;  %v1925_v23 = vmul.f32 %v1921_v60, %v3462_v16  ;;  %v1926_v14 = vmul.f32 %v1922_v39, %v3464_v17 }
 0x510   : > { %v1950_v24 = vsel %vm1949_vm1, %v1946_v3, %v1948_v0  ;;  %v1951_v27 = vsel %vm1949_vm1, %v1948_v0, %v1946_v3  ;;  %v1935_v54 = vmul.f32 %v1921_v60, %v3456_v35  ;;  %v1936_v37 = vmul.f32 %v1922_v39, %v3458_v61 }
 0x511   : > { %v1885_v34 = vadd.f32 %v1881_v62, %v1862_v5  ;;  %v1886_v2 = vadd.f32 %v1882_v63, %v1863_v15  ;;  %v1954_v40 = vrot.slane %v1950_v24, 6  ;;  %v1955_v7 = vrot.slane %v1951_v27, 6 }
 0x512   : > { %v1981_v9 = vpop.permute.xlu0 %1980  ;;  %vm2048_vm4 = vcmp.lt.s32.totalorder %v2901_v32, 80  ;;  %v1906_v6 = vrot.slane %v1902_v18, 1  ;;  %v1907_v45 = vrot.slane %v1903_v19, 1  ;;  %v1929_v33 = vrot.slane %v1925_v23, 1 }
 0x513   : > { %v1889_v41 = vadd.f32 %v1887_v38, %v1885_v34  ;;  %v1890_v12 = vadd.f32 %v1888_v10, %v1886_v2  ;;  %v1979_v47 = vpop.permute.xlu1 %1978  ;;  %v1930_v46 = vrot.slane %v1926_v14, 1  ;;  %vm2081_vm5 = vcmp.lt.s32.totalorder %v2901_v32, 79 }
 0x514   : > { %v1983_v50 = vsel %vm1982_vm2, %v1979_v47, %v1981_v9  ;;  %v1984_v51 = vsel %vm1982_vm2, %v1981_v9, %v1979_v47  ;;  %v1939_v52 = vrot.slane %v1935_v54, 2  ;;  %v1940_v48 = vrot.slane %v1936_v37, 2 }
 0x515   : > { %v1900_v42 = vadd.f32 %v1898_v13, %v1889_v41  ;;  %v1901_v43 = vadd.f32 %v1899_v44, %v1890_v12  ;;  %v1958_v49 = vmul.f32 %v1954_v40, %v3462_v16  ;;  %v1959_v53 = vmul.f32 %v1955_v7, %v3464_v17 }
 0x516   : > { %v2014_v56 = vpop.permute.xlu0 %2013  ;;  %v1987_v57 = vrot.slane %v1983_v50, 5  ;;  %v1988_v59 = vrot.slane %v1984_v51, 5  ;;  %v1968_v8 = vmul.f32 %v1954_v40, %v3456_v35  ;;  %v1969_v55 = vmul.f32 %v1955_v7, %v3458_v61 }
 0x517   : > { %v1910_v58 = vadd.f32 %v1906_v6, %v1900_v42  ;;  %v1911_v22 = vadd.f32 %v1907_v45, %v1901_v43  ;;  %v2012_v11 = vpop.permute.xlu1 %2011  ;;  %v1962_v14 = vrot.slane %v1958_v49, 2  ;;  %v1963_v24 = vrot.slane %v1959_v53, 2 }
 0x518   : > { %v2016_v21 = vsel %vm2015_vm3, %v2012_v11, %v2014_v56  ;;  %v2017_v36 = vsel %vm2015_vm3, %v2014_v56, %v2012_v11  ;;  %v1991_v62 = vmul.f32 %v1987_v57, %v3462_v16  ;;  %v1992_v63 = vmul.f32 %v1988_v59, %v3464_v17 }
 0x519   : > { %v1933_v60 = vadd.f32 %v1929_v33, %v1910_v58  ;;  %v1934_v39 = vadd.f32 %v1930_v46, %v1911_v22  ;;  %v2001_v0 = vmul.f32 %v1987_v57, %v3456_v35  ;;  %v2002_v5 = vmul.f32 %v1988_v59, %v3458_v61 }
 0x51a   : > { %v2020_v15 = vrot.slane %v2016_v21, 4  ;;  %v2021_v18 = vrot.slane %v2017_v36, 4  ;;  %v2047_v19 = vpop.permute.xlu0 %2046  ;;  %v1972_v34 = vrot.slane %v1968_v8, 3  ;;  %v1973_v2 = vrot.slane %v1969_v55, 3 }
 0x51b   : > { %v1943_v3 = vadd.f32 %v1939_v52, %v1933_v60  ;;  %v1944_v23 = vadd.f32 %v1940_v48, %v1934_v39  ;;  %v2045_v27 = vpop.permute.xlu1 %2044  ;;  %v1995_v38 = vrot.slane %v1991_v62, 3  ;;  %v1996_v10 = vrot.slane %v1992_v63, 3 }
 0x51c   : > { %v2005_v40 = vrot.slane %v2001_v0, 4  ;;  %v2006_v7 = vrot.slane %v2002_v5, 4  ;;  %v2024_v9 = vmul.f32 %v2020_v15, %v3462_v16  ;;  %v2025_v41 = vmul.f32 %v2021_v18, %v3464_v17 }
 0x51d   : > { %v1966_v54 = vadd.f32 %v1962_v14, %v1943_v3  ;;  %v1967_v37 = vadd.f32 %v1963_v24, %v1944_v23  ;;  %v2049_v12 = vsel %vm2048_vm4, %v2045_v27, %v2047_v19  ;;  %v2050_v13 = vsel %vm2048_vm4, %v2047_v19, %v2045_v27 }
 0x51e   : > { %v2080_v44 = vpop.permute.xlu0 %2079  ;;  %v2034_v45 = vmul.f32 %v2020_v15, %v3456_v35  ;;  %v2035_v33 = vmul.f32 %v2021_v18, %v3458_v61  ;;  %v2053_v42 = vrot.slane %v2049_v12, 3  ;;  %v2054_v43 = vrot.slane %v2050_v13, 3 }
 0x51f   : > { %v1976_v47 = vadd.f32 %v1972_v34, %v1966_v54  ;;  %v1977_v6 = vadd.f32 %v1973_v2, %v1967_v37  ;;  %v2078_v46 = vpop.permute.xlu1 %2077  ;;  %vm2114_vm6 = vcmp.lt.s32.totalorder %v2901_v32, 78  ;;  %v2028_v59 = vrot.slane %v2024_v9, 4 }
 0x520   : > { %v2082_v50 = vsel %vm2081_vm5, %v2078_v46, %v2080_v44  ;;  %v2083_v51 = vsel %vm2081_vm5, %v2080_v44, %v2078_v46  ;;  %v2057_v56 = vmul.f32 %v2053_v42, %v3462_v16  ;;  %v2058_v58 = vmul.f32 %v2054_v43, %v3464_v17 }
 0x521   : > { %v1999_v52 = vadd.f32 %v1995_v38, %v1976_v47  ;;  %v2000_v48 = vadd.f32 %v1996_v10, %v1977_v6  ;;  %v2086_v49 = vrot.slane %v2082_v50, 2  ;;  %v2087_v53 = vrot.slane %v2083_v51, 2 }
 0x522   : > { %v2029_v11 = vrot.slane %v2025_v41, 4  ;;  %v2113_v8 = vpop.permute.xlu0 %2112  ;;  %v2038_v21 = vrot.slane %v2034_v45, 5  ;;  %v2039_v36 = vrot.slane %v2035_v33, 5  ;;  %v2067_v60 = vmul.f32 %v2053_v42, %v3456_v35  ;;  %v666_v42 = vld [vmem:[#allocation5 + $0xc0] sm:$0x3] }
 0x523   : > { %v2009_v22 = vadd.f32 %v2005_v40, %v1999_v52  ;;  %v2010_v57 = vadd.f32 %v2006_v7, %v2000_v48  ;;  %v2111_v55 = vpop.permute.xlu1 %2110  ;;  %v2068_v39 = vmul.f32 %v2054_v43, %v3458_v61  ;;  %v2090_v0 = vmul.f32 %v2086_v49, %v3462_v16 }
 0x524   : > { %v2091_v5 = vmul.f32 %v2087_v53, %v3464_v17  ;;  %v2061_v15 = vrot.slane %v2057_v56, 5  ;;  %v2062_v18 = vrot.slane %v2058_v58, 5  ;;  %v2115_v19 = vsel %vm2114_vm6, %v2111_v55, %v2113_v8 }
 0x525   : > { %v2032_v62 = vadd.f32 %v2028_v59, %v2009_v22  ;;  %v2033_v63 = vadd.f32 %v2029_v11, %v2010_v57  ;;  %v2116_v3 = vsel %vm2114_vm6, %v2113_v8, %v2111_v55  ;;  %v2119_v24 = vrot.slane %v2115_v19, 1  ;;  %v2505_v57 = vld [vmem:[#allocation5 + $0x60] sm:$0xff]  ;;  %v2506_v11 = vld [vmem:[#allocation5 + $0x68] sm:$0xff] }
 0x526   : > { %v2120_v27 = vrot.slane %v2116_v3, 1  ;;  %v2071_v34 = vrot.slane %v2067_v60, 6  ;;  %v2072_v2 = vrot.slane %v2068_v39, 6  ;;  %v2100_v54 = vmul.f32 %v2086_v49, %v3456_v35  ;;  %v2140_v44 = vpop.permute.xlu0 %2139  ;;  %v667_v35 = vld [vmem:[#allocation5 + $0xc8] sm:$0x3] }
 0x527   : > { %v2042_v23 = vadd.f32 %v2038_v21, %v2032_v62  ;;  %v2043_v14 = vadd.f32 %v2039_v36, %v2033_v63  ;;  %v2101_v37 = vmul.f32 %v2087_v53, %v3458_v61  ;;  %v2094_v40 = vrot.slane %v2090_v0, 6  ;;  %v2138_v47 = vpop.permute.xlu1 %2137 }
 0x528   : > { %v2095_v7 = vrot.slane %v2091_v5, 6  ;;  %vm2141_vm7 = vcmp.lt.s32.totalorder %v2901_v32, 77  ;;  %v2123_v12 = vmul.f32 %v2119_v24, %v3462_v16  ;;  %v2124_v13 = vmul.f32 %v2120_v27, %v3464_v17 }
 0x529   : > { %v2065_v38 = vadd.f32 %v2061_v15, %v2042_v23  ;;  %v2066_v10 = vadd.f32 %v2062_v18, %v2043_v14  ;;  %v2104_v33 = vrot.slane %v2100_v54, 7  ;;  %v2105_v46 = vrot.slane %v2101_v37, 7 }
 0x52a   : > { %v2142_v43 = vsel %vm2141_vm7, %v2138_v47, %v2140_v44  ;;  %v2143_v61 = vsel %vm2141_vm7, %v2140_v44, %v2138_v47  ;;  %v2127_v52 = vrot.slane %v2123_v12, 7  ;;  %v2128_v32 = vrot.slane %v2124_v13, 7 }
 0x52b   : > { %v2075_v9 = vadd.f32 %v2071_v34, %v2065_v38  ;;  %v2076_v41 = vadd.f32 %v2072_v2, %v2066_v10  ;;  %v2133_v48 = vmul.f32 %v2119_v24, %v666_v42  ;;  %v2134_v49 = vmul.f32 %v2120_v27, %v667_v35 }
 0x52c   : > { %v2148_v56 = vmul.f32 %v2142_v43, %v666_v42  ;;  %v2149_v17 = vmul.f32 %v2143_v61, %v667_v35  ;;  %v2144_v59 = vmul.f32 %v2505_v57, %v2142_v43  ;;  %v2145_v8 = vmul.f32 %v2506_v11, %v2143_v61 }
 0x52d   : > { %v2098_v6 = vadd.f32 %v2094_v40, %v2075_v9  ;;  %v2099_v45 = vadd.f32 %v2095_v7, %v2076_v41 }
 0x52e   : > { %v2152_v36 = vrot.slane %v2148_v56, 1  ;;  %v2153_v60 = vrot.slane %v2149_v17, 1 }
 0x52f   : > { %v2108_v50 = vadd.f32 %v2104_v33, %v2098_v6  ;;  %v2109_v51 = vadd.f32 %v2105_v46, %v2099_v45 }
 0x531   : > { %v2131_v53 = vadd.f32 %v2127_v52, %v2108_v50  ;;  %v2132_v16 = vadd.f32 %v2128_v32, %v2109_v51 }
 0x533   : > { %v2136_v58 = vadd.f32 %v2134_v49, %v2132_v16  ;;  %v2135_v22 = vadd.f32 %v2133_v48, %v2131_v53 }
 0x535   : > { %v2146_v55 = vadd.f32 %v2144_v59, %v2135_v22  ;;  %v2147_v21 = vadd.f32 %v2145_v8, %v2136_v58 }
 0x537   : > { %v2156_v39 = vadd.f32 %v2152_v36, %v2146_v55  ;;  %v2157_v62 = vadd.f32 %v2153_v60, %v2147_v21 }
 0x539   : > { %v2158_v63 = vsub.f32 0.0, %v2156_v39  ;;  %v2159_v0 = vsub.f32 0.0, %v2157_v62 }
 0x53b   : > { %v2160_v5 = vmul.f32 1.442695, %v2158_v63  ;;  %v2162_v15 = vmul.f32 1.442695, %v2159_v0 }
 0x53d   : > { %2497 = vpow2.f32 %v2160_v5 }
 0x53e   : > { %2499 = vpow2.f32 %v2162_v15 }
 0x54a   : > { %v2498_v18 = vpop.eup %2497 }
 0x54b   : > { %v2500_v19 = vpop.eup %2499  ;;  %v2164_v3 = vadd.f32 1.0, %v2498_v18 }
 0x54c   : > { %v2165_v23 = vadd.f32 1.0, %v2500_v19 }
 0x54d   : > { %2501 = vrcp.f32 %v2164_v3 }
 0x54e   : > { %2503 = vrcp.f32 %v2165_v23 }
 0x55a   : > { %v2502_v14 = vpop.eup %2501 }
 0x55b   : > { %v2504_v24 = vpop.eup %2503  ;;  %v2173_v27 = vrot.slane %v2502_v14, %v2913_v20 }
 0x55c   : > { %v2177_v34 = vrot.slane %v2504_v24, %v2913_v20 }
 0x55d   : > { %v2178_v2 = vmul.f32 %v2173_v27, %v2923_v28  ;;  %v2180_v38 = vmul.f32 %v2173_v27, %v2917_v25  ;;  %v2182_v10 = vmul.f32 %v2173_v27, %v2929_v30  ;;  %v2184_v54 = vmul.f32 %v2173_v27, %v2941_v1 }
 0x55e   : > { %v2179_v37 = vmul.f32 %v2177_v34, %v2926_v29  ;;  %v2181_v40 = vmul.f32 %v2177_v34, %v2920_v26  ;;  %v2183_v20 = vmul.f32 %v2177_v34, %v2932_v31  ;;  %v2185_v28 = vmul.f32 %v2177_v34, %v2944_v4 }
 0x55f   : > { %2186 = vst [vmem:[%s230_s23] sm:$0xff] %v2178_v2  ;;  %2188 = vst [vmem:[%s230_s23 + $0x10] sm:$0xff] %v2180_v38 }
 0x560   : > { %2190 = vst [vmem:[%s230_s23 + $0x20] sm:$0xff] %v2182_v10  ;;  %2192 = vst [vmem:[%s230_s23 + $0x30] sm:$0xff] %v2184_v54 }
 0x561   : > { %2187 = vst [vmem:[%s230_s23 + $0x8] sm:$0xff] %v2179_v37  ;;  %2189 = vst [vmem:[%s230_s23 + $0x18] sm:$0xff] %v2181_v40 }
 0x562   : > { %2191 = vst [vmem:[%s230_s23 + $0x28] sm:$0xff] %v2183_v20  ;;  %2193 = vst [vmem:[%s230_s23 + $0x38] sm:$0xff] %v2185_v28 }
 0x563   : > { %2574 = shalt.err (!%p2571_p0)
}
 0x564   : > { %s2575_s11 = scalar_lea.hbm %s3538_s19, 1024  ;;  %s2579_s12 = scalar_lea.hbm %s3592_s4, 2048 }
 0x565   : > { %p2576_p5 = scmp.ne.s32.totalorder %s3538_s19, %s2575_s11  ;;  %p2580_p4 = scmp.lt.s32.totalorder %s3538_s19, %s3592_s4 }
 0x566   : > { %p2581_p6 = scmp.lt.s32.totalorder %s2579_s12, %s2575_s11 }
 0x567   : > { %p2577_p2 = pnand %p2576_p5, %p3608_p11 }
 0x568   : > { %p2582_p8 = por %p2581_p6, %p2580_p4 }
 0x569   : > { %p2578_p1 = pneg %p2577_p2 }
 0x56b   : > { %p2583_p3 = pnand %p2582_p8, %p2578_p1 }
 0x56d   : > { %2586 = shalt.err (!%p2583_p3)
}
 0x56e   : > { %s2688_s23 = smov 256  }
 0x56f   : > { %2385 = dma.vmem_to_hbm [thread:$0]  (%p3608_p11), %s3544_s5, 1024, %s3538_s19, %s2195_s8, %s2688_s23, %s2688_s23, %s2656_s7  }
 0x570 PF: > { %s2223_s6 = sand.u32 1, %s2617_s15   ;;  %p3609_p7 = scmp.ne.s32.totalorder %s3598_s22, 0 }
 0x571   : > { %p3610_p9 = scmp.ge.s32.totalorder %s2629_s18, 2  ;;  %s2224_s24 = scalar_lea.sflag [#allocation4], %s2223_s6 }
 0x573   : > { %p2396_p10 = pnand %p3610_p9, %p3609_p7 }
 0x575   : > { %p2397_p12 = pneg %p2396_p10 }
 0x577   : > { %2612 = dma.done.wait (%p2397_p12), %s2224_s24, 1024  }
 0x578   : > { %2614 = vsyncadd (%p2397_p12), %s2224_s24, 4294966272  ;;  %p18_p13 = scmp.ge.s32.totalorder %s2768_s27, 4   ;;  %s3611_s15 = smov %s2621_s16 }
 0x579   : > { %s3612_s16 = smov %s2625_s17  ;;  %s3613_s17 = smov %s2788_s9 }
 0x57a   : > { %s3614_s18 = smov %s2768_s27  ;;  %20 = sbr.rel (!%p18_p13) target bundleno = 6 (0x6), region = 85 }
 0x57f   :  { %2229 = vsyncpa [#allocation3], 1 }
 0x580   :  { %2231 = vsyncpa [#allocation3 + $0x1], 1 }
 0x581   :  { %2232 = vsyncpa [#allocation6], 1 }
 0x582   :  { %2233 = vsyncpa [#allocation4], 1 }
 0x583   :  { %2235 = vsyncpa [#allocation4 + $0x1], 1 }

</bundles_post_ra>
